<compile_context>
chip_gen: v6e
topology: v6e:2x2x1
jax: 0.10.0
libtpu: 0.0.40
codegen_flags: <defaults>
</compile_context>

<pallas_src>
import math

import jax
import jax.numpy as jnp
from jax import lax
from jax.experimental import pallas as pl
from jax.experimental.pallas import tpu as pltpu  # noqa: F401  (TPU backend)

# ---------------- config (small, consistent with the module) ----------------
VOCAB = 64          # config.model.vocab_size
EMB = 32            # config.model.embedding_size
HID = 32            # config.model.hidden_size
NHEADS = 4          # config.model.num_attention_heads
HEAD = HID // NHEADS
INTER = 64          # config.model.intermediate_size
MAXPOS = 16         # config.model.max_position_embeddings
TYPEVOC = 2         # config.model.type_vocab_size
NLAYERS = 2         # config.model.num_hidden_layers (1 group, shared weights)
LN_EPS = 1e-12      # config.model.layer_norm_eps
INIT_RANGE = 0.02   # config.model.initializer_range
B, S = 2, 8         # batch, sequence length  (hidden_act = 'gelu_new')

LANES = 128

# ---- weight slab row offsets (every segment starts on a multiple of 8 rows) ----
W_WORD = 0                      # (VOCAB, EMB)
W_POS = W_WORD + VOCAB          # 64  (MAXPOS, EMB)
W_TYPE = W_POS + MAXPOS         # 80  (TYPEVOC, EMB), segment padded to 8 rows
W_MAP = W_TYPE + 8              # 88  (EMB, HID)
W_QKV = W_MAP + EMB             # 120 (HID, 3*HID)  fused Q|K|V
W_WO = W_QKV + HID              # 152 (HID, HID)
W_FF = W_WO + HID               # 184 (HID, INTER)
W_FFO = W_FF + HID              # 216 (INTER, HID)
W_POOL = W_FFO + INTER          # 280 (HID, HID)
W_ROWS = W_POOL + HID           # 312

# ---- bias / LN slab rows ----
(B_ELN_G, B_ELN_B, B_MAP, B_QKV, B_AO, B_LN1G, B_LN1B,
 B_FF, B_FFO, B_LN2G, B_LN2B, B_POOL) = range(12)
B_ROWS = 16


# ---------------- in-kernel helpers ----------------
def _layernorm(x, g, b, eps):
    mean = jnp.mean(x, axis=-1, keepdims=True)
    var = jnp.mean((x - mean) ** 2, axis=-1, keepdims=True)
    return (x - mean) * lax.rsqrt(var + eps) * g + b


def _gelu_new(x):
    return 0.5 * x * (1.0 + jnp.tanh(math.sqrt(2.0 / math.pi) * (x + 0.044715 * x * x * x)))


# ---------------- the single fused kernel ----------------
def _make_albert_kernel(Bn, Sn):
    Mn = Bn * Sn
    G = NHEADS * Bn
    inv_sqrt_d = 1.0 / math.sqrt(HEAD)

    def split_heads(x2d):
        # (M, HID) -> (NHEADS*B, S, HEAD); group index g = head*B + batch
        return x2d.reshape(Mn, NHEADS, HEAD).transpose(1, 0, 2).reshape(G, Sn, HEAD)

    def merge_heads(x3d):
        # (NHEADS*B, S, HEAD) -> (M, HID); heads concatenated along lanes
        return x3d.reshape(NHEADS, Mn, HEAD).transpose(1, 0, 2).reshape(Mn, HID)

    def kernel(idt_ref, mask_ref, w_ref, b_ref, out_ref):
        f32 = jnp.float32

        # ---- embeddings (word/type gathers as one-hot matmuls, positions by slice+tile) ----
        ids = idt_ref[:, 0:1]                                            # (M, 1) int32
        tok = idt_ref[:, 1:2]                                            # (M, 1) int32
        word_oh = (lax.broadcasted_iota(jnp.int32, (Mn, VOCAB), 1) == ids).astype(f32)
        we = jnp.dot(word_oh, w_ref[W_WORD:W_WORD + VOCAB, 0:EMB],
                     preferred_element_type=f32)
        type_oh = (lax.broadcasted_iota(jnp.int32, (Mn, TYPEVOC), 1) == tok).astype(f32)
        te = jnp.dot(type_oh, w_ref[W_TYPE:W_TYPE + TYPEVOC, 0:EMB],
                     preferred_element_type=f32)
        # position id of flattened row r=(b,s) is s: just rows 0..S-1 tiled over batch
        pe = jnp.concatenate([w_ref[W_POS:W_POS + Sn, 0:EMB]] * Bn, axis=0)

        h = _layernorm(we + pe + te,
                       b_ref[B_ELN_G:B_ELN_G + 1, 0:EMB],
                       b_ref[B_ELN_B:B_ELN_B + 1, 0:EMB], LN_EPS)        # (M, EMB)

        # ---- embedding -> hidden ----
        h = (jnp.dot(h, w_ref[W_MAP:W_MAP + EMB, 0:HID], preferred_element_type=f32)
             + b_ref[B_MAP:B_MAP + 1, 0:HID])                            # (M, HID)

        # ---- loop-invariant weights + hoisted bias/LN broadcasts ----
        wqkv = w_ref[W_QKV:W_QKV + HID, 0:3 * HID]                       # (HID, 3*HID)
        wo = w_ref[W_WO:W_WO + HID, 0:HID]                               # (HID, HID)
        wf = w_ref[W_FF:W_FF + HID, 0:INTER]                             # (HID, INTER)
        wfo = w_ref[W_FFO:W_FFO + INTER, 0:HID]                          # (INTER, HID)

        bqkv = jnp.broadcast_to(b_ref[B_QKV:B_QKV + 1, 0:3 * HID], (Mn, 3 * HID))
        bo = jnp.broadcast_to(b_ref[B_AO:B_AO + 1, 0:HID], (Mn, HID))
        ln1g = jnp.broadcast_to(b_ref[B_LN1G:B_LN1G + 1, 0:HID], (Mn, HID))
        ln1b = jnp.broadcast_to(b_ref[B_LN1B:B_LN1B + 1, 0:HID], (Mn, HID))
        bf = jnp.broadcast_to(b_ref[B_FF:B_FF + 1, 0:INTER], (Mn, INTER))
        bfo = jnp.broadcast_to(b_ref[B_FFO:B_FFO + 1, 0:HID], (Mn, HID))
        ln2g = jnp.broadcast_to(b_ref[B_LN2G:B_LN2G + 1, 0:HID], (Mn, HID))
        ln2b = jnp.broadcast_to(b_ref[B_LN2B:B_LN2B + 1, 0:HID], (Mn, HID))

        # additive attention mask, (G, 1, S), grouped as g = head*B + batch
        mask3 = ((1.0 - mask_ref[...]) * -10000.0).reshape(Bn, 1, Sn)
        mask_g = jnp.concatenate([mask3] * NHEADS, axis=0)

        # ---- NLAYERS applications of the SAME (shared) ALBERT layer ----
        for _ in range(NLAYERS):
            # fused QKV: one (M, HID) @ (HID, 3*HID) matmul
            qkv = jnp.dot(h, wqkv, preferred_element_type=f32) + bqkv

            qg = split_heads(qkv[:, 0 * HID:1 * HID])                    # (G, S, HEAD)
            kg = split_heads(qkv[:, 1 * HID:2 * HID])
            vg = split_heads(qkv[:, 2 * HID:3 * HID])

            scores = (jnp.einsum('gqd,gkd->gqk', qg, kg, preferred_element_type=f32)
                      * inv_sqrt_d + mask_g)                             # (G, S, S)
            scores = scores - jnp.max(scores, axis=-1, keepdims=True)
            p = jnp.exp(scores)
            p = p / jnp.sum(p, axis=-1, keepdims=True)                   # exact softmax
            ctx = jnp.einsum('gqk,gkd->gqd', p, vg, preferred_element_type=f32)

            attn = jnp.dot(merge_heads(ctx), wo, preferred_element_type=f32) + bo
            attn_out = _layernorm(h + attn, ln1g, ln1b, LN_EPS)

            ffn = _gelu_new(jnp.dot(attn_out, wf, preferred_element_type=f32) + bf)
            ffn_out = jnp.dot(ffn, wfo, preferred_element_type=f32) + bfo
            h = _layernorm(ffn_out + attn_out, ln2g, ln2b, LN_EPS)

        # ---- merged output slab: rows [0:M) = sequence, rows [M:M+B) = pooled ----
        out_ref[0:Mn, :] = h
        cls = h.reshape(Bn, Sn, HID)[:, 0, :]                            # (B, HID)
        pooled = jnp.tanh(jnp.dot(cls, w_ref[W_POOL:W_POOL + HID, 0:HID],
                                  preferred_element_type=f32)
                          + b_ref[B_POOL:B_POOL + 1, 0:HID])
        out_ref[Mn:Mn + Bn, :] = pooled

    return kernel


# ---------------- parameter init (deterministic, matches _init_weights) ----------------
def init_params(key):
    def normal(k, shape):
        return jax.random.normal(k, shape, jnp.float32) * INIT_RANGE

    ks = jax.random.split(key, 12)
    wq = normal(ks[4], (HID, HID))
    wk = normal(ks[5], (HID, HID))
    wv = normal(ks[6], (HID, HID))
    return {
        # embeddings (embedding_size = EMB)
        "word_emb": normal(ks[0], (VOCAB, EMB)),
        "pos_emb": normal(ks[1], (MAXPOS, EMB)),
        "type_emb": normal(ks[2], (TYPEVOC, EMB)),
        "emb_ln_g": jnp.ones((EMB,), jnp.float32),
        "emb_ln_b": jnp.zeros((EMB,), jnp.float32),
        # embedding_hidden_mapping_in
        "map_w": normal(ks[3], (EMB, HID)),
        "map_b": jnp.zeros((HID,), jnp.float32),
        # shared ALBERT layer (fused QKV weight, packed host-side)
        "wqkv": jnp.concatenate([wq, wk, wv], axis=1),          # (HID, 3*HID)
        "bqkv": jnp.zeros((3 * HID,), jnp.float32),
        "wo": normal(ks[7], (HID, HID)),
        "bo": jnp.zeros((HID,), jnp.float32),
        "ln1_g": jnp.ones((HID,), jnp.float32),
        "ln1_b": jnp.zeros((HID,), jnp.float32),
        "wf": normal(ks[8], (HID, INTER)),
        "bf": jnp.zeros((INTER,), jnp.float32),
        "wfo": normal(ks[9], (INTER, HID)),
        "bfo": jnp.zeros((HID,), jnp.float32),
        "ln2_g": jnp.ones((HID,), jnp.float32),
        "ln2_b": jnp.zeros((HID,), jnp.float32),
        # pooler
        "pool_w": normal(ks[10], (HID, HID)),
        "pool_b": jnp.zeros((HID,), jnp.float32),
    }


def pack_params(p):
    """Pack all parameters into two lane-dense slabs (done once, outside jit)."""
    w = jnp.zeros((W_ROWS, LANES), jnp.float32)

    def put(slab, row, mat):
        r, c = mat.shape
        return slab.at[row:row + r, 0:c].set(mat)

    w = put(w, W_WORD, p["word_emb"])
    w = put(w, W_POS, p["pos_emb"])
    w = put(w, W_TYPE, p["type_emb"])
    w = put(w, W_MAP, p["map_w"])
    w = put(w, W_QKV, p["wqkv"])
    w = put(w, W_WO, p["wo"])
    w = put(w, W_FF, p["wf"])
    w = put(w, W_FFO, p["wfo"])
    w = put(w, W_POOL, p["pool_w"])

    b = jnp.zeros((B_ROWS, LANES), jnp.float32)

    def putv(slab, row, vec):
        return slab.at[row, 0:vec.shape[0]].set(vec)

    b = putv(b, B_ELN_G, p["emb_ln_g"])
    b = putv(b, B_ELN_B, p["emb_ln_b"])
    b = putv(b, B_MAP, p["map_b"])
    b = putv(b, B_QKV, p["bqkv"])
    b = putv(b, B_AO, p["bo"])
    b = putv(b, B_LN1G, p["ln1_g"])
    b = putv(b, B_LN1B, p["ln1_b"])
    b = putv(b, B_FF, p["bf"])
    b = putv(b, B_FFO, p["bfo"])
    b = putv(b, B_LN2G, p["ln2_g"])
    b = putv(b, B_LN2B, p["ln2_b"])
    b = putv(b, B_POOL, p["pool_b"])
    return w, b


# ---------------- forward: one pallas_call for the whole model ----------------
@jax.jit
def albert_forward(w_slab, b_slab, input_ids, attention_mask=None, token_type_ids=None):
    Bn, Sn = input_ids.shape
    Mn = Bn * Sn
    if attention_mask is None:
        attention_mask = jnp.ones((Bn, Sn), jnp.float32)
    if token_type_ids is None:
        token_type_ids = jnp.zeros((Bn, Sn), jnp.int32)

    # pack (ids | token_type) into one int slab -> a single integer input DMA
    idt = jnp.stack([input_ids.reshape(-1).astype(jnp.int32),
                     token_type_ids.reshape(-1).astype(jnp.int32)], axis=1)   # (M, 2)
    mask = attention_mask.astype(jnp.float32)

    full = lambda shape: pl.BlockSpec(shape, lambda i: (0, 0))

    out = pl.pallas_call(
        _make_albert_kernel(Bn, Sn),
        out_shape=jax.ShapeDtypeStruct((Mn + Bn, HID), jnp.float32),
        grid=(1,),
        in_specs=[full((Mn, 2)), full((Bn, Sn)),
                  full((W_ROWS, LANES)), full((B_ROWS, LANES))],
        out_specs=full((Mn + Bn, HID)),
    )(idt, mask, w_slab, b_slab)

    seq = out[:Mn].reshape(Bn, Sn, HID)
    pooled = out[Mn:]
    return seq, pooled


if __name__ == "__main__":
    key = jax.random.PRNGKey(0)
    pkey, dkey = jax.random.split(key)
    params = init_params(pkey)
    w_slab, b_slab = pack_params(params)          # packed once, reused every call

    input_ids = jax.random.randint(dkey, (B, S), 1, VOCAB, dtype=jnp.int32)

    seq_out, pooled_out = albert_forward(w_slab, b_slab, input_ids)
    jax.block_until_ready((seq_out, pooled_out))

    assert seq_out.shape == (B, S, HID)
    assert pooled_out.shape == (B, HID)
    assert bool(jnp.all(jnp.isfinite(seq_out))) and bool(jnp.all(jnp.isfinite(pooled_out)))
    print("KERNEL_OK")
</pallas_src>

<mosaic_0001>
module attributes {stable_mosaic.version = 11 : i64} {
  func.func @kernel(%arg0: i32, %arg1: memref<16x2xi32, #tpu.memory_space<vmem>>, %arg2: memref<2x8xf32, #tpu.memory_space<vmem>>, %arg3: memref<312x128xf32, #tpu.memory_space<vmem>>, %arg4: memref<16x128xf32, #tpu.memory_space<vmem>>, %arg5: memref<18x32xf32, #tpu.memory_space<vmem>>) attributes {dimension_semantics = [#tpu.dimension_semantics<arbitrary>], iteration_bounds = array<i64: 1>, scalar_prefetch = 0 : i64, scratch_operands = 0 : i64, tpu.core_type = #tpu.core_type<tc>, window_params = [{pipeline_mode = #tpu.pipeline_mode<synchronous>, transform_indices = @transform_0, window_bounds = array<i64: 16, 2>}, {pipeline_mode = #tpu.pipeline_mode<synchronous>, transform_indices = @transform_1, window_bounds = array<i64: 2, 8>}, {pipeline_mode = #tpu.pipeline_mode<synchronous>, transform_indices = @transform_2, window_bounds = array<i64: 312, 128>}, {pipeline_mode = #tpu.pipeline_mode<synchronous>, transform_indices = @transform_3, window_bounds = array<i64: 16, 128>}, {pipeline_mode = #tpu.pipeline_mode<synchronous>, transform_indices = @transform_4, window_bounds = array<i64: 18, 32>}]} {
    %c0 = arith.constant 0 : index
    %c0_0 = arith.constant 0 : index
    %0 = vector.load %arg1[%c0, %c0_0] : memref<16x2xi32, #tpu.memory_space<vmem>>, vector<16x1xi32>
    %c0_1 = arith.constant 0 : index
    %c1 = arith.constant 1 : index
    %1 = vector.load %arg1[%c0_1, %c1] : memref<16x2xi32, #tpu.memory_space<vmem>>, vector<16x1xi32>
    %2 = tpu.iota {dimensions = array<i32: 1>} : vector<16x64xi32>
    %3 = vector.broadcast %0 : vector<16x1xi32> to vector<16x64xi32>
    %4 = arith.cmpi eq, %2, %3 : vector<16x64xi32>
    %5 = arith.extui %4 : vector<16x64xi1> to vector<16x64xi32>
    %6 = arith.sitofp %5 : vector<16x64xi32> to vector<16x64xf32>
    %c0_2 = arith.constant 0 : index
    %c0_3 = arith.constant 0 : index
    %7 = vector.load %arg3[%c0_2, %c0_3] : memref<312x128xf32, #tpu.memory_space<vmem>>, vector<64x32xf32>
    %cst = arith.constant dense<0.000000e+00> : vector<16x32xf32>
    %8 = tpu.matmul %6, %7, %cst {dimension_numbers = #tpu.dot_dimension_numbers<[1], [0], [0], [1], [0, 0, 1, 1], [], []>} : vector<16x64xf32>, vector<64x32xf32>, vector<16x32xf32> -> vector<16x32xf32>
    %9 = tpu.iota {dimensions = array<i32: 1>} : vector<16x2xi32>
    %10 = vector.broadcast %1 : vector<16x1xi32> to vector<16x2xi32>
    %11 = arith.cmpi eq, %9, %10 : vector<16x2xi32>
    %12 = arith.extui %11 : vector<16x2xi1> to vector<16x2xi32>
    %13 = arith.sitofp %12 : vector<16x2xi32> to vector<16x2xf32>
    %c80 = arith.constant 80 : index
    %c0_4 = arith.constant 0 : index
    %14 = vector.load %arg3[%c80, %c0_4] : memref<312x128xf32, #tpu.memory_space<vmem>>, vector<2x32xf32>
    %cst_5 = arith.constant dense<0.000000e+00> : vector<16x32xf32>
    %15 = tpu.matmul %13, %14, %cst_5 {dimension_numbers = #tpu.dot_dimension_numbers<[1], [0], [0], [1], [0, 0, 1, 1], [], []>} : vector<16x2xf32>, vector<2x32xf32>, vector<16x32xf32> -> vector<16x32xf32>
    %c64 = arith.constant 64 : index
    %c0_6 = arith.constant 0 : index
    %16 = vector.load %arg3[%c64, %c0_6] : memref<312x128xf32, #tpu.memory_space<vmem>>, vector<8x32xf32>
    %17 = tpu.concatenate %16, %16 in 0 : vector<8x32xf32>, vector<8x32xf32> -> vector<16x32xf32>
    %18 = arith.addf %8, %17 : vector<16x32xf32>
    %19 = arith.addf %18, %15 : vector<16x32xf32>
    %c0_7 = arith.constant 0 : index
    %c0_8 = arith.constant 0 : index
    %20 = vector.load %arg4[%c0_7, %c0_8] : memref<16x128xf32, #tpu.memory_space<vmem>>, vector<1x32xf32>
    %c1_9 = arith.constant 1 : index
    %c0_10 = arith.constant 0 : index
    %21 = vector.load %arg4[%c1_9, %c0_10] : memref<16x128xf32, #tpu.memory_space<vmem>>, vector<1x32xf32>
    %cst_11 = arith.constant dense<0.000000e+00> : vector<16xf32>
    %22 = vector.multi_reduction <add>, %19, %cst_11 [1] : vector<16x32xf32> to vector<16xf32>
    %23 = vector.shape_cast %22 : vector<16xf32> to vector<16x1xf32>
    %cst_12 = arith.constant 3.200000e+01 : f32
    %24 = vector.broadcast %cst_12 : f32 to vector<16x1xf32>
    %25 = arith.divf %23, %24 : vector<16x1xf32>
    %26 = vector.broadcast %25 : vector<16x1xf32> to vector<16x32xf32>
    %27 = arith.subf %19, %26 : vector<16x32xf32>
    %28 = arith.mulf %27, %27 : vector<16x32xf32>
    %cst_13 = arith.constant dense<0.000000e+00> : vector<16xf32>
    %29 = vector.multi_reduction <add>, %28, %cst_13 [1] : vector<16x32xf32> to vector<16xf32>
    %30 = vector.shape_cast %29 : vector<16xf32> to vector<16x1xf32>
    %cst_14 = arith.constant 3.200000e+01 : f32
    %31 = vector.broadcast %cst_14 : f32 to vector<16x1xf32>
    %32 = arith.divf %30, %31 : vector<16x1xf32>
    %33 = vector.broadcast %25 : vector<16x1xf32> to vector<16x32xf32>
    %34 = arith.subf %19, %33 : vector<16x32xf32>
    %cst_15 = arith.constant 9.99999996E-13 : f32
    %35 = vector.broadcast %cst_15 : f32 to vector<16x1xf32>
    %36 = arith.addf %32, %35 : vector<16x1xf32>
    %37 = math.rsqrt %36 : vector<16x1xf32>
    %38 = vector.broadcast %37 : vector<16x1xf32> to vector<16x32xf32>
    %39 = arith.mulf %34, %38 : vector<16x32xf32>
    %40 = vector.broadcast %20 : vector<1x32xf32> to vector<16x32xf32>
    %41 = arith.mulf %39, %40 : vector<16x32xf32>
    %42 = vector.broadcast %21 : vector<1x32xf32> to vector<16x32xf32>
    %43 = arith.addf %41, %42 : vector<16x32xf32>
    %c88 = arith.constant 88 : index
    %c0_16 = arith.constant 0 : index
    %44 = vector.load %arg3[%c88, %c0_16] : memref<312x128xf32, #tpu.memory_space<vmem>>, vector<32x32xf32>
    %cst_17 = arith.constant dense<0.000000e+00> : vector<16x32xf32>
    %45 = tpu.matmul %43, %44, %cst_17 {dimension_numbers = #tpu.dot_dimension_numbers<[1], [0], [0], [1], [0, 0, 1, 1], [], []>} : vector<16x32xf32>, vector<32x32xf32>, vector<16x32xf32> -> vector<16x32xf32>
    %c2 = arith.constant 2 : index
    %c0_18 = arith.constant 0 : index
    %46 = vector.load %arg4[%c2, %c0_18] : memref<16x128xf32, #tpu.memory_space<vmem>>, vector<1x32xf32>
    %47 = vector.broadcast %46 : vector<1x32xf32> to vector<16x32xf32>
    %48 = arith.addf %45, %47 : vector<16x32xf32>
    %c120 = arith.constant 120 : index
    %c0_19 = arith.constant 0 : index
    %49 = vector.load %arg3[%c120, %c0_19] : memref<312x128xf32, #tpu.memory_space<vmem>>, vector<32x96xf32>
    %c152 = arith.constant 152 : index
    %c0_20 = arith.constant 0 : index
    %50 = vector.load %arg3[%c152, %c0_20] : memref<312x128xf32, #tpu.memory_space<vmem>>, vector<32x32xf32>
    %c184 = arith.constant 184 : index
    %c0_21 = arith.constant 0 : index
    %51 = vector.load %arg3[%c184, %c0_21] : memref<312x128xf32, #tpu.memory_space<vmem>>, vector<32x64xf32>
    %c216 = arith.constant 216 : index
    %c0_22 = arith.constant 0 : index
    %52 = vector.load %arg3[%c216, %c0_22] : memref<312x128xf32, #tpu.memory_space<vmem>>, vector<64x32xf32>
    %c3 = arith.constant 3 : index
    %c0_23 = arith.constant 0 : index
    %53 = vector.load %arg4[%c3, %c0_23] : memref<16x128xf32, #tpu.memory_space<vmem>>, vector<1x96xf32>
    %54 = vector.shape_cast %53 : vector<1x96xf32> to vector<1x96xf32>
    %55 = vector.broadcast %54 : vector<1x96xf32> to vector<16x96xf32>
    %c4 = arith.constant 4 : index
    %c0_24 = arith.constant 0 : index
    %56 = vector.load %arg4[%c4, %c0_24] : memref<16x128xf32, #tpu.memory_space<vmem>>, vector<1x32xf32>
    %57 = vector.shape_cast %56 : vector<1x32xf32> to vector<1x32xf32>
    %58 = vector.broadcast %57 : vector<1x32xf32> to vector<16x32xf32>
    %c5 = arith.constant 5 : index
    %c0_25 = arith.constant 0 : index
    %59 = vector.load %arg4[%c5, %c0_25] : memref<16x128xf32, #tpu.memory_space<vmem>>, vector<1x32xf32>
    %60 = vector.shape_cast %59 : vector<1x32xf32> to vector<1x32xf32>
    %61 = vector.broadcast %60 : vector<1x32xf32> to vector<16x32xf32>
    %c6 = arith.constant 6 : index
    %c0_26 = arith.constant 0 : index
    %62 = vector.load %arg4[%c6, %c0_26] : memref<16x128xf32, #tpu.memory_space<vmem>>, vector<1x32xf32>
    %63 = vector.shape_cast %62 : vector<1x32xf32> to vector<1x32xf32>
    %64 = vector.broadcast %63 : vector<1x32xf32> to vector<16x32xf32>
    %c7 = arith.constant 7 : index
    %c0_27 = arith.constant 0 : index
    %65 = vector.load %arg4[%c7, %c0_27] : memref<16x128xf32, #tpu.memory_space<vmem>>, vector<1x64xf32>
    %66 = vector.shape_cast %65 : vector<1x64xf32> to vector<1x64xf32>
    %67 = vector.broadcast %66 : vector<1x64xf32> to vector<16x64xf32>
    %c8 = arith.constant 8 : index
    %c0_28 = arith.constant 0 : index
    %68 = vector.load %arg4[%c8, %c0_28] : memref<16x128xf32, #tpu.memory_space<vmem>>, vector<1x32xf32>
    %69 = vector.shape_cast %68 : vector<1x32xf32> to vector<1x32xf32>
    %70 = vector.broadcast %69 : vector<1x32xf32> to vector<16x32xf32>
    %c9 = arith.constant 9 : index
    %c0_29 = arith.constant 0 : index
    %71 = vector.load %arg4[%c9, %c0_29] : memref<16x128xf32, #tpu.memory_space<vmem>>, vector<1x32xf32>
    %72 = vector.shape_cast %71 : vector<1x32xf32> to vector<1x32xf32>
    %73 = vector.broadcast %72 : vector<1x32xf32> to vector<16x32xf32>
    %c10 = arith.constant 10 : index
    %c0_30 = arith.constant 0 : index
    %74 = vector.load %arg4[%c10, %c0_30] : memref<16x128xf32, #tpu.memory_space<vmem>>, vector<1x32xf32>
    %75 = vector.shape_cast %74 : vector<1x32xf32> to vector<1x32xf32>
    %76 = vector.broadcast %75 : vector<1x32xf32> to vector<16x32xf32>
    %c0_31 = arith.constant 0 : index
    %c0_32 = arith.constant 0 : index
    %77 = vector.load %arg2[%c0_31, %c0_32] : memref<2x8xf32, #tpu.memory_space<vmem>>, vector<2x8xf32>
    %cst_33 = arith.constant 1.000000e+00 : f32
    %78 = vector.broadcast %cst_33 : f32 to vector<2x8xf32>
    %79 = arith.subf %78, %77 : vector<2x8xf32>
    %cst_34 = arith.constant -1.000000e+04 : f32
    %80 = vector.broadcast %cst_34 : f32 to vector<2x8xf32>
    %81 = arith.mulf %79, %80 : vector<2x8xf32>
    %82 = vector.shape_cast %81 : vector<2x8xf32> to vector<2x1x8xf32>
    %83 = tpu.concatenate %82, %82, %82, %82 in 0 : vector<2x1x8xf32>, vector<2x1x8xf32>, vector<2x1x8xf32>, vector<2x1x8xf32> -> vector<8x1x8xf32>
    %cst_35 = arith.constant dense<0.000000e+00> : vector<16x96xf32>
    %84 = tpu.matmul %48, %49, %cst_35 {dimension_numbers = #tpu.dot_dimension_numbers<[1], [0], [0], [1], [0, 0, 1, 1], [], []>} : vector<16x32xf32>, vector<32x96xf32>, vector<16x96xf32> -> vector<16x96xf32>
    %85 = arith.addf %84, %55 : vector<16x96xf32>
    %86 = vector.extract_strided_slice %85 {offsets = [0, 0], sizes = [16, 32], strides = [1, 1]} : vector<16x96xf32> to vector<16x32xf32>
    %87 = vector.shape_cast %86 : vector<16x32xf32> to vector<16x4x8xf32>
    %88 = tpu.transpose %87, [1, 0, 2] : vector<16x4x8xf32> -> vector<4x16x8xf32>
    %89 = vector.shape_cast %88 : vector<4x16x8xf32> to vector<8x8x8xf32>
    %90 = vector.extract_strided_slice %85 {offsets = [0, 32], sizes = [16, 32], strides = [1, 1]} : vector<16x96xf32> to vector<16x32xf32>
    %91 = vector.shape_cast %90 : vector<16x32xf32> to vector<16x4x8xf32>
    %92 = tpu.transpose %91, [1, 0, 2] : vector<16x4x8xf32> -> vector<4x16x8xf32>
    %93 = vector.shape_cast %92 : vector<4x16x8xf32> to vector<8x8x8xf32>
    %94 = vector.extract_strided_slice %85 {offsets = [0, 64], sizes = [16, 32], strides = [1, 1]} : vector<16x96xf32> to vector<16x32xf32>
    %95 = vector.shape_cast %94 : vector<16x32xf32> to vector<16x4x8xf32>
    %96 = tpu.transpose %95, [1, 0, 2] : vector<16x4x8xf32> -> vector<4x16x8xf32>
    %97 = vector.shape_cast %96 : vector<4x16x8xf32> to vector<8x8x8xf32>
    "tpu.trace_start"() <{level = 10 : i32, message = "gqd,gkd->gqk"}> : () -> ()
    %cst_36 = arith.constant dense<0.000000e+00> : vector<8x8x8xf32>
    %98 = tpu.matmul %89, %93, %cst_36 {dimension_numbers = #tpu.dot_dimension_numbers<[2], [2], [1], [1], [0, 0, 0, 1, 1, 1], [0], [0]>} : vector<8x8x8xf32>, vector<8x8x8xf32>, vector<8x8x8xf32> -> vector<8x8x8xf32>
    "tpu.trace_stop"() : () -> ()
    %cst_37 = arith.constant 0.353553385 : f32
    %99 = vector.broadcast %cst_37 : f32 to vector<8x8x8xf32>
    %100 = arith.mulf %98, %99 : vector<8x8x8xf32>
    %101 = vector.broadcast %83 : vector<8x1x8xf32> to vector<8x8x8xf32>
    %102 = arith.addf %100, %101 : vector<8x8x8xf32>
    %cst_38 = arith.constant dense<0xFF800000> : vector<8x8xf32>
    %103 = vector.multi_reduction <maximumf>, %102, %cst_38 [2] : vector<8x8x8xf32> to vector<8x8xf32>
    %104 = vector.shape_cast %103 : vector<8x8xf32> to vector<8x8x1xf32>
    %105 = vector.broadcast %104 : vector<8x8x1xf32> to vector<8x8x8xf32>
    %106 = arith.subf %102, %105 : vector<8x8x8xf32>
    %107 = math.exp %106 : vector<8x8x8xf32>
    %cst_39 = arith.constant dense<0.000000e+00> : vector<8x8xf32>
    %108 = vector.multi_reduction <add>, %107, %cst_39 [2] : vector<8x8x8xf32> to vector<8x8xf32>
    %109 = vector.shape_cast %108 : vector<8x8xf32> to vector<8x8x1xf32>
    %110 = vector.broadcast %109 : vector<8x8x1xf32> to vector<8x8x8xf32>
    %111 = arith.divf %107, %110 : vector<8x8x8xf32>
    "tpu.trace_start"() <{level = 10 : i32, message = "gqk,gkd->gqd"}> : () -> ()
    %cst_40 = arith.constant dense<0.000000e+00> : vector<8x8x8xf32>
    %112 = tpu.matmul %111, %97, %cst_40 {dimension_numbers = #tpu.dot_dimension_numbers<[2], [1], [1], [2], [0, 0, 0, 1, 1, 2], [0], [0]>} : vector<8x8x8xf32>, vector<8x8x8xf32>, vector<8x8x8xf32> -> vector<8x8x8xf32>
    "tpu.trace_stop"() : () -> ()
    %113 = vector.shape_cast %112 : vector<8x8x8xf32> to vector<4x16x8xf32>
    %114 = tpu.transpose %113, [1, 0, 2] : vector<4x16x8xf32> -> vector<16x4x8xf32>
    %115 = vector.shape_cast %114 : vector<16x4x8xf32> to vector<16x32xf32>
    %cst_41 = arith.constant dense<0.000000e+00> : vector<16x32xf32>
    %116 = tpu.matmul %115, %50, %cst_41 {dimension_numbers = #tpu.dot_dimension_numbers<[1], [0], [0], [1], [0, 0, 1, 1], [], []>} : vector<16x32xf32>, vector<32x32xf32>, vector<16x32xf32> -> vector<16x32xf32>
    %117 = arith.addf %116, %58 : vector<16x32xf32>
    %118 = arith.addf %48, %117 : vector<16x32xf32>
    %cst_42 = arith.constant dense<0.000000e+00> : vector<16xf32>
    %119 = vector.multi_reduction <add>, %118, %cst_42 [1] : vector<16x32xf32> to vector<16xf32>
    %120 = vector.shape_cast %119 : vector<16xf32> to vector<16x1xf32>
    %cst_43 = arith.constant 3.200000e+01 : f32
    %121 = vector.broadcast %cst_43 : f32 to vector<16x1xf32>
    %122 = arith.divf %120, %121 : vector<16x1xf32>
    %123 = vector.broadcast %122 : vector<16x1xf32> to vector<16x32xf32>
    %124 = arith.subf %118, %123 : vector<16x32xf32>
    %125 = arith.mulf %124, %124 : vector<16x32xf32>
    %cst_44 = arith.constant dense<0.000000e+00> : vector<16xf32>
    %126 = vector.multi_reduction <add>, %125, %cst_44 [1] : vector<16x32xf32> to vector<16xf32>
    %127 = vector.shape_cast %126 : vector<16xf32> to vector<16x1xf32>
    %cst_45 = arith.constant 3.200000e+01 : f32
    %128 = vector.broadcast %cst_45 : f32 to vector<16x1xf32>
    %129 = arith.divf %127, %128 : vector<16x1xf32>
    %130 = vector.broadcast %122 : vector<16x1xf32> to vector<16x32xf32>
    %131 = arith.subf %118, %130 : vector<16x32xf32>
    %cst_46 = arith.constant 9.99999996E-13 : f32
    %132 = vector.broadcast %cst_46 : f32 to vector<16x1xf32>
    %133 = arith.addf %129, %132 : vector<16x1xf32>
    %134 = math.rsqrt %133 : vector<16x1xf32>
    %135 = vector.broadcast %134 : vector<16x1xf32> to vector<16x32xf32>
    %136 = arith.mulf %131, %135 : vector<16x32xf32>
    %137 = arith.mulf %136, %61 : vector<16x32xf32>
    %138 = arith.addf %137, %64 : vector<16x32xf32>
    %cst_47 = arith.constant dense<0.000000e+00> : vector<16x64xf32>
    %139 = tpu.matmul %138, %51, %cst_47 {dimension_numbers = #tpu.dot_dimension_numbers<[1], [0], [0], [1], [0, 0, 1, 1], [], []>} : vector<16x32xf32>, vector<32x64xf32>, vector<16x64xf32> -> vector<16x64xf32>
    %140 = arith.addf %139, %67 : vector<16x64xf32>
    %cst_48 = arith.constant 5.000000e-01 : f32
    %141 = vector.broadcast %cst_48 : f32 to vector<16x64xf32>
    %142 = arith.mulf %141, %140 : vector<16x64xf32>
    %cst_49 = arith.constant 4.471500e-02 : f32
    %143 = vector.broadcast %cst_49 : f32 to vector<16x64xf32>
    %144 = arith.mulf %143, %140 : vector<16x64xf32>
    %145 = arith.mulf %144, %140 : vector<16x64xf32>
    %146 = arith.mulf %145, %140 : vector<16x64xf32>
    %147 = arith.addf %140, %146 : vector<16x64xf32>
    %cst_50 = arith.constant 0.797884583 : f32
    %148 = vector.broadcast %cst_50 : f32 to vector<16x64xf32>
    %149 = arith.mulf %148, %147 : vector<16x64xf32>
    %150 = math.tanh %149 : vector<16x64xf32>
    %cst_51 = arith.constant 1.000000e+00 : f32
    %151 = vector.broadcast %cst_51 : f32 to vector<16x64xf32>
    %152 = arith.addf %151, %150 : vector<16x64xf32>
    %153 = arith.mulf %142, %152 : vector<16x64xf32>
    %cst_52 = arith.constant dense<0.000000e+00> : vector<16x32xf32>
    %154 = tpu.matmul %153, %52, %cst_52 {dimension_numbers = #tpu.dot_dimension_numbers<[1], [0], [0], [1], [0, 0, 1, 1], [], []>} : vector<16x64xf32>, vector<64x32xf32>, vector<16x32xf32> -> vector<16x32xf32>
    %155 = arith.addf %154, %70 : vector<16x32xf32>
    %156 = arith.addf %155, %138 : vector<16x32xf32>
    %cst_53 = arith.constant dense<0.000000e+00> : vector<16xf32>
    %157 = vector.multi_reduction <add>, %156, %cst_53 [1] : vector<16x32xf32> to vector<16xf32>
    %158 = vector.shape_cast %157 : vector<16xf32> to vector<16x1xf32>
    %cst_54 = arith.constant 3.200000e+01 : f32
    %159 = vector.broadcast %cst_54 : f32 to vector<16x1xf32>
    %160 = arith.divf %158, %159 : vector<16x1xf32>
    %161 = vector.broadcast %160 : vector<16x1xf32> to vector<16x32xf32>
    %162 = arith.subf %156, %161 : vector<16x32xf32>
    %163 = arith.mulf %162, %162 : vector<16x32xf32>
    %cst_55 = arith.constant dense<0.000000e+00> : vector<16xf32>
    %164 = vector.multi_reduction <add>, %163, %cst_55 [1] : vector<16x32xf32> to vector<16xf32>
    %165 = vector.shape_cast %164 : vector<16xf32> to vector<16x1xf32>
    %cst_56 = arith.constant 3.200000e+01 : f32
    %166 = vector.broadcast %cst_56 : f32 to vector<16x1xf32>
    %167 = arith.divf %165, %166 : vector<16x1xf32>
    %168 = vector.broadcast %160 : vector<16x1xf32> to vector<16x32xf32>
    %169 = arith.subf %156, %168 : vector<16x32xf32>
    %cst_57 = arith.constant 9.99999996E-13 : f32
    %170 = vector.broadcast %cst_57 : f32 to vector<16x1xf32>
    %171 = arith.addf %167, %170 : vector<16x1xf32>
    %172 = math.rsqrt %171 : vector<16x1xf32>
    %173 = vector.broadcast %172 : vector<16x1xf32> to vector<16x32xf32>
    %174 = arith.mulf %169, %173 : vector<16x32xf32>
    %175 = arith.mulf %174, %73 : vector<16x32xf32>
    %176 = arith.addf %175, %76 : vector<16x32xf32>
    %cst_58 = arith.constant dense<0.000000e+00> : vector<16x96xf32>
    %177 = tpu.matmul %176, %49, %cst_58 {dimension_numbers = #tpu.dot_dimension_numbers<[1], [0], [0], [1], [0, 0, 1, 1], [], []>} : vector<16x32xf32>, vector<32x96xf32>, vector<16x96xf32> -> vector<16x96xf32>
    %178 = arith.addf %177, %55 : vector<16x96xf32>
    %179 = vector.extract_strided_slice %178 {offsets = [0, 0], sizes = [16, 32], strides = [1, 1]} : vector<16x96xf32> to vector<16x32xf32>
    %180 = vector.shape_cast %179 : vector<16x32xf32> to vector<16x4x8xf32>
    %181 = tpu.transpose %180, [1, 0, 2] : vector<16x4x8xf32> -> vector<4x16x8xf32>
    %182 = vector.shape_cast %181 : vector<4x16x8xf32> to vector<8x8x8xf32>
    %183 = vector.extract_strided_slice %178 {offsets = [0, 32], sizes = [16, 32], strides = [1, 1]} : vector<16x96xf32> to vector<16x32xf32>
    %184 = vector.shape_cast %183 : vector<16x32xf32> to vector<16x4x8xf32>
    %185 = tpu.transpose %184, [1, 0, 2] : vector<16x4x8xf32> -> vector<4x16x8xf32>
    %186 = vector.shape_cast %185 : vector<4x16x8xf32> to vector<8x8x8xf32>
    %187 = vector.extract_strided_slice %178 {offsets = [0, 64], sizes = [16, 32], strides = [1, 1]} : vector<16x96xf32> to vector<16x32xf32>
    %188 = vector.shape_cast %187 : vector<16x32xf32> to vector<16x4x8xf32>
    %189 = tpu.transpose %188, [1, 0, 2] : vector<16x4x8xf32> -> vector<4x16x8xf32>
    %190 = vector.shape_cast %189 : vector<4x16x8xf32> to vector<8x8x8xf32>
    "tpu.trace_start"() <{level = 10 : i32, message = "gqd,gkd->gqk"}> : () -> ()
    %cst_59 = arith.constant dense<0.000000e+00> : vector<8x8x8xf32>
    %191 = tpu.matmul %182, %186, %cst_59 {dimension_numbers = #tpu.dot_dimension_numbers<[2], [2], [1], [1], [0, 0, 0, 1, 1, 1], [0], [0]>} : vector<8x8x8xf32>, vector<8x8x8xf32>, vector<8x8x8xf32> -> vector<8x8x8xf32>
    "tpu.trace_stop"() : () -> ()
    %cst_60 = arith.constant 0.353553385 : f32
    %192 = vector.broadcast %cst_60 : f32 to vector<8x8x8xf32>
    %193 = arith.mulf %191, %192 : vector<8x8x8xf32>
    %194 = vector.broadcast %83 : vector<8x1x8xf32> to vector<8x8x8xf32>
    %195 = arith.addf %193, %194 : vector<8x8x8xf32>
    %cst_61 = arith.constant dense<0xFF800000> : vector<8x8xf32>
    %196 = vector.multi_reduction <maximumf>, %195, %cst_61 [2] : vector<8x8x8xf32> to vector<8x8xf32>
    %197 = vector.shape_cast %196 : vector<8x8xf32> to vector<8x8x1xf32>
    %198 = vector.broadcast %197 : vector<8x8x1xf32> to vector<8x8x8xf32>
    %199 = arith.subf %195, %198 : vector<8x8x8xf32>
    %200 = math.exp %199 : vector<8x8x8xf32>
    %cst_62 = arith.constant dense<0.000000e+00> : vector<8x8xf32>
    %201 = vector.multi_reduction <add>, %200, %cst_62 [2] : vector<8x8x8xf32> to vector<8x8xf32>
    %202 = vector.shape_cast %201 : vector<8x8xf32> to vector<8x8x1xf32>
    %203 = vector.broadcast %202 : vector<8x8x1xf32> to vector<8x8x8xf32>
    %204 = arith.divf %200, %203 : vector<8x8x8xf32>
    "tpu.trace_start"() <{level = 10 : i32, message = "gqk,gkd->gqd"}> : () -> ()
    %cst_63 = arith.constant dense<0.000000e+00> : vector<8x8x8xf32>
    %205 = tpu.matmul %204, %190, %cst_63 {dimension_numbers = #tpu.dot_dimension_numbers<[2], [1], [1], [2], [0, 0, 0, 1, 1, 2], [0], [0]>} : vector<8x8x8xf32>, vector<8x8x8xf32>, vector<8x8x8xf32> -> vector<8x8x8xf32>
    "tpu.trace_stop"() : () -> ()
    %206 = vector.shape_cast %205 : vector<8x8x8xf32> to vector<4x16x8xf32>
    %207 = tpu.transpose %206, [1, 0, 2] : vector<4x16x8xf32> -> vector<16x4x8xf32>
    %208 = vector.shape_cast %207 : vector<16x4x8xf32> to vector<16x32xf32>
    %cst_64 = arith.constant dense<0.000000e+00> : vector<16x32xf32>
    %209 = tpu.matmul %208, %50, %cst_64 {dimension_numbers = #tpu.dot_dimension_numbers<[1], [0], [0], [1], [0, 0, 1, 1], [], []>} : vector<16x32xf32>, vector<32x32xf32>, vector<16x32xf32> -> vector<16x32xf32>
    %210 = arith.addf %209, %58 : vector<16x32xf32>
    %211 = arith.addf %176, %210 : vector<16x32xf32>
    %cst_65 = arith.constant dense<0.000000e+00> : vector<16xf32>
    %212 = vector.multi_reduction <add>, %211, %cst_65 [1] : vector<16x32xf32> to vector<16xf32>
    %213 = vector.shape_cast %212 : vector<16xf32> to vector<16x1xf32>
    %cst_66 = arith.constant 3.200000e+01 : f32
    %214 = vector.broadcast %cst_66 : f32 to vector<16x1xf32>
    %215 = arith.divf %213, %214 : vector<16x1xf32>
    %216 = vector.broadcast %215 : vector<16x1xf32> to vector<16x32xf32>
    %217 = arith.subf %211, %216 : vector<16x32xf32>
    %218 = arith.mulf %217, %217 : vector<16x32xf32>
    %cst_67 = arith.constant dense<0.000000e+00> : vector<16xf32>
    %219 = vector.multi_reduction <add>, %218, %cst_67 [1] : vector<16x32xf32> to vector<16xf32>
    %220 = vector.shape_cast %219 : vector<16xf32> to vector<16x1xf32>
    %cst_68 = arith.constant 3.200000e+01 : f32
    %221 = vector.broadcast %cst_68 : f32 to vector<16x1xf32>
    %222 = arith.divf %220, %221 : vector<16x1xf32>
    %223 = vector.broadcast %215 : vector<16x1xf32> to vector<16x32xf32>
    %224 = arith.subf %211, %223 : vector<16x32xf32>
    %cst_69 = arith.constant 9.99999996E-13 : f32
    %225 = vector.broadcast %cst_69 : f32 to vector<16x1xf32>
    %226 = arith.addf %222, %225 : vector<16x1xf32>
    %227 = math.rsqrt %226 : vector<16x1xf32>
    %228 = vector.broadcast %227 : vector<16x1xf32> to vector<16x32xf32>
    %229 = arith.mulf %224, %228 : vector<16x32xf32>
    %230 = arith.mulf %229, %61 : vector<16x32xf32>
    %231 = arith.addf %230, %64 : vector<16x32xf32>
    %cst_70 = arith.constant dense<0.000000e+00> : vector<16x64xf32>
    %232 = tpu.matmul %231, %51, %cst_70 {dimension_numbers = #tpu.dot_dimension_numbers<[1], [0], [0], [1], [0, 0, 1, 1], [], []>} : vector<16x32xf32>, vector<32x64xf32>, vector<16x64xf32> -> vector<16x64xf32>
    %233 = arith.addf %232, %67 : vector<16x64xf32>
    %cst_71 = arith.constant 5.000000e-01 : f32
    %234 = vector.broadcast %cst_71 : f32 to vector<16x64xf32>
    %235 = arith.mulf %234, %233 : vector<16x64xf32>
    %cst_72 = arith.constant 4.471500e-02 : f32
    %236 = vector.broadcast %cst_72 : f32 to vector<16x64xf32>
    %237 = arith.mulf %236, %233 : vector<16x64xf32>
    %238 = arith.mulf %237, %233 : vector<16x64xf32>
    %239 = arith.mulf %238, %233 : vector<16x64xf32>
    %240 = arith.addf %233, %239 : vector<16x64xf32>
    %cst_73 = arith.constant 0.797884583 : f32
    %241 = vector.broadcast %cst_73 : f32 to vector<16x64xf32>
    %242 = arith.mulf %241, %240 : vector<16x64xf32>
    %243 = math.tanh %242 : vector<16x64xf32>
    %cst_74 = arith.constant 1.000000e+00 : f32
    %244 = vector.broadcast %cst_74 : f32 to vector<16x64xf32>
    %245 = arith.addf %244, %243 : vector<16x64xf32>
    %246 = arith.mulf %235, %245 : vector<16x64xf32>
    %cst_75 = arith.constant dense<0.000000e+00> : vector<16x32xf32>
    %247 = tpu.matmul %246, %52, %cst_75 {dimension_numbers = #tpu.dot_dimension_numbers<[1], [0], [0], [1], [0, 0, 1, 1], [], []>} : vector<16x64xf32>, vector<64x32xf32>, vector<16x32xf32> -> vector<16x32xf32>
    %248 = arith.addf %247, %70 : vector<16x32xf32>
    %249 = arith.addf %248, %231 : vector<16x32xf32>
    %cst_76 = arith.constant dense<0.000000e+00> : vector<16xf32>
    %250 = vector.multi_reduction <add>, %249, %cst_76 [1] : vector<16x32xf32> to vector<16xf32>
    %251 = vector.shape_cast %250 : vector<16xf32> to vector<16x1xf32>
    %cst_77 = arith.constant 3.200000e+01 : f32
    %252 = vector.broadcast %cst_77 : f32 to vector<16x1xf32>
    %253 = arith.divf %251, %252 : vector<16x1xf32>
    %254 = vector.broadcast %253 : vector<16x1xf32> to vector<16x32xf32>
    %255 = arith.subf %249, %254 : vector<16x32xf32>
    %256 = arith.mulf %255, %255 : vector<16x32xf32>
    %cst_78 = arith.constant dense<0.000000e+00> : vector<16xf32>
    %257 = vector.multi_reduction <add>, %256, %cst_78 [1] : vector<16x32xf32> to vector<16xf32>
    %258 = vector.shape_cast %257 : vector<16xf32> to vector<16x1xf32>
    %cst_79 = arith.constant 3.200000e+01 : f32
    %259 = vector.broadcast %cst_79 : f32 to vector<16x1xf32>
    %260 = arith.divf %258, %259 : vector<16x1xf32>
    %261 = vector.broadcast %253 : vector<16x1xf32> to vector<16x32xf32>
    %262 = arith.subf %249, %261 : vector<16x32xf32>
    %cst_80 = arith.constant 9.99999996E-13 : f32
    %263 = vector.broadcast %cst_80 : f32 to vector<16x1xf32>
    %264 = arith.addf %260, %263 : vector<16x1xf32>
    %265 = math.rsqrt %264 : vector<16x1xf32>
    %266 = vector.broadcast %265 : vector<16x1xf32> to vector<16x32xf32>
    %267 = arith.mulf %262, %266 : vector<16x32xf32>
    %268 = arith.mulf %267, %73 : vector<16x32xf32>
    %269 = arith.addf %268, %76 : vector<16x32xf32>
    %c0_81 = arith.constant 0 : index
    %c0_82 = arith.constant 0 : index
    %270 = vector.load %arg5[%c0_81, %c0_82] : memref<18x32xf32, #tpu.memory_space<vmem>>, vector<16x32xf32>
    tpu.vector_store %arg5[%c0_81, %c0_82], %269 {strides = array<i32>} : memref<18x32xf32, #tpu.memory_space<vmem>>, vector<16x32xf32>,
    %271 = vector.shape_cast %269 : vector<16x32xf32> to vector<2x8x32xf32>
    %272 = vector.extract_strided_slice %271 {offsets = [0, 0, 0], sizes = [2, 1, 32], strides = [1, 1, 1]} : vector<2x8x32xf32> to vector<2x1x32xf32>
    %273 = vector.shape_cast %272 : vector<2x1x32xf32> to vector<2x32xf32>
    %c280 = arith.constant 280 : index
    %c0_83 = arith.constant 0 : index
    %274 = vector.load %arg3[%c280, %c0_83] : memref<312x128xf32, #tpu.memory_space<vmem>>, vector<32x32xf32>
    %cst_84 = arith.constant dense<0.000000e+00> : vector<2x32xf32>
    %275 = tpu.matmul %273, %274, %cst_84 {dimension_numbers = #tpu.dot_dimension_numbers<[1], [0], [0], [1], [0, 0, 1, 1], [], []>} : vector<2x32xf32>, vector<32x32xf32>, vector<2x32xf32> -> vector<2x32xf32>
    %c11 = arith.constant 11 : index
    %c0_85 = arith.constant 0 : index
    %276 = vector.load %arg4[%c11, %c0_85] : memref<16x128xf32, #tpu.memory_space<vmem>>, vector<1x32xf32>
    %277 = vector.broadcast %276 : vector<1x32xf32> to vector<2x32xf32>
    %278 = arith.addf %275, %277 : vector<2x32xf32>
    %279 = math.tanh %278 : vector<2x32xf32>
    %c16 = arith.constant 16 : index
    %c0_86 = arith.constant 0 : index
    %280 = vector.load %arg5[%c16, %c0_86] : memref<18x32xf32, #tpu.memory_space<vmem>>, vector<2x32xf32>
    tpu.vector_store %arg5[%c16, %c0_86], %279 {strides = array<i32>} : memref<18x32xf32, #tpu.memory_space<vmem>>, vector<2x32xf32>,
    return
  }
  func.func @transform_0(%arg0: i32) -> (i32, i32) {
    %c0_i32 = arith.constant 0 : i32
    %c0_i32_0 = arith.constant 0 : i32
    %c0_i32_1 = arith.constant 0 : i32
    return %c0_i32, %c0_i32_0 : i32, i32
  }
  func.func @transform_1(%arg0: i32) -> (i32, i32) {
    %c0_i32 = arith.constant 0 : i32
    %c0_i32_0 = arith.constant 0 : i32
    %c0_i32_1 = arith.constant 0 : i32
    return %c0_i32, %c0_i32_0 : i32, i32
  }
  func.func @transform_2(%arg0: i32) -> (i32, i32) {
    %c0_i32 = arith.constant 0 : i32
    %c0_i32_0 = arith.constant 0 : i32
    %c0_i32_1 = arith.constant 0 : i32
    return %c0_i32, %c0_i32_0 : i32, i32
  }
  func.func @transform_3(%arg0: i32) -> (i32, i32) {
    %c0_i32 = arith.constant 0 : i32
    %c0_i32_0 = arith.constant 0 : i32
    %c0_i32_1 = arith.constant 0 : i32
    return %c0_i32, %c0_i32_0 : i32, i32
  }
  func.func @transform_4(%arg0: i32) -> (i32, i32) {
    %c0_i32 = arith.constant 0 : i32
    %c0_i32_0 = arith.constant 0 : i32
    %c0_i32_1 = arith.constant 0 : i32
    return %c0_i32, %c0_i32_0 : i32, i32
  }
}

</mosaic_0001>

<bundles_post_ra>
// kernel: albert_forward.1
= control target key start
LH: loop header
LB: loop body
LE: loop exit
PB: predicated region body
PF: predicated region fallthrough
CT: control target
= control target key end

     0   :  { %9 = vsyncpa [#allocation3], 0  ;;  %s7080_s15 = smov [#allocation2]   ;;  %s8149_s0 = inlined_call_operand.vmem [shape: s32[16,2], index: 0, kind: input, shape index: {}]   ;;  %s8150_s1 = inlined_call_operand.vmem [shape: f32[2,8], index: 1, kind: input, shape index: {}]   ;;  %s8151_s2 = inlined_call_operand.hbm [shape: f32[312,128], index: 2, kind: input, shape index: {}]   ;;  %s8152_s3 = inlined_call_operand.vmem [shape: f32[16,128], index: 3, kind: input, shape index: {}]   ;;  %s8153_s4 = inlined_call_operand.vmem [shape: f32[18,32], index: 4, kind: output, shape index: {}]  }
   0x1   :  { %s19_s16 = sshll.u32 %s7080_s15, 4  ;;  %s20_s16 = int_to_ptr.vmem [resolvable:$true] %s19_s16 }
   0x2   :  { %s7066_s17 = scalar_lea.vmem %s20_s16, 4992  ;;  %p7071_p1 = scmp.lt.s32.totalorder %s20_s16, %s20_s16 }
   0x3   :  { %p7067_p0 = scmp.ne.s32.totalorder %s20_s16, %s7066_s17  ;;  %p7072_p2 = scmp.lt.s32.totalorder %s7066_s17, %s7066_s17 }
   0x5   :  { %p7073_p3 = por %p7072_p2, %p7071_p1 }
   0x7   :  { %p7074_p4 = pnand %p7073_p3, %p7067_p0 }
   0x9   :  { %7077 = shalt.err (!%p7074_p4)
}
   0xa   :  { %s7081_s18 = smov 128   ;;  %s7082_s19 = smov 8  }
   0xb   :  { %25 = dma.hbm_to_vmem [thread:$0]  %s8151_s2, 4992, %s20_s16, [#allocation3], %s7081_s18, %s7081_s18, %s7082_s19  }
   0xc   :  { %7078 = dma.done.wait [#allocation3], 4992  }
   0xd   :  { %7079 = vsyncadd [#allocation3], 4294962304  ;;  %v7083_v0 = vmov 1   ;;  %v7084_v1 = vmov 0   ;;  %v31_v2 = vld [vmem:[%s8149_s0] sm:$0xff]  ;;  %v54_v3 = vld [vmem:[#allocation2 + $0x38] sm:$0xff]  ;;  %v33_v14 = vlaneseq }
   0xe   :  { %6934 = vset.pattern.permute.xlu1 %v7083_v0  ;;  %6933 = vset.pattern.permute.xlu0 %v7084_v1  ;;  %v53_v4 = vld [vmem:[#allocation2 + $0x30] sm:$0xff]  ;;  %vm75_vm0 = vcmask 1041408   ;;  %v32_v5 = vld [vmem:[%s8149_s0 + $0x8] sm:$0xff]  ;;  %v51_v8 = vld [vmem:[#allocation2 + $0x20] sm:$0xff]  ;;  %v7085_v13 = vmov 0.0   ;;  %vm155_vm1 = vcmask 523264  }
   0xf   :  { %56 = vperm.xlu1 %6934, %v31_v2   ;;  %36 = vperm.xlu0 %6933, %v31_v2   ;;  %v67_v6 = vld [vmem:[#allocation2 + $0x50] sm:$0x3]  ;;  %v52_v7 = vld [vmem:[#allocation2 + $0x28] sm:$0xff]  ;;  %v50_v9 = vld [vmem:[#allocation2 + $0x18] sm:$0xff]  ;;  %v34_v15 = vand.u32 127, %v33_v14  ;;  %vm68_vm2 = vcmask 15360  }
  0x10   :  { %6611 = vmatprep.subr.mxu1 %v54_v3  ;;  %6606 = vmatprep.subr.msk.mxu0 %vm75_vm0, %v67_v6  ;;  %v49_v10 = vld [vmem:[#allocation2 + $0x10] sm:$0xff]  ;;  %v48_v11 = vld [vmem:[#allocation2 + $0x8] sm:$0xff]  ;;  %v47_v12 = vld [vmem:[#allocation2] sm:$0xff]  ;;  %vm241_vm7 = vcmask 261120   ;;  %s7086_s6 = smov 120   ;;  %s7087_s7 = smov 112  }
  0x11   :  { %6612 = vmatpush3.msra.mxu1 %v54_v3  ;;  %6607 = vmatpush3.msk.msra.mxu0 %vm75_vm0, %v67_v6  ;;  %v154_v24 = vld [vmem:[#allocation2 + $0x40] sm:$0xff]  ;;  %v284_v45 = vld [vmem:[#allocation2 + $0x70] sm:$0xff]  ;;  %v283_v46 = vld [vmem:[#allocation2 + $0x68] sm:$0xff]  ;;  %s7088_s8 = smov 104   ;;  %s7089_s9 = smov 96   ;;  %vm7090_vm8 = vmmov 0  }
  0x12   :  { %6613 = vmatprep.subr.mxu1 %v53_v4  ;;  %6630 = vmatprep.subr.mxu0 %v284_v45  ;;  %v282_v47 = vld [vmem:[#allocation2 + $0x60] sm:$0xff]  ;;  %v281_v48 = vld [vmem:[#allocation2 + $0x58] sm:$0xff]  ;;  %v374_v49 = vld [vmem:[#allocation2 + $0x90] sm:$0xff]  ;;  %vm1422_vm9 = vcmask 64512   ;;  %s7095_s12 = smov 16   ;;  %s7096_s13 = smov 24  }
  0x13   :  { %59 = vperm.xlu1 %6934, %v32_v5   ;;  %39 = vperm.xlu0 %6933, %v32_v5   ;;  %v6351_v57 = vld [vmem:[%s8152_s3] ss:$0 sm:$0xff]  ;;  %v6352_v59 = vld [vmem:[%s8152_s3 + $0x1] ss:$0 sm:$0xff]  ;;  %v373_v2 = vld [vmem:[#allocation2 + $0x88] sm:$0xff]  ;;  %vm3027_vm10 = vcmask 130048  }
  0x14   :  { %6614 = vmatpush3.msra.mxu1 %v53_v4  ;;  %v372_v3 = vld [vmem:[#allocation2 + $0x80] sm:$0xff]  ;;  %v371_v4 = vld [vmem:[#allocation2 + $0x78] sm:$0xff]  ;;  %vm3030_vm11 = vcmask 195584   ;;  %vm6260_vm12 = vcmask 1041409   ;;  %vm6335_vm13 = vcmask 254976  }
  0x15   :  { %6615 = vmatprep.subr.mxu1 %v52_v7  ;;  %v6353_v6 = vld [vmem:[%s8152_s3 + $0x2] ss:$0 sm:$0xff] }
  0x16   :  { %6616 = vmatpush3.msra.mxu1 %v52_v7 }
  0x17   :  { %6617 = vmatprep.subr.mxu1 %v51_v8  ;;  %6935 = vset.pattern.permute.xlu0 %v7083_v0 }
  0x18   :  { %6618 = vmatpush3.msra.mxu1 %v51_v8 }
  0x19   :  { %6619 = vmatprep.subr.mxu1 %v50_v9 }
  0x1a   :  { %6620 = vmatpush3.msra.mxu1 %v50_v9 }
  0x1b   :  { %6621 = vmatprep.subr.mxu1 %v49_v10 }
  0x1c   :  { %6622 = vmatpush3.msra.mxu1 %v49_v10  ;;  %v6356_v10 = vld [vmem:[%s8152_s3 + $0x3] ss:$0 sm:$0xff] }
  0x1d   :  { %6623 = vmatprep.subr.mxu1 %v48_v11 }
  0x1e   :  { %6624 = vmatpush3.msra.mxu1 %v48_v11 }
  0x1f   :  { %6625 = vmatprep.subr.mxu1 %v47_v12 }
  0x20   :  { %6626 = vmatpush3.msra.mxu1 %v47_v12 }
  0x21   :  { %6662 = vmatprep.subr.mxu1 %v7085_v13 }
  0x8a   :  { %v57_v16 = vpop.permute.xlu1 %56  ;;  %v37_v17 = vpop.permute.xlu0 %36 }
  0x8b   :  { %vm41_vm3 = vcmp.eq.s32.totalorder %v34_v15, %v37_v17  ;;  %vm61_vm4 = vcmp.eq.s32.totalorder %v34_v15, %v57_v16 }
  0x8c   :  { %v6342_v18 = vsel %vm41_vm3, 1.0, %v7085_v13  ;;  %v6344_v19 = vsel %vm61_vm4, 1.0, %v7085_v13 }
  0x8d   :  { %6627 = vmatprep.mubr.msk.f32.mxu1 %vm155_vm1, %v6342_v18  ;;  %6608 = vmatprep.mubr.msk.f32.mxu0 %vm68_vm2, %v6344_v19 }
  0x8e   :  { %v60_v20 = vpop.permute.xlu1 %59  ;;  %v40_v21 = vpop.permute.xlu0 %39 }
  0x8f   :  { %vm62_vm5 = vcmp.eq.s32.totalorder %v34_v15, %v60_v20  ;;  %vm42_vm6 = vcmp.eq.s32.totalorder %v34_v15, %v40_v21 }
  0x90   :  { %v6345_v22 = vsel %vm62_vm5, 1.0, %v7085_v13  ;;  %v6343_v23 = vsel %vm42_vm6, 1.0, %v7085_v13 }
  0x91   :  { %6609 = vmatmul.mubr.msk.f32.vlgmr.msra.gmra.mxu0 %vm68_vm2, %v6345_v22  ;;  %6628 = vmatmul.mubr.msk.f32.vlgmr.msra.gmra.mxu1 %vm155_vm1, %v6343_v23  ;;  %v7091_v23 = vmov 1983009808  }
  0x92   :  { %6631 = vmatpush3.msra.mxu0 %v284_v45  ;;  %6664 = vmatprep.mubr.msk.f32.mxu1 %vm7090_vm8, %v7085_v13 }
  0x93   :  { %6632 = vmatprep.subr.mxu0 %v283_v46 }
  0x94   :  { %6633 = vmatpush3.msra.mxu0 %v283_v46 }
  0x95   :  { %6634 = vmatprep.subr.mxu0 %v282_v47 }
  0x96   :  { %6635 = vmatpush3.msra.mxu0 %v282_v47 }
  0x97   :  { %6636 = vmatprep.subr.mxu0 %v281_v48 }
  0x98   :  { %6637 = vmatpush3.msra.mxu0 %v281_v48 }
  0x99   :  { %6641 = vmatprep.subr.mxu0 %v374_v49 }
 0x151   :  { %v6610_v25 = vpop.f32.mrf.mxu0  ;;  %v6629_v26 = vpop.f32.mrf.mxu1 }
 0x152   :  { %v234_v27 = vadd.f32 %v6629_v26, %v154_v24 }
 0x153   :  { %v228_v28 = vpop.f32.mrf.mxu1  ;;  %v145_v31 = vpop.f32.mrf.mxu0 }
 0x154   :  { %v229_v29 = vadd.f32 %v228_v28, %v154_v24  ;;  %v238_v30 = vadd.f32 %v6610_v25, %v234_v27  ;;  %v561_v24 = vunpack.c.l.s4 %v7091_v23  ;;  %v7216_v25 = vshrl.u32 %v33_v14, 7 }
 0x155   :  { %v7092_v27 = vmov 1934713408  }
 0x156   :  { %v245_v32 = vsel %vm241_vm7, %v238_v30, 0.0  ;;  %v237_v33 = vadd.f32 %v229_v29, %v145_v31  ;;  %v562_v26 = vunpack.c.0.s8 %v561_v24  ;;  %v593_v28 = vunpack.c.l.s4 %v7092_v27 }
 0x157   :  { %246 = vadd.xlane.f32.xlu1 %v245_v32 }
 0x158   :  { %v242_v34 = vsel %vm241_vm7, %v237_v33, 0.0  ;;  %v7223_v31 = vsub.s32 %v562_v26, %v7216_v25  ;;  %v594_v14 = vunpack.c.0.s8 %v593_v28 }
 0x159   :  { %243 = vadd.xlane.f32.xlu0 %v242_v34 }
 0x1e0   :  { %v247_v35 = vpop.xlane.xlu1 %246 }
 0x1e1   :  { %v250_v36 = vmul.f32 0.03125, %v247_v35 }
 0x1e2   :  { %v244_v37 = vpop.xlane.xlu0 %243 }
 0x1e3   :  { %v249_v38 = vmul.f32 0.03125, %v244_v37  ;;  %v252_v39 = vsub.f32 %v238_v30, %v250_v36 }
 0x1e5   :  { %v251_v40 = vsub.f32 %v237_v33, %v249_v38  ;;  %v254_v43 = vmul.f32 %v252_v39, %v252_v39  ;;  %v7234_v38 = vsub.s32 %v594_v14, %v7216_v25 }
 0x1e7   :  { %v253_v41 = vmul.f32 %v251_v40, %v251_v40  ;;  %v258_v44 = vsel %vm241_vm7, %v254_v43, 0.0 }
 0x1e9   :  { %v255_v42 = vsel %vm241_vm7, %v253_v41, 0.0 }
 0x1ea   :  { %256 = vadd.xlane.f32.xlu0 %v255_v42 }
 0x1ee   :  { %259 = vadd.xlane.f32.xlu0 %v258_v44 }
 0x273   :  { %v257_v50 = vpop.xlane.xlu0 %256 }
 0x274   :  { %v261_v51 = vmul.f32 0.03125, %v257_v50 }
 0x276   :  { %v263_v52 = vadd.f32 1e-12, %v261_v51 }
 0x277   :  { %v260_v53 = vpop.xlane.xlu0 %259 }
 0x278   :  { %6936 = vrsqrt.f32 %v263_v52  ;;  %v262_v54 = vmul.f32 0.03125, %v260_v53 }
 0x27a   :  { %v264_v55 = vadd.f32 1e-12, %v262_v54 }
 0x27c   :  { %6938 = vrsqrt.f32 %v264_v55 }
 0x285   :  { %v6937_v56 = vpop.eup %6936 }
 0x286   :  { %v267_v58 = vmul.f32 %v6937_v56, %v251_v40 }
 0x288   :  { %v273_v60 = vmul.f32 %v6351_v57, %v267_v58 }
 0x289   :  { %v6939_v61 = vpop.eup %6938 }
 0x28a   :  { %v268_v62 = vmul.f32 %v6939_v61, %v252_v39  ;;  %v279_v63 = vadd.f32 %v6352_v59, %v273_v60 }
 0x28c   :  { %v274_v0 = vmul.f32 %v6351_v57, %v268_v62  ;;  %6638 = vmatprep.mubr.msk.f32.mxu0 %vm241_vm7, %v279_v63 }
 0x28e   :  { %v280_v1 = vadd.f32 %v6352_v59, %v274_v0 }
 0x290   :  { %6639 = vmatmul.mubr.msk.f32.vlgmr.msra.gmra.mxu0 %vm241_vm7, %v280_v1 }
 0x291   :  { %6642 = vmatpush3.msra.mxu0 %v374_v49 }
 0x292   :  { %6643 = vmatprep.subr.mxu0 %v373_v2 }
 0x293   :  { %6644 = vmatpush3.msra.mxu0 %v373_v2 }
 0x294   :  { %6645 = vmatprep.subr.mxu0 %v372_v3 }
 0x295   :  { %6646 = vmatpush3.msra.mxu0 %v372_v3 }
 0x296   :  { %6647 = vmatprep.subr.mxu0 %v371_v4 }
 0x297   :  { %6648 = vmatpush3.msra.mxu0 %v371_v4 }
 0x298   :  { %6652 = vmatprep.subr.mxu0 %v7085_v13 }
 0x350   :  { %v6640_v5 = vpop.f32.mrf.mxu0 }
 0x351   :  { %v7158_v9 = vadd.f32 %v6640_v5, %v6353_v6 }
 0x352   :  { %v362_v7 = vpop.f32.mrf.mxu0 }
 0x353   :  { %v7156_v8 = vadd.f32 %v6353_v6, %v362_v7 }
 0x355   :  { %6649 = vmatprep.mubr.msk.f32.mxu0 %vm241_vm7, %v7156_v8 }
 0x356   :  { %6650 = vmatmul.mubr.msk.f32.vlgmr.msra.gmra.mxu0 %vm241_vm7, %v7158_v9 }
 0x357   :  { %6654 = vmatprep.mubr.msk.f32.mxu0 %vm7090_vm8, %v7085_v13 }
 0x416   :  { %v6651_v11 = vpop.f32.mrf.mxu0 }
 0x417   :  { %v7167_v12 = vadd.f32 %v6651_v11, %v6356_v10 }
 0x418   :  { %v529_v15 = vpop.f32.mrf.mxu0 }
 0x419   :  { %v7169_v16 = vadd.f32 %v6356_v10, %v529_v15  ;;  %542 = vrot.lane.b32.xlu1 %v7167_v12, %s7086_s6 }
 0x41b   :  { %546 = vrot.lane.b32.xlu0 %v7169_v16, %s7087_s7 }
 0x41d   :  { %540 = vrot.lane.b32.xlu1 %v7169_v16, %s7086_s6 }
 0x41f   :  { %548 = vrot.lane.b32.xlu0 %v7167_v12, %s7087_s7 }
 0x421   :  { %552 = vrot.lane.b32.xlu1 %v7169_v16, %s7088_s8 }
 0x423   :  { %832 = vrot.lane.b32.xlu0 %v7167_v12, %s7089_s9 }
 0x425   :  { %554 = vrot.lane.b32.xlu1 %v7167_v12, %s7088_s8 }
 0x427   :  { %830 = vrot.lane.b32.xlu0 %v7169_v16, %s7089_s9 }
 0x48b   :  { %v7187_v17 = vpop.permute.xlu1 %542 }
 0x48c   :  { %836 = vrot.lane.b32.xlu1 %v7187_v17, %s7089_s9 }
 0x48d   :  { %v7191_v18 = vpop.permute.xlu0 %546 }
 0x48e   :  { %838 = vrot.lane.b32.xlu0 %v7191_v18, %s7089_s9  ;;  %v558_v32 = vcombine.low %v7169_v16, %v7191_v18  ;;  %v559_v33 = vcombine.high %v7169_v16, %v7191_v18 }
 0x48f   :  { %v7195_v19 = vpop.permute.xlu1 %540 }
 0x490   :  { %834 = vrot.lane.b32.xlu1 %v7195_v19, %s7089_s9  ;;  %v566_v36 = vrot.slane %v558_v32, %v7223_v31  ;;  %v573_v37 = vrot.slane %v559_v33, %v7223_v31 }
 0x491   :  { %v7199_v20 = vpop.permute.xlu0 %548 }
 0x492   :  { %840 = vrot.lane.b32.xlu0 %v7199_v20, %s7089_s9  ;;  %v626_v44 = vcombine.low %v7167_v12, %v7199_v20  ;;  %v627_v51 = vcombine.high %v7167_v12, %v7199_v20 }
 0x493   :  { %v7203_v21 = vpop.permute.xlu1 %552 }
 0x494   :  { %842 = vrot.lane.b32.xlu1 %v7203_v21, %s7089_s9  ;;  %v574_v29 = vcombine.low %v7195_v19, %v7203_v21  ;;  %v575_v30 = vcombine.high %v7195_v19, %v7203_v21  ;;  %v634_v53 = vrot.slane %v626_v44, %v7223_v31  ;;  %v641_v59 = vrot.slane %v627_v51, %v7223_v31 }
 0x495   :  { %v7240_v45 = vpop.permute.xlu0 %832 }
 0x496   :  { %v582_v34 = vrot.slane %v574_v29, %v7223_v31  ;;  %v589_v35 = vrot.slane %v575_v30, %v7223_v31 }
 0x497   :  { %v7207_v22 = vpop.permute.xlu1 %554 }
 0x498   :  { %844 = vrot.lane.b32.xlu1 %v7207_v22, %s7089_s9  ;;  %v590_v39 = vcombine.low %v566_v36, %v582_v34  ;;  %v591_v40 = vcombine.high %v566_v36, %v582_v34  ;;  %v606_v41 = vcombine.low %v573_v37, %v589_v35  ;;  %v607_v42 = vcombine.high %v573_v37, %v589_v35 }
 0x499   :  { %v642_v43 = vcombine.low %v7187_v17, %v7207_v22  ;;  %v643_v46 = vcombine.high %v7187_v17, %v7207_v22  ;;  %v831_v60 = vpop.permute.xlu0 %830 }
 0x49a   :  { %v598_v47 = vrot.slane %v590_v39, %v7234_v38  ;;  %v605_v48 = vrot.slane %v591_v40, %v7234_v38  ;;  %v614_v49 = vrot.slane %v606_v41, %v7234_v38  ;;  %v621_v50 = vrot.slane %v607_v42, %v7234_v38 }
 0x49b   :  { %v650_v52 = vrot.slane %v642_v43, %v7223_v31  ;;  %v657_v54 = vrot.slane %v643_v46, %v7223_v31 }
 0x49c   :  { %v694_v55 = vcombine.low %v598_v47, %v605_v48  ;;  %v6366_v56 = vcombine.high %v598_v47, %v605_v48  ;;  %v710_v57 = vcombine.low %v614_v49, %v621_v50  ;;  %v6367_v58 = vcombine.high %v614_v49, %v621_v50 }
 0x49d   :  { %v658_v61 = vcombine.low %v634_v53, %v650_v52  ;;  %v659_v62 = vcombine.high %v634_v53, %v650_v52  ;;  %v674_v0 = vcombine.low %v641_v59, %v657_v54  ;;  %v675_v1 = vcombine.high %v641_v59, %v657_v54 }
 0x49e   :  { %v7255_v2 = vrot.slane %v694_v55, %v7223_v31  ;;  %v7258_v3 = vrot.slane %v6366_v56, %v7223_v31  ;;  %v7261_v4 = vrot.slane %v710_v57, %v7223_v31  ;;  %v7264_v5 = vrot.slane %v6367_v58, %v7223_v31 }
 0x49f   :  { %v666_v7 = vrot.slane %v658_v61, %v7234_v38  ;;  %v673_v10 = vrot.slane %v659_v62, %v7234_v38  ;;  %v682_v15 = vrot.slane %v674_v0, %v7234_v38  ;;  %v689_v23 = vrot.slane %v675_v1, %v7234_v38 }
 0x4a0   :  { %v726_v24 = vcombine.low %v7255_v2, %v7258_v3  ;;  %v742_v26 = vcombine.low %v7261_v4, %v7264_v5  ;;  %v727_v35 = vcombine.high %v7255_v2, %v7258_v3  ;;  %v743_v36 = vcombine.high %v7261_v4, %v7264_v5 }
 0x4a1   :  { %v762_v29 = vcombine.low %v666_v7, %v673_v10  ;;  %v6368_v30 = vcombine.high %v666_v7, %v673_v10  ;;  %v778_v37 = vcombine.low %v682_v15, %v689_v23  ;;  %v6369_v39 = vcombine.high %v682_v15, %v689_v23 }
 0x4a2   :  { %v7279_v40 = vrot.slane %v726_v24, %v7234_v38  ;;  %v7282_v41 = vrot.slane %v742_v26, %v7234_v38 }
 0x4a3   :  { %v7289_v47 = vrot.slane %v762_v29, %v7223_v31  ;;  %v7292_v48 = vrot.slane %v6368_v30, %v7223_v31  ;;  %v7297_v56 = vrot.slane %v778_v37, %v7223_v31  ;;  %v7300_v57 = vrot.slane %v6369_v39, %v7223_v31 }
 0x4fe   :  { %v837_v63 = vpop.permute.xlu1 %836 }
 0x500   :  { %v839_v6 = vpop.permute.xlu0 %838 }
 0x501   :  { %v854_v27 = vcombine.low %v831_v60, %v839_v6  ;;  %v855_v28 = vcombine.high %v831_v60, %v839_v6 }
 0x502   :  { %v835_v11 = vpop.permute.xlu1 %834 }
 0x503   :  { %v862_v42 = vrot.slane %v854_v27, %v7223_v31  ;;  %v869_v43 = vrot.slane %v855_v28, %v7223_v31 }
 0x504   :  { %v841_v33 = vpop.permute.xlu0 %840 }
 0x505   :  { %v922_v49 = vcombine.low %v7240_v45, %v841_v33  ;;  %v923_v50 = vcombine.high %v7240_v45, %v841_v33 }
 0x506   :  { %v843_v32 = vpop.permute.xlu1 %842 }
 0x507   :  { %v870_v14 = vcombine.low %v835_v11, %v843_v32  ;;  %v871_v34 = vcombine.high %v835_v11, %v843_v32  ;;  %v930_v0 = vrot.slane %v922_v49, %v7223_v31  ;;  %v937_v1 = vrot.slane %v923_v50, %v7223_v31 }
 0x509   :  { %v878_v44 = vrot.slane %v870_v14, %v7223_v31  ;;  %v885_v46 = vrot.slane %v871_v34, %v7223_v31 }
 0x50a   :  { %v845_v51 = vpop.permute.xlu1 %844 }
 0x50b   :  { %v886_v52 = vcombine.low %v862_v42, %v878_v44  ;;  %v887_v53 = vcombine.high %v862_v42, %v878_v44  ;;  %v902_v54 = vcombine.low %v869_v43, %v885_v46  ;;  %v903_v55 = vcombine.high %v869_v43, %v885_v46 }
 0x50c   :  { %v938_v58 = vcombine.low %v837_v63, %v845_v51  ;;  %v939_v59 = vcombine.high %v837_v63, %v845_v51 }
 0x50d   :  { %v894_v60 = vrot.slane %v886_v52, %v7234_v38  ;;  %v901_v61 = vrot.slane %v887_v53, %v7234_v38  ;;  %v910_v62 = vrot.slane %v902_v54, %v7234_v38  ;;  %v917_v45 = vrot.slane %v903_v55, %v7234_v38 }
 0x50e   :  { %v946_v6 = vrot.slane %v938_v58, %v7223_v31  ;;  %v953_v7 = vrot.slane %v939_v59, %v7223_v31  ;;  %v794_v54 = vcombine.low %v7289_v47, %v7292_v48  ;;  %v810_v55 = vcombine.low %v7297_v56, %v7300_v57 }
 0x50f   :  { %v990_v10 = vcombine.low %v894_v60, %v901_v61  ;;  %v6370_v11 = vcombine.high %v894_v60, %v901_v61  ;;  %v1006_v63 = vcombine.low %v910_v62, %v917_v45  ;;  %v6371_v15 = vcombine.high %v910_v62, %v917_v45 }
 0x510   :  { %v954_v23 = vcombine.low %v930_v0, %v946_v6  ;;  %v955_v24 = vcombine.high %v930_v0, %v946_v6  ;;  %v970_v26 = vcombine.low %v937_v1, %v953_v7  ;;  %v971_v27 = vcombine.high %v937_v1, %v953_v7 }
 0x511   :  { %v997_v28 = vrot.slane %v990_v10, %v7223_v31  ;;  %v1005_v29 = vrot.slane %v6370_v11, %v7223_v31  ;;  %v1013_v30 = vrot.slane %v1006_v63, %v7223_v31  ;;  %v1021_v32 = vrot.slane %v6371_v15, %v7223_v31 }
 0x512   :  { %v962_v33 = vrot.slane %v954_v23, %v7234_v38  ;;  %v969_v14 = vrot.slane %v955_v24, %v7234_v38  ;;  %v978_v34 = vrot.slane %v970_v26, %v7234_v38  ;;  %v985_v37 = vrot.slane %v971_v27, %v7234_v38 }
 0x513   :  { %v1022_v39 = vcombine.low %v997_v28, %v1005_v29  ;;  %v1023_v42 = vcombine.high %v997_v28, %v1005_v29  ;;  %v1038_v43 = vcombine.low %v1013_v30, %v1021_v32  ;;  %v1039_v44 = vcombine.high %v1013_v30, %v1021_v32 }
 0x514   :  { %v1058_v46 = vcombine.low %v962_v33, %v969_v14  ;;  %v6372_v49 = vcombine.high %v962_v33, %v969_v14  ;;  %v1074_v50 = vcombine.low %v978_v34, %v985_v37  ;;  %v6373_v51 = vcombine.high %v978_v34, %v985_v37 }
 0x515   :  { %v1030_v52 = vrot.slane %v1022_v39, %v7234_v38  ;;  %v1046_v53 = vrot.slane %v1038_v43, %v7234_v38  ;;  %v1037_v0 = vrot.slane %v1023_v42, %v7234_v38  ;;  %v1053_v1 = vrot.slane %v1039_v44, %v7234_v38  ;;  %v431_v43 = vld [vmem:[%s8150_s1] sm:$0x3]  ;;  %s7094_s1 = smov 64  }
 0x516   :  { %v1065_v58 = vrot.slane %v1058_v46, %v7223_v31  ;;  %v1073_v59 = vrot.slane %v6372_v49, %v7223_v31  ;;  %v1081_v60 = vrot.slane %v1074_v50, %v7223_v31  ;;  %v1089_v61 = vrot.slane %v6373_v51, %v7223_v31 }
 0x517   :  { %v1054_v62 = vcombine.low %v1030_v52, %v1046_v53  ;;  %v1055_v45 = vcombine.high %v1030_v52, %v1046_v53  ;;  %v758_v10 = vcombine.low %v7279_v40, %v7282_v41  ;;  %v741_v11 = vrot.slane %v727_v35, %v7234_v38 }
 0x518   :  { %v1090_v6 = vcombine.low %v1065_v58, %v1073_v59  ;;  %v1106_v7 = vcombine.low %v1081_v60, %v1089_v61  ;;  %v757_v63 = vrot.slane %v743_v36, %v7234_v38  ;;  %v759_v15 = vcombine.high %v7279_v40, %v7282_v41 }
 0x519   :  { %6653 = vmatpush3.xpose.msk.msra.mxu0 %vm1422_vm9, %v1054_v62  ;;  %6663 = vmatpush3.xpose.msk.msra.mxu1 %vm1422_vm9, %v1055_v45  ;;  %v1056_v26 = vcombine.low %v1037_v0, %v1053_v1  ;;  %v802_v2 = vrot.slane %v794_v54, %v7234_v38  ;;  %v818_v3 = vrot.slane %v810_v55, %v7234_v38  ;;  %v7093_v39 = vmov 1966171168  }
 0x51a   :  { %6657 = vmatprep.subr.mxu0 %v7085_v13  ;;  %6672 = vmatprep.subr.mxu1 %v7085_v13  ;;  %v1098_v23 = vrot.slane %v1090_v6, %v7234_v38  ;;  %v1114_v24 = vrot.slane %v1106_v7, %v7234_v38  ;;  %v1091_v35 = vcombine.high %v1065_v58, %v1073_v59  ;;  %v436_v42 = vunpack.c.l.s4 %v7093_v39 }
 0x51b   :  { %v1107_v27 = vcombine.high %v1081_v60, %v1089_v61  ;;  %v760_v5 = vcombine.low %v741_v11, %v757_v63  ;;  %v795_v36 = vcombine.high %v7289_v47, %v7292_v48  ;;  %v826_v40 = vcombine.low %v802_v2, %v818_v3 }
 0x51c   :  { %6655 = vmatmul.mubr.msk.f32.vlgmr.msra.gmra.mxu0 %vm1422_vm9, %v758_v10  ;;  %6665 = vmatmul.mubr.msk.f32.vlgmr.msra.gmra.mxu1 %vm1422_vm9, %v759_v15  ;;  %v1122_v4 = vcombine.low %v1098_v23, %v1114_v24  ;;  %v1057_v41 = vcombine.high %v1037_v0, %v1053_v1  ;;  %v811_v28 = vcombine.high %v7297_v56, %v7300_v57  ;;  %v432_v44 = vsub.f32 1.0, %v431_v43 }
 0x51d   :  { %6673 = vmatpush3.xpose.msk.msra.mxu1 %vm1422_vm9, %v1056_v26  ;;  %6659 = vmatprep.mubr.msk.f32.mxu0 %vm7090_vm8, %v7085_v13  ;;  %v1123_v29 = vcombine.high %v1098_v23, %v1114_v24  ;;  %v1105_v30 = vrot.slane %v1091_v35, %v7234_v38  ;;  %v1121_v32 = vrot.slane %v1107_v27, %v7234_v38  ;;  %v437_v46 = vunpack.c.0.s8 %v436_v42 }
 0x51e   :  { %6658 = vmatpush3.xpose.msk.msra.mxu0 %vm1422_vm9, %v1122_v4  ;;  %6674 = vmatprep.mubr.msk.f32.mxu1 %vm7090_vm8, %v7085_v13  ;;  %v761_v47 = vcombine.high %v741_v11, %v757_v63  ;;  %v827_v48 = vcombine.high %v802_v2, %v818_v3  ;;  %v809_v56 = vrot.slane %v795_v36, %v7234_v38  ;;  %v433_v49 = vmul.f32 -10000.0, %v432_v44 }
 0x51f   :  { %6667 = vmatprep.subr.mxu0 %v7085_v13  ;;  %6682 = vmatprep.subr.mxu1 %v7085_v13  ;;  %v825_v57 = vrot.slane %v811_v28, %v7234_v38  ;;  %v1124_v33 = vcombine.low %v1105_v30, %v1121_v32  ;;  %v1125_v34 = vcombine.high %v1105_v30, %v1121_v32  ;;  %v2041_v53 = vsub.s32 0, %v7216_v25 }
 0x520   :  { %6675 = vmatmul.mubr.msk.f32.vlgmr.msra.gmra.mxu1 %vm1422_vm9, %v760_v5  ;;  %v440_v50 = vsub.s32 %v437_v46, %v7216_v25 }
 0x521   :  { %6660 = vmatmul.mubr.msk.f32.vlgmr.msra.gmra.mxu0 %vm1422_vm9, %v826_v40  ;;  %6683 = vmatpush3.xpose.msk.msra.mxu1 %vm1422_vm9, %v1057_v41  ;;  %v828_v14 = vcombine.low %v809_v56, %v825_v57  ;;  %v829_v37 = vcombine.high %v809_v56, %v825_v57 }
 0x522   :  { %6668 = vmatpush3.xpose.msk.msra.mxu0 %vm1422_vm9, %v1123_v29  ;;  %6669 = vmatprep.mubr.msk.f32.mxu0 %vm7090_vm8, %v7085_v13  ;;  %v441_v51 = vrot.slane %v433_v49, %v440_v50 }
 0x523   :  { %6684 = vmatprep.mubr.msk.f32.mxu1 %vm7090_vm8, %v7085_v13  ;;  %6677 = vmatprep.subr.mxu0 %v7085_v13 }
 0x524   :  { %6685 = vmatmul.mubr.msk.f32.vlgmr.msra.gmra.mxu1 %vm1422_vm9, %v761_v47  ;;  %6692 = vmatprep.subr.mxu1 %v7085_v13  ;;  %v449_v52 = vrot.slane %v441_v51, %v440_v50  ;;  %v442_v54 = vcombine.high %v441_v51, %v441_v51 }
 0x525   :  { %6670 = vmatmul.mubr.msk.f32.vlgmr.msra.gmra.mxu0 %vm1422_vm9, %v827_v48  ;;  %6694 = vmatprep.mubr.msk.f32.mxu1 %vm7090_vm8, %v7085_v13 }
 0x526   :  { %6678 = vmatpush3.xpose.msk.msra.mxu0 %vm1422_vm9, %v1124_v33  ;;  %6679 = vmatprep.mubr.msk.f32.mxu0 %vm7090_vm8, %v7085_v13  ;;  %v7399_v55 = vrot.slane %v449_v52, %v2041_v53  ;;  %v456_v58 = vrot.slane %v442_v54, %v440_v50 }
 0x527   :  { %6687 = vmatprep.subr.mxu0 %v7085_v13 }
 0x528   :  { %v7402_v6 = vrot.slane %v456_v58, %v2041_v53 }
 0x529   :  { %6680 = vmatmul.mubr.msk.f32.vlgmr.msra.gmra.mxu0 %vm1422_vm9, %v828_v14 }
 0x52a   :  { %6688 = vmatpush3.xpose.msk.msra.mxu0 %vm1422_vm9, %v1125_v34  ;;  %6689 = vmatprep.mubr.msk.f32.mxu0 %vm7090_vm8, %v7085_v13 }
 0x52b   :  { %6697 = vmatprep.subr.mxu0 %v7085_v13 }
 0x52d   :  { %6690 = vmatmul.mubr.msk.f32.vlgmr.msra.gmra.mxu0 %vm1422_vm9, %v829_v37 }
 0x52e   :  { %6699 = vmatprep.mubr.msk.f32.mxu0 %vm7090_vm8, %v7085_v13 }
 0x5dc   :  { %v1495_v59 = vpop.f32.mrf.mxu0  ;;  %v1647_v60 = vpop.f32.mrf.mxu1 }
 0x5dd   :  { %v2031_v61 = vmul.f32 0.35355338, %v1495_v59  ;;  %v2033_v62 = vmul.f32 0.35355338, %v1647_v60 }
 0x5de   :  { %v6656_v45 = vpop.f32.mrf.mxu0  ;;  %v6666_v0 = vpop.f32.mrf.mxu1 }
 0x5df   :  { %v2049_v1 = vadd.f32 %v7399_v55, %v2031_v61  ;;  %v2051_v25 = vadd.f32 %v7399_v55, %v2033_v62 }
 0x5e0   :  { %v1799_v7 = vpop.f32.mrf.mxu1 }
 0x5e1   :  { %v1571_v10 = vpop.f32.mrf.mxu0  ;;  %v2057_v11 = vsel %vm1422_vm9, %v2049_v1, -inf  ;;  %v2035_v15 = vmul.f32 0.35355338, %v1799_v7  ;;  %v2063_v35 = vsel %vm1422_vm9, %v2051_v25, -inf }
 0x5e2   :  { %v2032_v63 = vmul.f32 0.35355338, %v1571_v10  ;;  %v6676_v23 = vpop.f32.mrf.mxu1  ;;  %2058 = vmax.xlane.f32.xlu0 %v2057_v11 }
 0x5e3   :  { %v6661_v24 = vpop.f32.mrf.mxu0  ;;  %v2053_v40 = vadd.f32 %v7399_v55, %v2035_v15 }
 0x5e4   :  { %v1951_v26 = vpop.f32.mrf.mxu1  ;;  %v2050_v2 = vadd.f32 %v7402_v6, %v2032_v63 }
 0x5e5   :  { %v1723_v3 = vpop.f32.mrf.mxu0  ;;  %v2037_v4 = vmul.f32 0.35355338, %v1951_v26  ;;  %v2069_v30 = vsel %vm1422_vm9, %v2053_v40, -inf }
 0x5e6   :  { %v2034_v27 = vmul.f32 0.35355338, %v1723_v3  ;;  %v6686_v5 = vpop.f32.mrf.mxu1  ;;  %2064 = vmax.xlane.f32.xlu0 %v2063_v35  ;;  %v2060_v36 = vsel %vm1422_vm9, %v2050_v2, -inf }
 0x5e7   :  { %2061 = vmax.xlane.f32.xlu1 %v2060_v36  ;;  %v6671_v41 = vpop.f32.mrf.mxu0  ;;  %v7414_v47 = vadd.f32 %v7399_v55, %v2037_v4 }
 0x5e8   :  { %v2052_v28 = vadd.f32 %v7402_v6, %v2034_v27 }
 0x5e9   :  { %v1875_v29 = vpop.f32.mrf.mxu0  ;;  %v2075_v57 = vsel %vm1422_vm9, %v7414_v47, -inf }
 0x5ea   :  { %v2066_v32 = vsel %vm1422_vm9, %v2052_v28, -inf  ;;  %v2036_v14 = vmul.f32 0.35355338, %v1875_v29 }
 0x5eb   :  { %2070 = vmax.xlane.f32.xlu1 %v2069_v30  ;;  %2067 = vmax.xlane.f32.xlu0 %v2066_v32  ;;  %v6681_v48 = vpop.f32.mrf.mxu0 }
 0x5ec   :  { %v7431_v37 = vadd.f32 %v7402_v6, %v2036_v14 }
 0x5ed   :  { %v2027_v56 = vpop.f32.mrf.mxu0 }
 0x5ee   :  { %v2038_v34 = vmul.f32 0.35355338, %v2027_v56 }
 0x5ef   :  { %2076 = vmax.xlane.f32.xlu1 %v2075_v57  ;;  %v6691_v33 = vpop.f32.mrf.mxu0 }
 0x600   :  { %1130 = vrot.lane.b32.xlu1 %v7195_v19, %s7094_s1  ;;  %v7436_v19 = vadd.f32 %v7402_v6, %v2038_v34 }
 0x601   :  { %1126 = vrot.lane.b32.xlu0 %v7169_v16, %s7094_s1  ;;  %v2072_v16 = vsel %vm1422_vm9, %v7431_v37, -inf }
 0x604   :  { %1134 = vrot.lane.b32.xlu1 %v7191_v18, %s7094_s1  ;;  %v2078_v18 = vsel %vm1422_vm9, %v7436_v19, -inf }
 0x605   :  { %1138 = vrot.lane.b32.xlu0 %v7203_v21, %s7094_s1 }
 0x609   :  { %1128 = vrot.lane.b32.xlu0 %v7167_v12, %s7094_s1 }
 0x60d   :  { %1132 = vrot.lane.b32.xlu0 %v7187_v17, %s7094_s1 }
 0x62c   :  { %2073 = vmax.xlane.f32.xlu0 %v2072_v16 }
 0x630   :  { %2079 = vmax.xlane.f32.xlu0 %v2078_v18 }
 0x646   :  { %1136 = vrot.lane.b32.xlu0 %v7199_v20, %s7094_s1 }
 0x66b   :  { %v2059_v12 = vpop.xlane.xlu0 %2058 }
 0x66c   :  { %v2081_v17 = vsub.f32 %v2049_v1, %v2059_v12 }
 0x66e   :  { %v2089_v21 = vmul.f32 1.442695, %v2081_v17 }
 0x66f   :  { %v2065_v39 = vpop.xlane.xlu0 %2064 }
 0x670   :  { %6940 = vpow2.f32 %v2089_v21  ;;  %v2083_v42 = vsub.f32 %v2051_v25, %v2065_v39  ;;  %v2062_v43 = vpop.xlane.xlu1 %2061 }
 0x671   :  { %v2082_v44 = vsub.f32 %v2050_v2, %v2062_v43 }
 0x672   :  { %v2093_v46 = vmul.f32 1.442695, %v2083_v42 }
 0x673   :  { %v2091_v49 = vmul.f32 1.442695, %v2082_v44 }
 0x674   :  { %6942 = vpow2.f32 %v2093_v46  ;;  %v2071_v50 = vpop.xlane.xlu1 %2070  ;;  %v2068_v51 = vpop.xlane.xlu0 %2067 }
 0x675   :  { %6944 = vpow2.f32 %v2091_v49  ;;  %v2085_v52 = vsub.f32 %v2053_v40, %v2071_v50  ;;  %v2084_v53 = vsub.f32 %v2052_v28, %v2068_v51 }
 0x677   :  { %v2097_v54 = vmul.f32 1.442695, %v2085_v52  ;;  %v2095_v58 = vmul.f32 1.442695, %v2084_v53 }
 0x678   :  { %v2077_v59 = vpop.xlane.xlu1 %2076  ;;  %v1127_v20 = vpop.permute.xlu0 %1126 }
 0x679   :  { %6946 = vpow2.f32 %v2097_v54  ;;  %v2087_v54 = vsub.f32 %v7414_v47, %v2077_v59 }
 0x67a   :  { %6948 = vpow2.f32 %v2095_v58 }
 0x67b   :  { %v2101_v58 = vmul.f32 1.442695, %v2087_v54 }
 0x67c   :  { %v1131_v60 = vpop.permute.xlu1 %1130  ;;  %v1139_v61 = vpop.permute.xlu0 %1138 }
 0x67d   :  { %v7442_v62 = vpop.eup %6940  ;;  %v1166_v45 = vcombine.low %v1131_v60, %v1139_v61  ;;  %v1167_v1 = vcombine.high %v1131_v60, %v1139_v61  ;;  %6950 = vpow2.f32 %v2101_v58 }
 0x67e   :  { %v2105_v0 = vsel %vm1422_vm9, %v7442_v62, 0.0 }
 0x67f   :  { %2106 = vadd.xlane.f32.xlu1 %v2105_v0  ;;  %v1174_v15 = vrot.slane %v1166_v45, %v7223_v31  ;;  %v1181_v24 = vrot.slane %v1167_v1, %v7223_v31 }
 0x680   :  { %v1135_v7 = vpop.permute.xlu1 %1134 }
 0x681   :  { %v7446_v10 = vpop.eup %6942  ;;  %v1150_v11 = vcombine.low %v1127_v20, %v1135_v7  ;;  %v1151_v25 = vcombine.high %v1127_v20, %v1135_v7  ;;  %v1129_v20 = vpop.permute.xlu0 %1128 }
 0x682   :  { %v7448_v63 = vpop.eup %6944  ;;  %v2111_v23 = vsel %vm1422_vm9, %v7446_v10, 0.0 }
 0x683   :  { %v1158_v26 = vrot.slane %v1150_v11, %v7223_v31  ;;  %v1165_v2 = vrot.slane %v1151_v25, %v7223_v31  ;;  %2112 = vadd.xlane.f32.xlu1 %v2111_v23  ;;  %v2108_v3 = vsel %vm1422_vm9, %v7448_v63, 0.0 }
 0x684   :  { %2109 = vadd.xlane.f32.xlu0 %v2108_v3 }
 0x685   :  { %v1182_v35 = vcombine.low %v1158_v26, %v1174_v15  ;;  %v1183_v27 = vcombine.high %v1158_v26, %v1174_v15  ;;  %v1198_v4 = vcombine.low %v1165_v2, %v1181_v24  ;;  %v1199_v5 = vcombine.high %v1165_v2, %v1181_v24  ;;  %v1133_v60 = vpop.permute.xlu0 %1132 }
 0x686   :  { %v7458_v36 = vpop.eup %6946 }
 0x687   :  { %v7460_v40 = vpop.eup %6948  ;;  %v1190_v41 = vrot.slane %v1182_v35, %v7234_v38  ;;  %v1197_v28 = vrot.slane %v1183_v27, %v7234_v38  ;;  %v1206_v29 = vrot.slane %v1198_v4, %v7234_v38  ;;  %v1213_v30 = vrot.slane %v1199_v5, %v7234_v38 }
 0x688   :  { %v2117_v32 = vsel %vm1422_vm9, %v7458_v36, 0.0  ;;  %v2114_v48 = vsel %vm1422_vm9, %v7460_v40, 0.0 }
 0x689   :  { %v1286_v56 = vcombine.low %v1190_v41, %v1197_v28  ;;  %v6374_v57 = vcombine.high %v1190_v41, %v1197_v28  ;;  %v1302_v33 = vcombine.low %v1206_v29, %v1213_v30  ;;  %v6375_v14 = vcombine.high %v1206_v29, %v1213_v30  ;;  %2118 = vadd.xlane.f32.xlu1 %v2117_v32 }
 0x68a   :  { %2115 = vadd.xlane.f32.xlu0 %v2114_v48  ;;  %v7492_v11 = vpop.eup %6950 }
 0x68b   :  { %v1293_v34 = vrot.slane %v1286_v56, %v7223_v31  ;;  %v1301_v16 = vrot.slane %v6374_v57, %v7223_v31  ;;  %v1309_v18 = vrot.slane %v1302_v33, %v7223_v31  ;;  %v1317_v12 = vrot.slane %v6375_v14, %v7223_v31 }
 0x68d   :  { %v1318_v17 = vcombine.low %v1293_v34, %v1301_v16  ;;  %v1334_v21 = vcombine.low %v1309_v18, %v1317_v12  ;;  %v1319_v39 = vcombine.high %v1293_v34, %v1301_v16  ;;  %v1335_v42 = vcombine.high %v1309_v18, %v1317_v12 }
 0x68f   :  { %v1326_v43 = vrot.slane %v1318_v17, %v7234_v38  ;;  %v1342_v44 = vrot.slane %v1334_v21, %v7234_v38  ;;  %v7477_v46 = vrot.slane %v1319_v39, %v7234_v38  ;;  %v7480_v49 = vrot.slane %v1335_v42, %v7234_v38 }
 0x691   :  { %v1350_v50 = vcombine.low %v1326_v43, %v1342_v44  ;;  %v1351_v51 = vcombine.high %v1326_v43, %v1342_v44  ;;  %v1352_v52 = vcombine.low %v7477_v46, %v7480_v49  ;;  %v1353_v53 = vcombine.high %v7477_v46, %v7480_v49 }
 0x693   :  { %6693 = vmatpush3.msra.mxu1 %v1350_v50 }
 0x694   :  { %6702 = vmatprep.subr.mxu1 %v7085_v13 }
 0x6a0   :  { %1140 = vrot.lane.b32.xlu0 %v7207_v22, %s7094_s1  ;;  %v2123_v22 = vsel %vm1422_vm9, %v7492_v11, 0.0 }
 0x6b5   :  { %v2074_v61 = vpop.xlane.xlu0 %2073 }
 0x6b6   :  { %v2086_v45 = vsub.f32 %v7431_v37, %v2074_v61 }
 0x6b8   :  { %v2099_v0 = vmul.f32 1.442695, %v2086_v45 }
 0x6b9   :  { %v2080_v1 = vpop.xlane.xlu0 %2079 }
 0x6ba   :  { %6952 = vpow2.f32 %v2099_v0  ;;  %v2088_v7 = vsub.f32 %v7436_v19, %v2080_v1 }
 0x6bc   :  { %v2103_v25 = vmul.f32 1.442695, %v2088_v7 }
 0x6bd   :  { %v1137_v23 = vpop.permute.xlu0 %1136 }
 0x6be   :  { %6954 = vpow2.f32 %v2103_v25  ;;  %v1218_v35 = vcombine.low %v1129_v20, %v1137_v23  ;;  %v1219_v4 = vcombine.high %v1129_v20, %v1137_v23 }
 0x6bf   :  { %2124 = vadd.xlane.f32.xlu0 %v2123_v22 }
 0x6c0   :  { %v1226_v30 = vrot.slane %v1218_v35, %v7223_v31  ;;  %v1233_v48 = vrot.slane %v1219_v4, %v7223_v31 }
 0x6c7   :  { %v7496_v47 = vpop.eup %6952 }
 0x6c8   :  { %v2120_v59 = vsel %vm1422_vm9, %v7496_v47, 0.0 }
 0x6c9   :  { %2121 = vadd.xlane.f32.xlu1 %v2120_v59 }
 0x6cb   :  { %v7500_v37 = vpop.eup %6954 }
 0x6cc   :  { %v2126_v15 = vsel %vm1422_vm9, %v7500_v37, 0.0 }
 0x6cd   :  { %2127 = vadd.xlane.f32.xlu1 %v2126_v15 }
 0x708   :  { %v2107_v19 = vpop.xlane.xlu1 %2106 }
 0x709   :  { %6956 = vrcp.f32 %v2107_v19 }
 0x70c   :  { %v2113_v24 = vpop.xlane.xlu1 %2112 }
 0x70d   :  { %6958 = vrcp.f32 %v2113_v24  ;;  %v2110_v26 = vpop.xlane.xlu0 %2109 }
 0x712   :  { %v2119_v2 = vpop.xlane.xlu1 %2118 }
 0x713   :  { %6960 = vrcp.f32 %v2119_v2  ;;  %v2116_v3 = vpop.xlane.xlu0 %2115 }
 0x714   :  { %6962 = vrcp.f32 %v2110_v26 }
 0x715   :  { %6964 = vrcp.f32 %v2116_v3 }
 0x716   :  { %v6957_v27 = vpop.eup %6956 }
 0x717   :  { %v1141_v5 = vpop.permute.xlu0 %1140  ;;  %v2130_v41 = vmul.f32 %v6957_v27, %v7442_v62 }
 0x718   :  { %v1234_v28 = vcombine.low %v1133_v60, %v1141_v5  ;;  %v1235_v29 = vcombine.high %v1133_v60, %v1141_v5 }
 0x719   :  { %6695 = vmatmul.mubr.msk.f32.vlgmr.msra.gmra.mxu1 %vm1422_vm9, %v2130_v41 }
 0x71a   :  { %v6959_v32 = vpop.eup %6958  ;;  %v1242_v56 = vrot.slane %v1234_v28, %v7223_v31  ;;  %v1249_v57 = vrot.slane %v1235_v29, %v7223_v31  ;;  %6703 = vmatpush3.msra.mxu1 %v1351_v51  ;;  %6704 = vmatprep.mubr.msk.f32.mxu1 %vm7090_vm8, %v7085_v13 }
 0x71b   :  { %6712 = vmatprep.subr.mxu1 %v7085_v13  ;;  %v2134_v62 = vmul.f32 %v6959_v32, %v7446_v10 }
 0x71c   :  { %v1250_v33 = vcombine.low %v1226_v30, %v1242_v56  ;;  %v1251_v14 = vcombine.high %v1226_v30, %v1242_v56  ;;  %v1266_v34 = vcombine.low %v1233_v48, %v1249_v57  ;;  %v1267_v16 = vcombine.high %v1233_v48, %v1249_v57 }
 0x71d   :  { %6705 = vmatmul.mubr.msk.f32.vlgmr.msra.gmra.mxu1 %vm1422_vm9, %v2134_v62 }
 0x71e   :  { %v1258_v18 = vrot.slane %v1250_v33, %v7234_v38  ;;  %v1265_v12 = vrot.slane %v1251_v14, %v7234_v38  ;;  %v1274_v17 = vrot.slane %v1266_v34, %v7234_v38  ;;  %v1281_v21 = vrot.slane %v1267_v16, %v7234_v38  ;;  %6713 = vmatpush3.msra.mxu1 %v1352_v52 }
 0x71f   :  { %6714 = vmatprep.mubr.msk.f32.mxu1 %vm7090_vm8, %v7085_v13  ;;  %6722 = vmatprep.subr.mxu1 %v7085_v13 }
 0x720   :  { %v6961_v10 = vpop.eup %6960  ;;  %v1354_v39 = vcombine.low %v1258_v18, %v1265_v12  ;;  %v6376_v42 = vcombine.high %v1258_v18, %v1265_v12  ;;  %v1370_v43 = vcombine.low %v1274_v17, %v1281_v21  ;;  %v6377_v44 = vcombine.high %v1274_v17, %v1281_v21 }
 0x721   :  { %v2138_v50 = vmul.f32 %v6961_v10, %v7458_v36  ;;  %v6963_v36 = vpop.eup %6962 }
 0x722   :  { %v1361_v51 = vrot.slane %v1354_v39, %v7223_v31  ;;  %v1369_v54 = vrot.slane %v6376_v42, %v7223_v31  ;;  %v1377_v58 = vrot.slane %v1370_v43, %v7223_v31  ;;  %v1385_v52 = vrot.slane %v6377_v44, %v7223_v31  ;;  %v6965_v22 = vpop.eup %6964 }
 0x723   :  { %6715 = vmatmul.mubr.msk.f32.vlgmr.msra.gmra.mxu1 %vm1422_vm9, %v2138_v50  ;;  %v2132_v25 = vmul.f32 %v6963_v36, %v7448_v63 }
 0x724   :  { %6723 = vmatpush3.msra.mxu1 %v1353_v53  ;;  %v1386_v20 = vcombine.low %v1361_v51, %v1369_v54  ;;  %v1402_v60 = vcombine.low %v1377_v58, %v1385_v52  ;;  %6724 = vmatprep.mubr.msk.f32.mxu1 %vm7090_vm8, %v7085_v13  ;;  %v1387_v0 = vcombine.high %v1361_v51, %v1369_v54 }
 0x725   :  { %v1403_v1 = vcombine.high %v1377_v58, %v1385_v52  ;;  %v2136_v53 = vmul.f32 %v6965_v22, %v7460_v40 }
 0x726   :  { %v1394_v61 = vrot.slane %v1386_v20, %v7234_v38  ;;  %v1410_v45 = vrot.slane %v1402_v60, %v7234_v38  ;;  %v1401_v46 = vrot.slane %v1387_v0, %v7234_v38 }
 0x727   :  { %v1417_v49 = vrot.slane %v1403_v1, %v7234_v38 }
 0x728   :  { %v1418_v7 = vcombine.low %v1394_v61, %v1410_v45  ;;  %v1419_v59 = vcombine.high %v1394_v61, %v1410_v45 }
 0x729   :  { %v1420_v63 = vcombine.low %v1401_v46, %v1417_v49  ;;  %v1421_v3 = vcombine.high %v1401_v46, %v1417_v49 }
 0x72a   :  { %6698 = vmatpush3.msra.mxu0 %v1418_v7 }
 0x72b   :  { %6700 = vmatmul.mubr.msk.f32.vlgmr.msra.gmra.mxu0 %vm1422_vm9, %v2132_v25  ;;  %6707 = vmatprep.subr.mxu0 %v7085_v13 }
 0x72c   :  { %6708 = vmatpush3.msra.mxu0 %v1419_v59  ;;  %6709 = vmatprep.mubr.msk.f32.mxu0 %vm7090_vm8, %v7085_v13 }
 0x72d   :  { %6717 = vmatprep.subr.mxu0 %v7085_v13 }
 0x72f   :  { %6710 = vmatmul.mubr.msk.f32.vlgmr.msra.gmra.mxu0 %vm1422_vm9, %v2136_v53 }
 0x730   :  { %6718 = vmatpush3.msra.mxu0 %v1420_v63  ;;  %6719 = vmatprep.mubr.msk.f32.mxu0 %vm7090_vm8, %v7085_v13 }
 0x731   :  { %6727 = vmatprep.subr.mxu0 %v7085_v13 }
 0x748   :  { %v2125_v15 = vpop.xlane.xlu0 %2124 }
 0x749   :  { %6966 = vrcp.f32 %v2125_v15 }
 0x752   :  { %v2122_v19 = vpop.xlane.xlu1 %2121 }
 0x753   :  { %6968 = vrcp.f32 %v2122_v19 }
 0x756   :  { %v6967_v23 = vpop.eup %6966  ;;  %v2128_v24 = vpop.xlane.xlu1 %2127 }
 0x757   :  { %6970 = vrcp.f32 %v2128_v24  ;;  %v2142_v26 = vmul.f32 %v6967_v23, %v7492_v11  ;;  %v378_v24 = vld [vmem:[#allocation2 + $0xb0] sm:$0xff] }
 0x758   :  { %6732 = vmatprep.subr.mxu1 %v378_v24 }
 0x759   :  { %6725 = vmatmul.mubr.msk.f32.vlgmr.msra.gmra.mxu1 %vm1422_vm9, %v2142_v26  ;;  %v377_v26 = vld [vmem:[#allocation2 + $0xa8] sm:$0xff] }
 0x75a   :  { %6733 = vmatpush3.msra.mxu1 %v378_v24 }
 0x75b   :  { %6734 = vmatprep.subr.mxu1 %v377_v26 }
 0x75c   :  { %6735 = vmatpush3.msra.mxu1 %v377_v26 }
 0x760   :  { %v6969_v40 = vpop.eup %6968 }
 0x761   :  { %v2140_v2 = vmul.f32 %v6969_v40, %v7496_v47 }
 0x763   :  { %6720 = vmatmul.mubr.msk.f32.vlgmr.msra.gmra.mxu0 %vm1422_vm9, %v2140_v2 }
 0x764   :  { %v6971_v35 = vpop.eup %6970  ;;  %6728 = vmatpush3.msra.mxu0 %v1421_v3  ;;  %6729 = vmatprep.mubr.msk.f32.mxu0 %vm7090_vm8, %v7085_v13 }
 0x765   :  { %v2144_v27 = vmul.f32 %v6971_v35, %v7500_v37 }
 0x767   :  { %6730 = vmatmul.mubr.msk.f32.vlgmr.msra.gmra.mxu0 %vm1422_vm9, %v2144_v27 }
 0x7d9   :  { %v2214_v4 = vpop.f32.mrf.mxu1 }
 0x7db   :  { %v6696_v5 = vpop.f32.mrf.mxu1 }
 0x7dd   :  { %v2360_v11 = vpop.f32.mrf.mxu1 }
 0x7df   :  { %v6706_v41 = vpop.f32.mrf.mxu1 }
 0x7e3   :  { %v2506_v28 = vpop.f32.mrf.mxu1 }
 0x7e4   :  { %v2729_v56 = vcombine.low %v2214_v4, %v2506_v28  ;;  %v2730_v57 = vcombine.high %v2214_v4, %v2506_v28 }
 0x7e5   :  { %v6716_v29 = vpop.f32.mrf.mxu1 }
 0x7e6   :  { %v2737_v37 = vrot.slane %v2729_v56, %v7223_v31  ;;  %v2744_v16 = vrot.slane %v2730_v57, %v7223_v31 }
 0x7eb   :  { %v2287_v30 = vpop.f32.mrf.mxu0 }
 0x7ed   :  { %v6701_v47 = vpop.f32.mrf.mxu0 }
 0x7ee   :  { %v376_v47 = vld [vmem:[#allocation2 + $0xa0] sm:$0xff] }
 0x7ef   :  { %v2433_v32 = vpop.f32.mrf.mxu0  ;;  %6736 = vmatprep.subr.mxu1 %v376_v47 }
 0x7f0   :  { %6737 = vmatpush3.msra.mxu1 %v376_v47 }
 0x7f1   :  { %v6711_v48 = vpop.f32.mrf.mxu0 }
 0x819   :  { %v2652_v62 = vpop.f32.mrf.mxu1 }
 0x81a   :  { %v2745_v33 = vcombine.low %v2360_v11, %v2652_v62  ;;  %v2746_v14 = vcombine.high %v2360_v11, %v2652_v62 }
 0x81b   :  { %v6726_v34 = vpop.f32.mrf.mxu1 }
 0x81c   :  { %v2753_v18 = vrot.slane %v2745_v33, %v7223_v31  ;;  %v2760_v12 = vrot.slane %v2746_v14, %v7223_v31 }
 0x81e   :  { %v2761_v17 = vcombine.low %v2737_v37, %v2753_v18  ;;  %v2762_v21 = vcombine.high %v2737_v37, %v2753_v18  ;;  %v2777_v10 = vcombine.low %v2744_v16, %v2760_v12  ;;  %v2778_v39 = vcombine.high %v2744_v16, %v2760_v12 }
 0x820   :  { %v2769_v42 = vrot.slane %v2761_v17, %v7234_v38  ;;  %v2776_v43 = vrot.slane %v2762_v21, %v7234_v38  ;;  %v2785_v44 = vrot.slane %v2777_v10, %v7234_v38  ;;  %v2792_v50 = vrot.slane %v2778_v39, %v7234_v38 }
 0x822   :  { %v2865_v51 = vcombine.low %v2769_v42, %v2776_v43  ;;  %v6402_v54 = vcombine.high %v2769_v42, %v2776_v43  ;;  %v2881_v58 = vcombine.low %v2785_v44, %v2792_v50  ;;  %v6403_v52 = vcombine.high %v2785_v44, %v2792_v50 }
 0x823   :  { %v2579_v20 = vpop.f32.mrf.mxu0 }
 0x824   :  { %v2872_v60 = vrot.slane %v2865_v51, %v7223_v31  ;;  %v2880_v36 = vrot.slane %v6402_v54, %v7223_v31  ;;  %v2888_v45 = vrot.slane %v2881_v58, %v7223_v31  ;;  %v2896_v0 = vrot.slane %v6403_v52, %v7223_v31 }
 0x825   :  { %v6721_v61 = vpop.f32.mrf.mxu0  ;;  %v2797_v1 = vcombine.low %v2287_v30, %v2579_v20  ;;  %v2798_v7 = vcombine.high %v2287_v30, %v2579_v20 }
 0x826   :  { %v2897_v25 = vcombine.low %v2872_v60, %v2880_v36  ;;  %v2913_v59 = vcombine.low %v2888_v45, %v2896_v0  ;;  %v2898_v46 = vcombine.high %v2872_v60, %v2880_v36  ;;  %v2914_v49 = vcombine.high %v2888_v45, %v2896_v0 }
 0x827   :  { %v2725_v22 = vpop.f32.mrf.mxu0  ;;  %v2805_v40 = vrot.slane %v2797_v1, %v7223_v31  ;;  %v2812_v2 = vrot.slane %v2798_v7, %v7223_v31 }
 0x828   :  { %v2813_v53 = vcombine.low %v2433_v32, %v2725_v22  ;;  %v2814_v63 = vcombine.high %v2433_v32, %v2725_v22  ;;  %v7572_v15 = vrot.slane %v2897_v25, %v7234_v38  ;;  %v7575_v23 = vrot.slane %v2913_v59, %v7234_v38  ;;  %v375_v32 = vld [vmem:[#allocation2 + $0x98] sm:$0xff] }
 0x829   :  { %v6731_v19 = vpop.f32.mrf.mxu0  ;;  %v2912_v5 = vrot.slane %v2898_v46, %v7234_v38  ;;  %v2928_v11 = vrot.slane %v2914_v49, %v7234_v38  ;;  %6738 = vmatprep.subr.mxu1 %v375_v32 }
 0x82a   :  { %v2821_v3 = vrot.slane %v2813_v53, %v7223_v31  ;;  %v2828_v35 = vrot.slane %v2814_v63, %v7223_v31  ;;  %v2930_v27 = vcombine.high %v7572_v15, %v7575_v23  ;;  %v2929_v4 = vcombine.low %v7572_v15, %v7575_v23  ;;  %6739 = vmatpush3.msra.mxu1 %v375_v32  ;;  %v6357_v15 = vld [vmem:[%s8152_s3 + $0x4] ss:$0 sm:$0xff]  ;;  %v382_v32 = vld [vmem:[#allocation2 + $0xd0] sm:$0xff] }
 0x82b   :  { %v2931_v33 = vcombine.low %v2912_v5, %v2928_v11  ;;  %v2932_v10 = vcombine.high %v2912_v5, %v2928_v11  ;;  %6743 = vmatprep.subr.mxu0 %v382_v32 }
 0x82c   :  { %v2829_v41 = vcombine.low %v2805_v40, %v2821_v3  ;;  %v2830_v28 = vcombine.high %v2805_v40, %v2821_v3  ;;  %v2845_v29 = vcombine.low %v2812_v2, %v2828_v35  ;;  %v2846_v30 = vcombine.high %v2812_v2, %v2828_v35  ;;  %3003 = vrot.lane.b32.xlu1 %v2930_v27, %s7082_s19 }
 0x82d   :  { %6744 = vmatpush3.msra.mxu0 %v382_v32 }
 0x82e   :  { %v2837_v48 = vrot.slane %v2829_v41, %v7234_v38  ;;  %v2844_v56 = vrot.slane %v2830_v28, %v7234_v38  ;;  %v2853_v57 = vrot.slane %v2845_v29, %v7234_v38  ;;  %v2860_v62 = vrot.slane %v2846_v30, %v7234_v38 }
 0x830   :  { %v2933_v14 = vcombine.low %v2837_v48, %v2844_v56  ;;  %v6404_v34 = vcombine.high %v2837_v48, %v2844_v56  ;;  %v2949_v37 = vcombine.low %v2853_v57, %v2860_v62  ;;  %v6405_v16 = vcombine.high %v2853_v57, %v2860_v62  ;;  %3011 = vrot.lane.b32.xlu1 %v2931_v33, %s7095_s12  ;;  %v380_v48 = vld [vmem:[#allocation2 + $0xc0] sm:$0xff]  ;;  %v379_v56 = vld [vmem:[#allocation2 + $0xb8] sm:$0xff]  ;;  %v7030_v57 = vld [vmem:[#allocation2 + $0x90] sm:$0xff] }
 0x832   :  { %v2940_v18 = vrot.slane %v2933_v14, %v7223_v31  ;;  %v2948_v12 = vrot.slane %v6404_v34, %v7223_v31  ;;  %v2956_v17 = vrot.slane %v2949_v37, %v7223_v31  ;;  %v2964_v21 = vrot.slane %v6405_v16, %v7223_v31 }
 0x834   :  { %v2966_v39 = vcombine.high %v2940_v18, %v2948_v12  ;;  %v2982_v42 = vcombine.high %v2956_v17, %v2964_v21  ;;  %v2965_v43 = vcombine.low %v2940_v18, %v2948_v12  ;;  %v2981_v44 = vcombine.low %v2956_v17, %v2964_v21  ;;  %3019 = vrot.lane.b32.xlu1 %v2932_v10, %s7096_s13  ;;  %v6358_v12 = vld [vmem:[%s8152_s3 + $0x5] ss:$0 sm:$0xff]  ;;  %v6359_v21 = vld [vmem:[%s8152_s3 + $0x6] ss:$0 sm:$0xff] }
 0x836   :  { %v2980_v50 = vrot.slane %v2966_v39, %v7234_v38  ;;  %v2996_v51 = vrot.slane %v2982_v42, %v7234_v38  ;;  %v2973_v54 = vrot.slane %v2965_v43, %v7234_v38  ;;  %v2989_v58 = vrot.slane %v2981_v44, %v7234_v38 }
 0x838   :  { %v2999_v52 = vcombine.low %v2980_v50, %v2996_v51  ;;  %v2998_v20 = vcombine.high %v2973_v54, %v2989_v58  ;;  %v2997_v60 = vcombine.low %v2973_v54, %v2989_v58  ;;  %v3000_v36 = vcombine.high %v2980_v50, %v2996_v51  ;;  %v7031_v51 = vld [vmem:[#allocation2 + $0x88] sm:$0xff]  ;;  %v7032_v54 = vld [vmem:[#allocation2 + $0x80] sm:$0xff]  ;;  %v7033_v58 = vld [vmem:[#allocation2 + $0x78] sm:$0xff] }
 0x83a   :  { %3013 = vrot.lane.b32.xlu1 %v2999_v52, %s7095_s12  ;;  %3005 = vrot.lane.b32.xlu0 %v2998_v20, %s7082_s19  ;;  %v390_v52 = vld [vmem:[#allocation2 + $0x110] sm:$0xff]  ;;  %v389_v20 = vld [vmem:[#allocation2 + $0x108] sm:$0xff] }
 0x83b   :  { %6754 = vmatprep.subr.mxu1 %v390_v52 }
 0x83e   :  { %3021 = vrot.lane.b32.xlu1 %v3000_v36, %s7096_s13  ;;  %v387_v36 = vld [vmem:[#allocation2 + $0xf8] sm:$0xff] }
 0x89e   :  { %v3004_v61 = vpop.permute.xlu1 %3003 }
 0x89f   :  { %v3025_v0 = vsel %vm1422_vm9, %v2929_v4, %v3004_v61  ;;  %v386_v61 = vld [vmem:[#allocation2 + $0xf0] sm:$0xff] }
 0x8a2   :  { %v3012_v45 = vpop.permute.xlu1 %3011 }
 0x8a3   :  { %v3028_v1 = vsel %vm3027_vm10, %v3025_v0, %v3012_v45  ;;  %v385_v45 = vld [vmem:[#allocation2 + $0xe8] sm:$0xff]  ;;  %v384_v0 = vld [vmem:[#allocation2 + $0xe0] sm:$0xff] }
 0x8a6   :  { %v3020_v7 = vpop.permute.xlu1 %3019 }
 0x8a7   :  { %v3031_v25 = vsel %vm3030_vm11, %v3028_v1, %v3020_v7  ;;  %v383_v1 = vld [vmem:[#allocation2 + $0xd8] sm:$0xff]  ;;  %v6360_v7 = vld [vmem:[%s8152_s3 + $0x7] ss:$0 sm:$0xff] }
 0x8a8   :  { %6740 = vmatprep.mubr.msk.f32.mxu1 %vm241_vm7, %v3031_v25 }
 0x8ac   :  { %v3014_v22 = vpop.permute.xlu1 %3013  ;;  %v3006_v59 = vpop.permute.xlu0 %3005 }
 0x8ad   :  { %v3026_v46 = vsel %vm1422_vm9, %v2997_v60, %v3006_v59  ;;  %v388_v60 = vld [vmem:[#allocation2 + $0x100] sm:$0xff] }
 0x8ae   :  { %v3029_v53 = vsel %vm3027_vm10, %v3026_v46, %v3014_v22 }
 0x8b0   :  { %v3022_v49 = vpop.permute.xlu1 %3021 }
 0x8b1   :  { %v3032_v63 = vsel %vm3030_vm11, %v3029_v53, %v3022_v49 }
 0x8b2   :  { %6741 = vmatmul.mubr.msk.f32.vlgmr.msra.gmra.mxu1 %vm241_vm7, %v3032_v63 }
 0x8b3   :  { %6755 = vmatpush3.msra.mxu1 %v390_v52 }
 0x8b4   :  { %6756 = vmatprep.subr.mxu1 %v389_v20 }
 0x8b5   :  { %6757 = vmatpush3.msra.mxu1 %v389_v20 }
 0x8b6   :  { %6758 = vmatprep.subr.mxu1 %v388_v60 }
 0x8b7   :  { %6759 = vmatpush3.msra.mxu1 %v388_v60 }
 0x8b8   :  { %6760 = vmatprep.subr.mxu1 %v387_v36 }
 0x8b9   :  { %6761 = vmatpush3.msra.mxu1 %v387_v36  ;;  %v6363_v36 = vld [vmem:[%s8152_s3 + $0xa] ss:$0 sm:$0xff] }
 0x8ba   :  { %6762 = vmatprep.subr.mxu1 %v386_v61 }
 0x8bb   :  { %6763 = vmatpush3.msra.mxu1 %v386_v61 }
 0x8bc   :  { %6764 = vmatprep.subr.mxu1 %v385_v45 }
 0x8bd   :  { %6765 = vmatpush3.msra.mxu1 %v385_v45 }
 0x8be   :  { %6766 = vmatprep.subr.mxu1 %v384_v0 }
 0x8bf   :  { %6767 = vmatpush3.msra.mxu1 %v384_v0 }
 0x8c0   :  { %6768 = vmatprep.subr.mxu1 %v383_v1 }
 0x8c1   :  { %6769 = vmatpush3.msra.mxu1 %v383_v1 }
 0x8c2   :  { %6794 = vmatprep.subr.mxu1 %v7085_v13 }
 0x972   :  { %v6742_v19 = vpop.f32.mrf.mxu1 }
 0x973   :  { %v3111_v23 = vadd.f32 %v6742_v19, %v6357_v15 }
 0x974   :  { %v3105_v24 = vpop.f32.mrf.mxu1 }
 0x975   :  { %v3106_v26 = vadd.f32 %v6357_v15, %v3105_v24  ;;  %v3115_v40 = vadd.f32 %v3111_v23, %v7158_v9 }
 0x977   :  { %v3119_v2 = vsel %vm241_vm7, %v3115_v40, 0.0  ;;  %v3114_v3 = vadd.f32 %v3106_v26, %v7156_v8  ;;  %v381_v8 = vld [vmem:[#allocation2 + $0xc8] sm:$0xff] }
 0x978   :  { %3120 = vadd.xlane.f32.xlu1 %v3119_v2  ;;  %6745 = vmatprep.subr.mxu0 %v381_v8 }
 0x979   :  { %v3116_v35 = vsel %vm241_vm7, %v3114_v3, 0.0  ;;  %6746 = vmatpush3.msra.mxu0 %v381_v8 }
 0x97a   :  { %3117 = vadd.xlane.f32.xlu0 %v3116_v35  ;;  %6747 = vmatprep.subr.mxu0 %v380_v48 }
 0x97b   :  { %6748 = vmatpush3.msra.mxu0 %v380_v48 }
 0x97c   :  { %6749 = vmatprep.subr.mxu0 %v379_v56 }
 0x97d   :  { %6750 = vmatpush3.msra.mxu0 %v379_v56 }
 0x97e   :  { %6773 = vmatprep.subr.mxu0 %v7030_v57 }
 0xa01   :  { %v3121_v27 = vpop.xlane.xlu1 %3120 }
 0xa02   :  { %v3123_v4 = vmul.f32 0.03125, %v3121_v27 }
 0xa03   :  { %v3118_v5 = vpop.xlane.xlu0 %3117 }
 0xa04   :  { %v3122_v11 = vmul.f32 0.03125, %v3118_v5  ;;  %v3125_v41 = vsub.f32 %v3115_v40, %v3123_v4 }
 0xa06   :  { %v3124_v28 = vsub.f32 %v3114_v3, %v3122_v11  ;;  %v3127_v47 = vmul.f32 %v3125_v41, %v3125_v41 }
 0xa08   :  { %v3126_v29 = vmul.f32 %v3124_v28, %v3124_v28  ;;  %v3131_v9 = vsel %vm241_vm7, %v3127_v47, 0.0 }
 0xa0a   :  { %v3128_v30 = vsel %vm241_vm7, %v3126_v29, 0.0  ;;  %v6361_v29 = vld [vmem:[%s8152_s3 + $0x8] ss:$0 sm:$0xff] }
 0xa0b   :  { %3129 = vadd.xlane.f32.xlu0 %v3128_v30 }
 0xa0f   :  { %3132 = vadd.xlane.f32.xlu0 %v3131_v9 }
 0xa94   :  { %v3130_v62 = vpop.xlane.xlu0 %3129 }
 0xa95   :  { %v3134_v33 = vmul.f32 0.03125, %v3130_v62 }
 0xa97   :  { %v3136_v14 = vadd.f32 1e-12, %v3134_v33 }
 0xa98   :  { %v3133_v34 = vpop.xlane.xlu0 %3132 }
 0xa99   :  { %6972 = vrsqrt.f32 %v3136_v14  ;;  %v3135_v37 = vmul.f32 0.03125, %v3133_v34 }
 0xa9b   :  { %v3137_v16 = vadd.f32 1e-12, %v3135_v37 }
 0xa9d   :  { %6974 = vrsqrt.f32 %v3137_v16 }
 0xaa6   :  { %v6973_v18 = vpop.eup %6972 }
 0xaa7   :  { %v3140_v17 = vmul.f32 %v6973_v18, %v3124_v28 }
 0xaa9   :  { %v3142_v10 = vmul.f32 %v6358_v12, %v3140_v17 }
 0xaaa   :  { %v6975_v39 = vpop.eup %6974 }
 0xaab   :  { %v3141_v42 = vmul.f32 %v6975_v39, %v3125_v41  ;;  %v7628_v43 = vadd.f32 %v6359_v21, %v3142_v10 }
 0xaad   :  { %6751 = vmatprep.mubr.msk.f32.mxu0 %vm241_vm7, %v7628_v43  ;;  %v3143_v44 = vmul.f32 %v6358_v12, %v3141_v42 }
 0xaaf   :  { %v7632_v50 = vadd.f32 %v6359_v21, %v3143_v44 }
 0xab1   :  { %6752 = vmatmul.mubr.msk.f32.vlgmr.msra.gmra.mxu0 %vm241_vm7, %v7632_v50 }
 0xab2   :  { %6774 = vmatpush3.msra.mxu0 %v7030_v57 }
 0xab3   :  { %6775 = vmatprep.subr.mxu0 %v7031_v51 }
 0xab4   :  { %6776 = vmatpush3.msra.mxu0 %v7031_v51 }
 0xab5   :  { %6777 = vmatprep.subr.mxu0 %v7032_v54 }
 0xab6   :  { %6778 = vmatpush3.msra.mxu0 %v7032_v54 }
 0xab7   :  { %6779 = vmatprep.subr.mxu0 %v7033_v58 }
 0xab8   :  { %6780 = vmatpush3.msra.mxu0 %v7033_v58  ;;  %v6362_v58 = vld [vmem:[%s8152_s3 + $0x9] ss:$0 sm:$0xff] }
 0xab9   :  { %6784 = vmatprep.subr.mxu0 %v7085_v13 }
 0xb71   :  { %v6753_v25 = vpop.f32.mrf.mxu0 }
 0xb72   :  { %v3224_v22 = vadd.f32 %v6753_v25, %v6360_v7 }
 0xb73   :  { %v3218_v59 = vpop.f32.mrf.mxu0 }
 0xb74   :  { %v3230_v46 = vmul.f32 0.044715, %v3224_v22  ;;  %v3219_v49 = vadd.f32 %v6360_v7, %v3218_v59  ;;  %v3228_v11 = vmul.f32 0.5, %v3224_v22  ;;  %v7034_v7 = vld [vmem:[%s8152_s3 + $0x3] ss:$0 sm:$0xff] }
 0xb76   :  { %v3232_v53 = vmul.f32 %v3230_v46, %v3224_v22  ;;  %v3229_v63 = vmul.f32 0.044715, %v3219_v49  ;;  %v3227_v4 = vmul.f32 0.5, %v3219_v49 }
 0xb78   :  { %v3234_v15 = vmul.f32 %v3232_v53, %v3224_v22  ;;  %v3231_v19 = vmul.f32 %v3229_v63, %v3219_v49 }
 0xb7a   :  { %v3236_v23 = vadd.f32 %v3234_v15, %v3224_v22  ;;  %v3233_v24 = vmul.f32 %v3231_v19, %v3219_v49 }
 0xb7c   :  { %v3238_v26 = vmul.f32 0.7978846, %v3236_v23  ;;  %v3235_v40 = vadd.f32 %v3233_v24, %v3219_v49 }
 0xb7e   :  { %6976 = vtanh.f32 %v3238_v26  ;;  %v3237_v2 = vmul.f32 0.7978846, %v3235_v40 }
 0xb80   :  { %6978 = vtanh.f32 %v3237_v2 }
 0xb8b   :  { %v6977_v3 = vpop.eup %6976 }
 0xb8c   :  { %v3242_v27 = vadd.f32 1.0, %v6977_v3 }
 0xb8d   :  { %v6979_v35 = vpop.eup %6978 }
 0xb8e   :  { %v3241_v5 = vadd.f32 1.0, %v6979_v35  ;;  %v3244_v28 = vmul.f32 %v3242_v27, %v3228_v11 }
 0xb90   :  { %v3243_v41 = vmul.f32 %v3241_v5, %v3227_v4 }
 0xb92   :  { %6770 = vmatprep.mubr.msk.f32.mxu1 %vm155_vm1, %v3243_v41 }
 0xb93   :  { %6771 = vmatmul.mubr.msk.f32.vlgmr.msra.gmra.mxu1 %vm155_vm1, %v3244_v28 }
 0xb94   :  { %6796 = vmatprep.mubr.msk.f32.mxu1 %vm7090_vm8, %v7085_v13 }
 0xc53   :  { %v6772_v30 = vpop.f32.mrf.mxu1 }
 0xc54   :  { %v3323_v47 = vadd.f32 %v6772_v30, %v6361_v29 }
 0xc55   :  { %v3317_v9 = vpop.f32.mrf.mxu1 }
 0xc56   :  { %v3318_v32 = vadd.f32 %v6361_v29, %v3317_v9  ;;  %v3327_v8 = vadd.f32 %v3323_v47, %v7632_v50 }
 0xc58   :  { %v3331_v48 = vsel %vm241_vm7, %v3327_v8, 0.0  ;;  %v3326_v56 = vadd.f32 %v3318_v32, %v7628_v43 }
 0xc59   :  { %3332 = vadd.xlane.f32.xlu0 %v3331_v48 }
 0xc5a   :  { %v3328_v57 = vsel %vm241_vm7, %v3326_v56, 0.0 }
 0xc5b   :  { %3329 = vadd.xlane.f32.xlu1 %v3328_v57 }
 0xce2   :  { %v3333_v62 = vpop.xlane.xlu0 %3332 }
 0xce3   :  { %v3335_v33 = vmul.f32 0.03125, %v3333_v62 }
 0xce4   :  { %v3330_v14 = vpop.xlane.xlu1 %3329 }
 0xce5   :  { %v3337_v34 = vsub.f32 %v3327_v8, %v3335_v33  ;;  %v3334_v37 = vmul.f32 0.03125, %v3330_v14 }
 0xce7   :  { %v3336_v16 = vsub.f32 %v3326_v56, %v3334_v37  ;;  %v3339_v18 = vmul.f32 %v3337_v34, %v3337_v34 }
 0xce9   :  { %v3343_v12 = vsel %vm241_vm7, %v3339_v18, 0.0  ;;  %v3338_v17 = vmul.f32 %v3336_v16, %v3336_v16 }
 0xcea   :  { %3344 = vadd.xlane.f32.xlu0 %v3343_v12 }
 0xceb   :  { %v3340_v21 = vsel %vm241_vm7, %v3338_v17, 0.0 }
 0xcec   :  { %3341 = vadd.xlane.f32.xlu1 %v3340_v21 }
 0xd73   :  { %v3345_v10 = vpop.xlane.xlu0 %3344 }
 0xd74   :  { %v3347_v39 = vmul.f32 0.03125, %v3345_v10 }
 0xd75   :  { %v3342_v42 = vpop.xlane.xlu1 %3341 }
 0xd76   :  { %v3349_v43 = vadd.f32 1e-12, %v3347_v39  ;;  %v3346_v44 = vmul.f32 0.03125, %v3342_v42 }
 0xd78   :  { %6980 = vrsqrt.f32 %v3349_v43  ;;  %v3348_v50 = vadd.f32 1e-12, %v3346_v44 }
 0xd7a   :  { %6982 = vrsqrt.f32 %v3348_v50 }
 0xd85   :  { %v6981_v51 = vpop.eup %6980 }
 0xd86   :  { %v3353_v54 = vmul.f32 %v6981_v51, %v3337_v34 }
 0xd87   :  { %v6983_v52 = vpop.eup %6982 }
 0xd88   :  { %v3352_v20 = vmul.f32 %v6983_v52, %v3336_v16  ;;  %v3355_v60 = vmul.f32 %v6362_v58, %v3353_v54 }
 0xd8a   :  { %v3354_v61 = vmul.f32 %v6362_v58, %v3352_v20  ;;  %v7662_v0 = vadd.f32 %v6363_v36, %v3355_v60 }
 0xd8c   :  { %v7660_v45 = vadd.f32 %v6363_v36, %v3354_v61 }
 0xd8e   :  { %6781 = vmatprep.mubr.msk.f32.mxu0 %vm241_vm7, %v7660_v45 }
 0xd8f   :  { %6782 = vmatmul.mubr.msk.f32.vlgmr.msra.gmra.mxu0 %vm241_vm7, %v7662_v0 }
 0xd90   :  { %6786 = vmatprep.mubr.msk.f32.mxu0 %vm7090_vm8, %v7085_v13 }
 0xe4f   :  { %v6783_v1 = vpop.f32.mrf.mxu0 }
 0xe50   :  { %v7673_v25 = vadd.f32 %v7034_v7, %v6783_v1 }
 0xe51   :  { %v3430_v22 = vpop.f32.mrf.mxu0 }
 0xe52   :  { %v7675_v59 = vadd.f32 %v7034_v7, %v3430_v22  ;;  %3443 = vrot.lane.b32.xlu1 %v7673_v25, %s7086_s6 }
 0xe54   :  { %3447 = vrot.lane.b32.xlu0 %v7675_v59, %s7087_s7 }
 0xe56   :  { %3441 = vrot.lane.b32.xlu1 %v7675_v59, %s7086_s6 }
 0xe58   :  { %3449 = vrot.lane.b32.xlu0 %v7673_v25, %s7087_s7 }
 0xe5a   :  { %3453 = vrot.lane.b32.xlu1 %v7675_v59, %s7088_s8 }
 0xe5c   :  { %3733 = vrot.lane.b32.xlu0 %v7673_v25, %s7089_s9 }
 0xe5e   :  { %3455 = vrot.lane.b32.xlu1 %v7673_v25, %s7088_s8 }
 0xe60   :  { %3731 = vrot.lane.b32.xlu0 %v7675_v59, %s7089_s9 }
 0xec4   :  { %v7693_v46 = vpop.permute.xlu1 %3443 }
 0xec5   :  { %3737 = vrot.lane.b32.xlu1 %v7693_v46, %s7089_s9 }
 0xec6   :  { %v7697_v49 = vpop.permute.xlu0 %3447 }
 0xec7   :  { %3739 = vrot.lane.b32.xlu0 %v7697_v49, %s7089_s9  ;;  %v3459_v26 = vcombine.low %v7675_v59, %v7697_v49  ;;  %v3460_v40 = vcombine.high %v7675_v59, %v7697_v49 }
 0xec8   :  { %v7701_v53 = vpop.permute.xlu1 %3441 }
 0xec9   :  { %3735 = vrot.lane.b32.xlu1 %v7701_v53, %s7089_s9  ;;  %v3467_v35 = vrot.slane %v3459_v26, %v7223_v31  ;;  %v3474_v27 = vrot.slane %v3460_v40, %v7223_v31 }
 0xeca   :  { %v7705_v63 = vpop.permute.xlu0 %3449 }
 0xecb   :  { %3741 = vrot.lane.b32.xlu0 %v7705_v63, %s7089_s9  ;;  %v3527_v29 = vcombine.low %v7673_v25, %v7705_v63  ;;  %v3528_v56 = vcombine.high %v7673_v25, %v7705_v63 }
 0xecc   :  { %v7709_v15 = vpop.permute.xlu1 %3453 }
 0xecd   :  { %3743 = vrot.lane.b32.xlu1 %v7709_v15, %s7089_s9  ;;  %v3475_v23 = vcombine.low %v7701_v53, %v7709_v15  ;;  %v3476_v24 = vcombine.high %v7701_v53, %v7709_v15  ;;  %v3535_v62 = vrot.slane %v3527_v29, %v7223_v31  ;;  %v3542_v18 = vrot.slane %v3528_v56, %v7223_v31 }
 0xece   :  { %v7733_v30 = vpop.permute.xlu0 %3733 }
 0xecf   :  { %v3483_v2 = vrot.slane %v3475_v23, %v7223_v31  ;;  %v3490_v3 = vrot.slane %v3476_v24, %v7223_v31 }
 0xed0   :  { %v7713_v19 = vpop.permute.xlu1 %3455 }
 0xed1   :  { %3745 = vrot.lane.b32.xlu1 %v7713_v19, %s7089_s9  ;;  %v3491_v4 = vcombine.low %v3467_v35, %v3483_v2  ;;  %v3492_v5 = vcombine.high %v3467_v35, %v3483_v2  ;;  %v3507_v11 = vcombine.low %v3474_v27, %v3490_v3  ;;  %v3508_v41 = vcombine.high %v3474_v27, %v3490_v3 }
 0xed2   :  { %v3543_v28 = vcombine.low %v7693_v46, %v7713_v19  ;;  %v3544_v47 = vcombine.high %v7693_v46, %v7713_v19  ;;  %v3732_v12 = vpop.permute.xlu0 %3731 }
 0xed3   :  { %v3499_v9 = vrot.slane %v3491_v4, %v7234_v38  ;;  %v3506_v32 = vrot.slane %v3492_v5, %v7234_v38  ;;  %v3515_v8 = vrot.slane %v3507_v11, %v7234_v38  ;;  %v3522_v48 = vrot.slane %v3508_v41, %v7234_v38 }
 0xed4   :  { %v3551_v57 = vrot.slane %v3543_v28, %v7223_v31  ;;  %v3558_v33 = vrot.slane %v3544_v47, %v7223_v31 }
 0xed5   :  { %v3595_v14 = vcombine.low %v3499_v9, %v3506_v32  ;;  %v6414_v34 = vcombine.high %v3499_v9, %v3506_v32  ;;  %v3611_v37 = vcombine.low %v3515_v8, %v3522_v48  ;;  %v6415_v16 = vcombine.high %v3515_v8, %v3522_v48 }
 0xed6   :  { %v3559_v17 = vcombine.low %v3535_v62, %v3551_v57  ;;  %v3560_v21 = vcombine.high %v3535_v62, %v3551_v57  ;;  %v3575_v39 = vcombine.low %v3542_v18, %v3558_v33  ;;  %v3576_v42 = vcombine.high %v3542_v18, %v3558_v33 }
 0xed7   :  { %v7748_v43 = vrot.slane %v3595_v14, %v7223_v31  ;;  %v7751_v44 = vrot.slane %v6414_v34, %v7223_v31  ;;  %v7754_v50 = vrot.slane %v3611_v37, %v7223_v31  ;;  %v7757_v51 = vrot.slane %v6415_v16, %v7223_v31 }
 0xed8   :  { %v3567_v58 = vrot.slane %v3559_v17, %v7234_v38  ;;  %v3574_v52 = vrot.slane %v3560_v21, %v7234_v38  ;;  %v3583_v60 = vrot.slane %v3575_v39, %v7234_v38  ;;  %v3590_v36 = vrot.slane %v3576_v42, %v7234_v38 }
 0xed9   :  { %v3627_v61 = vcombine.low %v7748_v43, %v7751_v44  ;;  %v3643_v1 = vcombine.low %v7754_v50, %v7757_v51  ;;  %v3628_v35 = vcombine.high %v7748_v43, %v7751_v44  ;;  %v3644_v27 = vcombine.high %v7754_v50, %v7757_v51 }
 0xeda   :  { %v3663_v23 = vcombine.low %v3567_v58, %v3574_v52  ;;  %v6416_v24 = vcombine.high %v3567_v58, %v3574_v52  ;;  %v3679_v4 = vcombine.low %v3583_v60, %v3590_v36  ;;  %v6417_v5 = vcombine.high %v3583_v60, %v3590_v36 }
 0xedb   :  { %v7772_v11 = vrot.slane %v3627_v61, %v7234_v38  ;;  %v7775_v41 = vrot.slane %v3643_v1, %v7234_v38 }
 0xedc   :  { %v7782_v32 = vrot.slane %v3663_v23, %v7223_v31  ;;  %v7785_v8 = vrot.slane %v6416_v24, %v7223_v31  ;;  %v7790_v37 = vrot.slane %v3679_v4, %v7223_v31  ;;  %v7793_v16 = vrot.slane %v6417_v5, %v7223_v31 }
 0xf37   :  { %v3738_v10 = vpop.permute.xlu1 %3737 }
 0xf39   :  { %v3740_v54 = vpop.permute.xlu0 %3739 }
 0xf3a   :  { %v3755_v7 = vcombine.low %v3732_v12, %v3740_v54  ;;  %v3756_v22 = vcombine.high %v3732_v12, %v3740_v54 }
 0xf3b   :  { %v3736_v20 = vpop.permute.xlu1 %3735 }
 0xf3c   :  { %v3763_v28 = vrot.slane %v3755_v7, %v7223_v31  ;;  %v3770_v29 = vrot.slane %v3756_v22, %v7223_v31 }
 0xf3d   :  { %v3742_v40 = vpop.permute.xlu0 %3741 }
 0xf3e   :  { %v3823_v48 = vcombine.low %v7733_v30, %v3742_v40  ;;  %v3824_v56 = vcombine.high %v7733_v30, %v3742_v40 }
 0xf3f   :  { %v3744_v26 = vpop.permute.xlu1 %3743 }
 0xf40   :  { %v3771_v2 = vcombine.low %v3736_v20, %v3744_v26  ;;  %v3772_v3 = vcombine.high %v3736_v20, %v3744_v26  ;;  %v3831_v42 = vrot.slane %v3823_v48, %v7223_v31  ;;  %v3838_v54 = vrot.slane %v3824_v56, %v7223_v31 }
 0xf42   :  { %v3779_v47 = vrot.slane %v3771_v2, %v7223_v31  ;;  %v3786_v9 = vrot.slane %v3772_v3, %v7223_v31 }
 0xf43   :  { %v3746_v57 = vpop.permute.xlu1 %3745 }
 0xf44   :  { %v3787_v62 = vcombine.low %v3763_v28, %v3779_v47  ;;  %v3788_v33 = vcombine.high %v3763_v28, %v3779_v47  ;;  %v3803_v14 = vcombine.low %v3770_v29, %v3786_v9  ;;  %v3804_v34 = vcombine.high %v3770_v29, %v3786_v9 }
 0xf45   :  { %v3839_v18 = vcombine.low %v3738_v10, %v3746_v57  ;;  %v3840_v12 = vcombine.high %v3738_v10, %v3746_v57 }
 0xf46   :  { %v3795_v17 = vrot.slane %v3787_v62, %v7234_v38  ;;  %v3802_v21 = vrot.slane %v3788_v33, %v7234_v38  ;;  %v3811_v39 = vrot.slane %v3803_v14, %v7234_v38  ;;  %v3818_v30 = vrot.slane %v3804_v34, %v7234_v38 }
 0xf47   :  { %v3847_v58 = vrot.slane %v3839_v18, %v7223_v31  ;;  %v3854_v52 = vrot.slane %v3840_v12, %v7223_v31  ;;  %v3695_v34 = vcombine.low %v7782_v32, %v7785_v8  ;;  %v3711_v18 = vcombine.low %v7790_v37, %v7793_v16 }
 0xf48   :  { %v3891_v20 = vcombine.low %v3795_v17, %v3802_v21  ;;  %v6418_v60 = vcombine.high %v3795_v17, %v3802_v21  ;;  %v3907_v36 = vcombine.low %v3811_v39, %v3818_v30  ;;  %v6419_v10 = vcombine.high %v3811_v39, %v3818_v30 }
 0xf49   :  { %v3855_v61 = vcombine.low %v3831_v42, %v3847_v58  ;;  %v3856_v1 = vcombine.high %v3831_v42, %v3847_v58  ;;  %v3871_v7 = vcombine.low %v3838_v54, %v3854_v52  ;;  %v3872_v22 = vcombine.high %v3838_v54, %v3854_v52 }
 0xf4a   :  { %v3898_v23 = vrot.slane %v3891_v20, %v7223_v31  ;;  %v3906_v24 = vrot.slane %v6418_v60, %v7223_v31  ;;  %v3914_v26 = vrot.slane %v3907_v36, %v7223_v31  ;;  %v3922_v40 = vrot.slane %v6419_v10, %v7223_v31 }
 0xf4b   :  { %v3863_v2 = vrot.slane %v3855_v61, %v7234_v38  ;;  %v3870_v3 = vrot.slane %v3856_v1, %v7234_v38  ;;  %v3879_v4 = vrot.slane %v3871_v7, %v7234_v38  ;;  %v3886_v5 = vrot.slane %v3872_v22, %v7234_v38 }
 0xf4c   :  { %v3923_v28 = vcombine.low %v3898_v23, %v3906_v24  ;;  %v3924_v29 = vcombine.high %v3898_v23, %v3906_v24  ;;  %v3939_v47 = vcombine.low %v3914_v26, %v3922_v40  ;;  %v3940_v9 = vcombine.high %v3914_v26, %v3922_v40 }
 0xf4d   :  { %v3959_v48 = vcombine.low %v3863_v2, %v3870_v3  ;;  %v6420_v56 = vcombine.high %v3863_v2, %v3870_v3  ;;  %v3975_v57 = vcombine.low %v3879_v4, %v3886_v5  ;;  %v6421_v62 = vcombine.high %v3879_v4, %v3886_v5 }
 0xf4e   :  { %v3931_v33 = vrot.slane %v3923_v28, %v7234_v38  ;;  %v3947_v14 = vrot.slane %v3939_v47, %v7234_v38  ;;  %v3938_v54 = vrot.slane %v3924_v29, %v7234_v38  ;;  %v3954_v58 = vrot.slane %v3940_v9, %v7234_v38 }
 0xf4f   :  { %v3966_v12 = vrot.slane %v3959_v48, %v7223_v31  ;;  %v3974_v17 = vrot.slane %v6420_v56, %v7223_v31  ;;  %v3982_v21 = vrot.slane %v3975_v57, %v7223_v31  ;;  %v3990_v39 = vrot.slane %v6421_v62, %v7223_v31 }
 0xf50   :  { %v3955_v30 = vcombine.low %v3931_v33, %v3947_v14  ;;  %v3956_v42 = vcombine.high %v3931_v33, %v3947_v14  ;;  %v3659_v60 = vcombine.low %v7772_v11, %v7775_v41  ;;  %v3642_v36 = vrot.slane %v3628_v35, %v7234_v38 }
 0xf51   :  { %v3991_v52 = vcombine.low %v3966_v12, %v3974_v17  ;;  %v4007_v20 = vcombine.low %v3982_v21, %v3990_v39  ;;  %v3658_v10 = vrot.slane %v3644_v27, %v7234_v38  ;;  %v3660_v61 = vcombine.high %v7772_v11, %v7775_v41 }
 0xf52   :  { %6785 = vmatpush3.xpose.msk.msra.mxu0 %vm1422_vm9, %v3955_v30  ;;  %6795 = vmatpush3.xpose.msk.msra.mxu1 %vm1422_vm9, %v3956_v42  ;;  %v3957_v22 = vcombine.low %v3938_v54, %v3954_v58  ;;  %v3703_v43 = vrot.slane %v3695_v34, %v7234_v38  ;;  %v3719_v44 = vrot.slane %v3711_v18, %v7234_v38 }
 0xf53   :  { %6789 = vmatprep.subr.mxu0 %v7085_v13  ;;  %6804 = vmatprep.subr.mxu1 %v7085_v13  ;;  %v3999_v1 = vrot.slane %v3991_v52, %v7234_v38  ;;  %v4015_v7 = vrot.slane %v4007_v20, %v7234_v38  ;;  %v3992_v35 = vcombine.high %v3966_v12, %v3974_v17 }
 0xf54   :  { %v4008_v23 = vcombine.high %v3982_v21, %v3990_v39  ;;  %v3661_v51 = vcombine.low %v3642_v36, %v3658_v10  ;;  %v3696_v27 = vcombine.high %v7782_v32, %v7785_v8  ;;  %v3727_v11 = vcombine.low %v3703_v43, %v3719_v44 }
 0xf55   :  { %6787 = vmatmul.mubr.msk.f32.vlgmr.msra.gmra.mxu0 %vm1422_vm9, %v3659_v60  ;;  %6797 = vmatmul.mubr.msk.f32.vlgmr.msra.gmra.mxu1 %vm1422_vm9, %v3660_v61  ;;  %v4023_v50 = vcombine.low %v3999_v1, %v4015_v7  ;;  %v3958_v41 = vcombine.high %v3938_v54, %v3954_v58  ;;  %v3712_v24 = vcombine.high %v7790_v37, %v7793_v16 }
 0xf56   :  { %6805 = vmatpush3.xpose.msk.msra.mxu1 %vm1422_vm9, %v3957_v22  ;;  %6791 = vmatprep.mubr.msk.f32.mxu0 %vm7090_vm8, %v7085_v13  ;;  %v4024_v26 = vcombine.high %v3999_v1, %v4015_v7  ;;  %v4006_v40 = vrot.slane %v3992_v35, %v7234_v38  ;;  %v4022_v2 = vrot.slane %v4008_v23, %v7234_v38 }
 0xf57   :  { %6790 = vmatpush3.xpose.msk.msra.mxu0 %vm1422_vm9, %v4023_v50  ;;  %6806 = vmatprep.mubr.msk.f32.mxu1 %vm7090_vm8, %v7085_v13  ;;  %v3662_v32 = vcombine.high %v3642_v36, %v3658_v10  ;;  %v3728_v8 = vcombine.high %v3703_v43, %v3719_v44  ;;  %v3710_v37 = vrot.slane %v3696_v27, %v7234_v38 }
 0xf58   :  { %6799 = vmatprep.subr.mxu0 %v7085_v13  ;;  %6814 = vmatprep.subr.mxu1 %v7085_v13  ;;  %v3726_v16 = vrot.slane %v3712_v24, %v7234_v38  ;;  %v4025_v3 = vcombine.low %v4006_v40, %v4022_v2  ;;  %v4026_v5 = vcombine.high %v4006_v40, %v4022_v2 }
 0xf59   :  { %6807 = vmatmul.mubr.msk.f32.vlgmr.msra.gmra.mxu1 %vm1422_vm9, %v3661_v51 }
 0xf5a   :  { %6792 = vmatmul.mubr.msk.f32.vlgmr.msra.gmra.mxu0 %vm1422_vm9, %v3727_v11  ;;  %6815 = vmatpush3.xpose.msk.msra.mxu1 %vm1422_vm9, %v3958_v41  ;;  %v3729_v4 = vcombine.low %v3710_v37, %v3726_v16  ;;  %v3730_v28 = vcombine.high %v3710_v37, %v3726_v16 }
 0xf5b   :  { %6800 = vmatpush3.xpose.msk.msra.mxu0 %vm1422_vm9, %v4024_v26  ;;  %6801 = vmatprep.mubr.msk.f32.mxu0 %vm7090_vm8, %v7085_v13 }
 0xf5c   :  { %6816 = vmatprep.mubr.msk.f32.mxu1 %vm7090_vm8, %v7085_v13  ;;  %6809 = vmatprep.subr.mxu0 %v7085_v13 }
 0xf5d   :  { %6817 = vmatmul.mubr.msk.f32.vlgmr.msra.gmra.mxu1 %vm1422_vm9, %v3662_v32  ;;  %6824 = vmatprep.subr.mxu1 %v7085_v13 }
 0xf5e   :  { %6802 = vmatmul.mubr.msk.f32.vlgmr.msra.gmra.mxu0 %vm1422_vm9, %v3728_v8  ;;  %6826 = vmatprep.mubr.msk.f32.mxu1 %vm7090_vm8, %v7085_v13 }
 0xf5f   :  { %6810 = vmatpush3.xpose.msk.msra.mxu0 %vm1422_vm9, %v4025_v3  ;;  %6811 = vmatprep.mubr.msk.f32.mxu0 %vm7090_vm8, %v7085_v13 }
 0xf60   :  { %6819 = vmatprep.subr.mxu0 %v7085_v13 }
 0xf62   :  { %6812 = vmatmul.mubr.msk.f32.vlgmr.msra.gmra.mxu0 %vm1422_vm9, %v3729_v4 }
 0xf63   :  { %6820 = vmatpush3.xpose.msk.msra.mxu0 %vm1422_vm9, %v4026_v5  ;;  %6821 = vmatprep.mubr.msk.f32.mxu0 %vm7090_vm8, %v7085_v13 }
 0xf64   :  { %6829 = vmatprep.subr.mxu0 %v7085_v13 }
 0xf66   :  { %6822 = vmatmul.mubr.msk.f32.vlgmr.msra.gmra.mxu0 %vm1422_vm9, %v3730_v28 }
 0xf67   :  { %6831 = vmatprep.mubr.msk.f32.mxu0 %vm7090_vm8, %v7085_v13 }
0x1015   :  { %v4395_v29 = vpop.f32.mrf.mxu0  ;;  %v4547_v47 = vpop.f32.mrf.mxu1 }
0x1016   :  { %v4931_v9 = vmul.f32 0.35355338, %v4395_v29  ;;  %v4933_v48 = vmul.f32 0.35355338, %v4547_v47 }
0x1017   :  { %v6788_v56 = vpop.f32.mrf.mxu0  ;;  %v6798_v57 = vpop.f32.mrf.mxu1 }
0x1018   :  { %v4939_v62 = vadd.f32 %v4931_v9, %v7399_v55  ;;  %v4941_v18 = vadd.f32 %v4933_v48, %v7399_v55 }
0x1019   :  { %v4699_v33 = vpop.f32.mrf.mxu1 }
0x101a   :  { %v4471_v14 = vpop.f32.mrf.mxu0  ;;  %v4947_v34 = vsel %vm1422_vm9, %v4939_v62, -inf  ;;  %v4935_v17 = vmul.f32 0.35355338, %v4699_v33  ;;  %v4953_v58 = vsel %vm1422_vm9, %v4941_v18, -inf }
0x101b   :  { %v4932_v12 = vmul.f32 0.35355338, %v4471_v14  ;;  %v6808_v21 = vpop.f32.mrf.mxu1  ;;  %4948 = vmax.xlane.f32.xlu0 %v4947_v34 }
0x101c   :  { %v6793_v39 = vpop.f32.mrf.mxu0  ;;  %v4943_v10 = vadd.f32 %v4935_v17, %v7399_v55 }
0x101d   :  { %v4851_v30 = vpop.f32.mrf.mxu1  ;;  %v4940_v42 = vadd.f32 %v4932_v12, %v7402_v6 }
0x101e   :  { %v4623_v54 = vpop.f32.mrf.mxu0  ;;  %v4937_v20 = vmul.f32 0.35355338, %v4851_v30  ;;  %v4959_v22 = vsel %vm1422_vm9, %v4943_v10, -inf }
0x101f   :  { %v4934_v52 = vmul.f32 0.35355338, %v4623_v54  ;;  %v6818_v60 = vpop.f32.mrf.mxu1  ;;  %4954 = vmax.xlane.f32.xlu0 %v4953_v58  ;;  %v4950_v36 = vsel %vm1422_vm9, %v4940_v42, -inf }
0x1020   :  { %4951 = vmax.xlane.f32.xlu1 %v4950_v36  ;;  %v6803_v61 = vpop.f32.mrf.mxu0  ;;  %v7898_v44 = vadd.f32 %v4937_v20, %v7399_v55 }
0x1021   :  { %v4942_v1 = vadd.f32 %v4934_v52, %v7402_v6 }
0x1022   :  { %v4775_v7 = vpop.f32.mrf.mxu0  ;;  %v4965_v50 = vsel %vm1422_vm9, %v7898_v44, -inf }
0x1023   :  { %v4956_v43 = vsel %vm1422_vm9, %v4942_v1, -inf  ;;  %v4936_v55 = vmul.f32 0.35355338, %v4775_v7 }
0x1024   :  { %4960 = vmax.xlane.f32.xlu1 %v4959_v22  ;;  %4957 = vmax.xlane.f32.xlu0 %v4956_v43  ;;  %v6813_v35 = vpop.f32.mrf.mxu0 }
0x1025   :  { %v7915_v11 = vadd.f32 %v4936_v55, %v7402_v6 }
0x1026   :  { %v4927_v23 = vpop.f32.mrf.mxu0 }
0x1027   :  { %v4938_v27 = vmul.f32 0.35355338, %v4927_v23 }
0x1028   :  { %4966 = vmax.xlane.f32.xlu1 %v4965_v50  ;;  %v6823_v51 = vpop.f32.mrf.mxu0 }
0x1039   :  { %4031 = vrot.lane.b32.xlu1 %v7701_v53, %s7094_s1  ;;  %v7920_v53 = vadd.f32 %v4938_v27, %v7402_v6 }
0x103a   :  { %4027 = vrot.lane.b32.xlu0 %v7675_v59, %s7094_s1  ;;  %v4962_v59 = vsel %vm1422_vm9, %v7915_v11, -inf }
0x103d   :  { %4035 = vrot.lane.b32.xlu1 %v7697_v49, %s7094_s1  ;;  %v4968_v49 = vsel %vm1422_vm9, %v7920_v53, -inf }
0x103e   :  { %4039 = vrot.lane.b32.xlu0 %v7709_v15, %s7094_s1 }
0x1042   :  { %4029 = vrot.lane.b32.xlu0 %v7673_v25, %s7094_s1 }
0x1046   :  { %4033 = vrot.lane.b32.xlu0 %v7693_v46, %s7094_s1 }
0x1065   :  { %4963 = vmax.xlane.f32.xlu0 %v4962_v59 }
0x1069   :  { %4969 = vmax.xlane.f32.xlu0 %v4968_v49 }
0x107f   :  { %4037 = vrot.lane.b32.xlu0 %v7705_v63, %s7094_s1 }
0x10a4   :  { %v4949_v25 = vpop.xlane.xlu0 %4948 }
0x10a5   :  { %v4971_v46 = vsub.f32 %v4939_v62, %v4949_v25 }
0x10a7   :  { %v4979_v15 = vmul.f32 1.442695, %v4971_v46 }
0x10a8   :  { %v4955_v41 = vpop.xlane.xlu0 %4954 }
0x10a9   :  { %6984 = vpow2.f32 %v4979_v15  ;;  %v4973_v24 = vsub.f32 %v4941_v18, %v4955_v41  ;;  %v4952_v26 = vpop.xlane.xlu1 %4951 }
0x10aa   :  { %v4972_v40 = vsub.f32 %v4940_v42, %v4952_v26 }
0x10ab   :  { %v4983_v2 = vmul.f32 1.442695, %v4973_v24 }
0x10ac   :  { %v4981_v32 = vmul.f32 1.442695, %v4972_v40 }
0x10ad   :  { %6986 = vpow2.f32 %v4983_v2  ;;  %v4961_v6 = vpop.xlane.xlu1 %4960  ;;  %v4958_v8 = vpop.xlane.xlu0 %4957 }
0x10ae   :  { %6988 = vpow2.f32 %v4981_v32  ;;  %v4975_v37 = vsub.f32 %v4943_v10, %v4961_v6  ;;  %v4974_v16 = vsub.f32 %v4942_v1, %v4958_v8 }
0x10b0   :  { %v4987_v3 = vmul.f32 1.442695, %v4975_v37  ;;  %v4985_v4 = vmul.f32 1.442695, %v4974_v16 }
0x10b1   :  { %v4967_v5 = vpop.xlane.xlu1 %4966  ;;  %v4028_v63 = vpop.permute.xlu0 %4027 }
0x10b2   :  { %6990 = vpow2.f32 %v4987_v3  ;;  %v4977_v37 = vsub.f32 %v7898_v44, %v4967_v5 }
0x10b3   :  { %6992 = vpow2.f32 %v4985_v4 }
0x10b4   :  { %v4991_v16 = vmul.f32 1.442695, %v4977_v37 }
0x10b5   :  { %v4032_v28 = vpop.permute.xlu1 %4031  ;;  %v4040_v29 = vpop.permute.xlu0 %4039 }
0x10b6   :  { %v7926_v47 = vpop.eup %6984  ;;  %v4067_v9 = vcombine.low %v4032_v28, %v4040_v29  ;;  %v4068_v56 = vcombine.high %v4032_v28, %v4040_v29  ;;  %6994 = vpow2.f32 %v4991_v16 }
0x10b7   :  { %v4995_v48 = vsel %vm1422_vm9, %v7926_v47, 0.0 }
0x10b8   :  { %4996 = vadd.xlane.f32.xlu1 %v4995_v48  ;;  %v4075_v18 = vrot.slane %v4067_v9, %v7223_v31  ;;  %v4082_v17 = vrot.slane %v4068_v56, %v7223_v31 }
0x10b9   :  { %v4036_v57 = vpop.permute.xlu1 %4035  ;;  %v4030_v3 = vpop.permute.xlu0 %4029 }
0x10ba   :  { %v7930_v62 = vpop.eup %6986  ;;  %v4051_v33 = vcombine.low %v4028_v63, %v4036_v57  ;;  %v4052_v14 = vcombine.high %v4028_v63, %v4036_v57 }
0x10bb   :  { %v7932_v34 = vpop.eup %6988  ;;  %v5001_v12 = vsel %vm1422_vm9, %v7930_v62, 0.0 }
0x10bc   :  { %v4059_v21 = vrot.slane %v4051_v33, %v7223_v31  ;;  %v4066_v39 = vrot.slane %v4052_v14, %v7223_v31  ;;  %5002 = vadd.xlane.f32.xlu1 %v5001_v12  ;;  %v4998_v30 = vsel %vm1422_vm9, %v7932_v34, 0.0 }
0x10bd   :  { %4999 = vadd.xlane.f32.xlu0 %v4998_v30  ;;  %v4034_v4 = vpop.permute.xlu0 %4033 }
0x10be   :  { %v4083_v42 = vcombine.low %v4059_v21, %v4075_v18  ;;  %v4084_v54 = vcombine.high %v4059_v21, %v4075_v18  ;;  %v4099_v58 = vcombine.low %v4066_v39, %v4082_v17  ;;  %v4100_v52 = vcombine.high %v4066_v39, %v4082_v17 }
0x10bf   :  { %v7942_v20 = vpop.eup %6990 }
0x10c0   :  { %v7944_v60 = vpop.eup %6992  ;;  %v4091_v36 = vrot.slane %v4083_v42, %v7234_v38  ;;  %v4098_v10 = vrot.slane %v4084_v54, %v7234_v38  ;;  %v4107_v61 = vrot.slane %v4099_v58, %v7234_v38  ;;  %v4114_v1 = vrot.slane %v4100_v52, %v7234_v38 }
0x10c1   :  { %v5007_v7 = vsel %vm1422_vm9, %v7942_v20, 0.0  ;;  %v5004_v22 = vsel %vm1422_vm9, %v7944_v60, 0.0 }
0x10c2   :  { %v4187_v43 = vcombine.low %v4091_v36, %v4098_v10  ;;  %v6422_v35 = vcombine.high %v4091_v36, %v4098_v10  ;;  %v4203_v23 = vcombine.low %v4107_v61, %v4114_v1  ;;  %v6423_v50 = vcombine.high %v4107_v61, %v4114_v1  ;;  %5008 = vadd.xlane.f32.xlu1 %v5007_v7 }
0x10c3   :  { %5005 = vadd.xlane.f32.xlu0 %v5004_v22  ;;  %v7976_v56 = vpop.eup %6994 }
0x10c4   :  { %v4194_v51 = vrot.slane %v4187_v43, %v7223_v31  ;;  %v4202_v55 = vrot.slane %v6422_v35, %v7223_v31  ;;  %v4210_v27 = vrot.slane %v4203_v23, %v7223_v31  ;;  %v4218_v59 = vrot.slane %v6423_v50, %v7223_v31 }
0x10c6   :  { %v4219_v49 = vcombine.low %v4194_v51, %v4202_v55  ;;  %v4235_v25 = vcombine.low %v4210_v27, %v4218_v59  ;;  %v4220_v46 = vcombine.high %v4194_v51, %v4202_v55  ;;  %v4236_v15 = vcombine.high %v4210_v27, %v4218_v59 }
0x10c8   :  { %v4227_v41 = vrot.slane %v4219_v49, %v7234_v38  ;;  %v4243_v24 = vrot.slane %v4235_v25, %v7234_v38  ;;  %v7961_v26 = vrot.slane %v4220_v46, %v7234_v38  ;;  %v7964_v40 = vrot.slane %v4236_v15, %v7234_v38 }
0x10ca   :  { %v4251_v2 = vcombine.low %v4227_v41, %v4243_v24  ;;  %v4252_v32 = vcombine.high %v4227_v41, %v4243_v24  ;;  %v4253_v6 = vcombine.low %v7961_v26, %v7964_v40  ;;  %v4254_v8 = vcombine.high %v7961_v26, %v7964_v40 }
0x10cc   :  { %6825 = vmatpush3.msra.mxu1 %v4251_v2 }
0x10cd   :  { %6834 = vmatprep.subr.mxu1 %v7085_v13 }
0x10d9   :  { %4041 = vrot.lane.b32.xlu0 %v7713_v19, %s7094_s1  ;;  %v5013_v19 = vsel %vm1422_vm9, %v7976_v56, 0.0 }
0x10ee   :  { %v4964_v63 = vpop.xlane.xlu0 %4963 }
0x10ef   :  { %v4976_v28 = vsub.f32 %v7915_v11, %v4964_v63 }
0x10f1   :  { %v4989_v29 = vmul.f32 1.442695, %v4976_v28 }
0x10f2   :  { %v4970_v9 = vpop.xlane.xlu0 %4969 }
0x10f3   :  { %6996 = vpow2.f32 %v4989_v29  ;;  %v4978_v48 = vsub.f32 %v7920_v53, %v4970_v9 }
0x10f5   :  { %v4993_v57 = vmul.f32 1.442695, %v4978_v48 }
0x10f6   :  { %v4038_v14 = vpop.permute.xlu0 %4037 }
0x10f7   :  { %6998 = vpow2.f32 %v4993_v57  ;;  %v4119_v39 = vcombine.low %v4030_v3, %v4038_v14  ;;  %v4120_v42 = vcombine.high %v4030_v3, %v4038_v14 }
0x10f8   :  { %5014 = vadd.xlane.f32.xlu0 %v5013_v19 }
0x10f9   :  { %v4127_v10 = vrot.slane %v4119_v39, %v7223_v31  ;;  %v4134_v1 = vrot.slane %v4120_v42, %v7223_v31 }
0x1100   :  { %v7980_v44 = vpop.eup %6996 }
0x1101   :  { %v5010_v5 = vsel %vm1422_vm9, %v7980_v44, 0.0 }
0x1102   :  { %5011 = vadd.xlane.f32.xlu1 %v5010_v5 }
0x1104   :  { %v7984_v11 = vpop.eup %6998 }
0x1105   :  { %v5016_v33 = vsel %vm1422_vm9, %v7984_v11, 0.0 }
0x1106   :  { %5017 = vadd.xlane.f32.xlu1 %v5016_v33 }
0x1141   :  { %v4997_v53 = vpop.xlane.xlu1 %4996 }
0x1142   :  { %7000 = vrcp.f32 %v4997_v53 }
0x1145   :  { %v5003_v18 = vpop.xlane.xlu1 %5002 }
0x1146   :  { %7002 = vrcp.f32 %v5003_v18  ;;  %v5000_v12 = vpop.xlane.xlu0 %4999 }
0x114b   :  { %v5009_v17 = vpop.xlane.xlu1 %5008 }
0x114c   :  { %7004 = vrcp.f32 %v5009_v17  ;;  %v5006_v21 = vpop.xlane.xlu0 %5005  ;;  %v7038_v17 = vld [vmem:[#allocation2 + $0x98] sm:$0xff] }
0x114d   :  { %7006 = vrcp.f32 %v5000_v12  ;;  %v7037_v12 = vld [vmem:[#allocation2 + $0xa0] sm:$0xff] }
0x114e   :  { %7008 = vrcp.f32 %v5006_v21 }
0x114f   :  { %v7001_v30 = vpop.eup %7000 }
0x1150   :  { %v4042_v54 = vpop.permute.xlu0 %4041  ;;  %v5020_v58 = vmul.f32 %v7001_v30, %v7926_v47  ;;  %v8038_v30 = vld [vmem:[#allocation2 + $0x110] sm:$0xff] }
0x1151   :  { %v4135_v52 = vcombine.low %v4034_v4, %v4042_v54  ;;  %v4136_v36 = vcombine.high %v4034_v4, %v4042_v54 }
0x1152   :  { %6827 = vmatmul.mubr.msk.f32.vlgmr.msra.gmra.mxu1 %vm1422_vm9, %v5020_v58  ;;  %v7040_v58 = vld [vmem:[#allocation2 + $0xd0] sm:$0xff] }
0x1153   :  { %v7003_v61 = vpop.eup %7002  ;;  %v4143_v7 = vrot.slane %v4135_v52, %v7223_v31  ;;  %v4150_v22 = vrot.slane %v4136_v36, %v7223_v31  ;;  %6835 = vmatpush3.msra.mxu1 %v4252_v32  ;;  %6836 = vmatprep.mubr.msk.f32.mxu1 %vm7090_vm8, %v7085_v13  ;;  %v7042_v52 = vld [vmem:[#allocation2 + $0xc0] sm:$0xff]  ;;  %v7043_v36 = vld [vmem:[#allocation2 + $0xb8] sm:$0xff] }
0x1154   :  { %6844 = vmatprep.subr.mxu1 %v7085_v13  ;;  %v5024_v47 = vmul.f32 %v7003_v61, %v7930_v62 }
0x1155   :  { %v4151_v43 = vcombine.low %v4127_v10, %v4143_v7  ;;  %v4152_v35 = vcombine.high %v4127_v10, %v4143_v7  ;;  %v4167_v23 = vcombine.low %v4134_v1, %v4150_v22  ;;  %v4168_v50 = vcombine.high %v4134_v1, %v4150_v22 }
0x1156   :  { %6837 = vmatmul.mubr.msk.f32.vlgmr.msra.gmra.mxu1 %vm1422_vm9, %v5024_v47 }
0x1157   :  { %v4159_v51 = vrot.slane %v4151_v43, %v7234_v38  ;;  %v4166_v55 = vrot.slane %v4152_v35, %v7234_v38  ;;  %v4175_v27 = vrot.slane %v4167_v23, %v7234_v38  ;;  %v4182_v59 = vrot.slane %v4168_v50, %v7234_v38  ;;  %6845 = vmatpush3.msra.mxu1 %v4253_v6 }
0x1158   :  { %6846 = vmatprep.mubr.msk.f32.mxu1 %vm7090_vm8, %v7085_v13  ;;  %6854 = vmatprep.subr.mxu1 %v7085_v13 }
0x1159   :  { %v7005_v62 = vpop.eup %7004  ;;  %v4255_v49 = vcombine.low %v4159_v51, %v4166_v55  ;;  %v6424_v25 = vcombine.high %v4159_v51, %v4166_v55  ;;  %v4271_v46 = vcombine.low %v4175_v27, %v4182_v59  ;;  %v6425_v15 = vcombine.high %v4175_v27, %v4182_v59 }
0x115a   :  { %v5028_v41 = vmul.f32 %v7005_v62, %v7942_v20  ;;  %v7035_v20 = vld [vmem:[#allocation2 + $0xb0] sm:$0xff]  ;;  %v7007_v3 = vpop.eup %7006 }
0x115b   :  { %v4262_v24 = vrot.slane %v4255_v49, %v7223_v31  ;;  %v4270_v2 = vrot.slane %v6424_v25, %v7223_v31  ;;  %v4278_v32 = vrot.slane %v4271_v46, %v7223_v31  ;;  %v4286_v6 = vrot.slane %v6425_v15, %v7223_v31  ;;  %v7009_v57 = vpop.eup %7008 }
0x115c   :  { %6847 = vmatmul.mubr.msk.f32.vlgmr.msra.gmra.mxu1 %vm1422_vm9, %v5028_v41  ;;  %v5022_v48 = vmul.f32 %v7007_v3, %v7932_v34  ;;  %v5026_v19 = vmul.f32 %v7009_v57, %v7944_v60  ;;  %v7036_v60 = vld [vmem:[#allocation2 + $0xa8] sm:$0xff] }
0x115d   :  { %6855 = vmatpush3.msra.mxu1 %v4254_v8  ;;  %v4287_v37 = vcombine.low %v4262_v24, %v4270_v2  ;;  %v4303_v16 = vcombine.low %v4278_v32, %v4286_v6  ;;  %6856 = vmatprep.mubr.msk.f32.mxu1 %vm7090_vm8, %v7085_v13  ;;  %v4288_v28 = vcombine.high %v4262_v24, %v4270_v2 }
0x115e   :  { %6864 = vmatprep.subr.mxu1 %v7035_v20  ;;  %v4304_v29 = vcombine.high %v4278_v32, %v4286_v6 }
0x115f   :  { %v4295_v4 = vrot.slane %v4287_v37, %v7234_v38  ;;  %v4311_v63 = vrot.slane %v4303_v16, %v7234_v38  ;;  %v4302_v40 = vrot.slane %v4288_v28, %v7234_v38 }
0x1160   :  { %v4318_v8 = vrot.slane %v4304_v29, %v7234_v38 }
0x1161   :  { %v4319_v9 = vcombine.low %v4295_v4, %v4311_v63  ;;  %v4320_v26 = vcombine.high %v4295_v4, %v4311_v63 }
0x1162   :  { %v4321_v34 = vcombine.low %v4302_v40, %v4318_v8 }
0x1163   :  { %6830 = vmatpush3.msra.mxu0 %v4319_v9 }
0x1164   :  { %6832 = vmatmul.mubr.msk.f32.vlgmr.msra.gmra.mxu0 %vm1422_vm9, %v5022_v48  ;;  %6839 = vmatprep.subr.mxu0 %v7085_v13 }
0x1165   :  { %6840 = vmatpush3.msra.mxu0 %v4320_v26  ;;  %6841 = vmatprep.mubr.msk.f32.mxu0 %vm7090_vm8, %v7085_v13 }
0x1166   :  { %6849 = vmatprep.subr.mxu0 %v7085_v13 }
0x1168   :  { %6842 = vmatmul.mubr.msk.f32.vlgmr.msra.gmra.mxu0 %vm1422_vm9, %v5026_v19 }
0x1169   :  { %6850 = vmatpush3.msra.mxu0 %v4321_v34  ;;  %6851 = vmatprep.mubr.msk.f32.mxu0 %vm7090_vm8, %v7085_v13 }
0x116a   :  { %6859 = vmatprep.subr.mxu0 %v7085_v13 }
0x1181   :  { %v5015_v5 = vpop.xlane.xlu0 %5014 }
0x1182   :  { %7010 = vrcp.f32 %v5015_v5 }
0x118b   :  { %v5012_v33 = vpop.xlane.xlu1 %5011 }
0x118c   :  { %7012 = vrcp.f32 %v5012_v33 }
0x118f   :  { %v7011_v53 = vpop.eup %7010  ;;  %v5018_v14 = vpop.xlane.xlu1 %5017 }
0x1190   :  { %7014 = vrcp.f32 %v5018_v14  ;;  %v5032_v18 = vmul.f32 %v7011_v53, %v7976_v56  ;;  %v4322_v56 = vcombine.high %v4302_v40, %v4318_v8 }
0x1192   :  { %6857 = vmatmul.mubr.msk.f32.vlgmr.msra.gmra.mxu1 %vm1422_vm9, %v5032_v18 }
0x1193   :  { %6865 = vmatpush3.msra.mxu1 %v7035_v20 }
0x1194   :  { %6866 = vmatprep.subr.mxu1 %v7036_v60 }
0x1195   :  { %6867 = vmatpush3.msra.mxu1 %v7036_v60 }
0x1196   :  { %6868 = vmatprep.subr.mxu1 %v7037_v12 }
0x1197   :  { %6869 = vmatpush3.msra.mxu1 %v7037_v12 }
0x1198   :  { %6870 = vmatprep.subr.mxu1 %v7038_v17 }
0x1199   :  { %v7013_v21 = vpop.eup %7012  ;;  %6871 = vmatpush3.msra.mxu1 %v7038_v17 }
0x119a   :  { %v5030_v39 = vmul.f32 %v7013_v21, %v7980_v44  ;;  %6886 = vmatprep.subr.mxu1 %v8038_v30  ;;  %v7041_v44 = vld [vmem:[#allocation2 + $0xc8] sm:$0xff] }
0x119c   :  { %6852 = vmatmul.mubr.msk.f32.vlgmr.msra.gmra.mxu0 %vm1422_vm9, %v5030_v39 }
0x119d   :  { %v7015_v42 = vpop.eup %7014  ;;  %6860 = vmatpush3.msra.mxu0 %v4322_v56  ;;  %6861 = vmatprep.mubr.msk.f32.mxu0 %vm7090_vm8, %v7085_v13 }
0x119e   :  { %v5034_v54 = vmul.f32 %v7015_v42, %v7984_v11  ;;  %6875 = vmatprep.subr.mxu0 %v7040_v58 }
0x11a0   :  { %6862 = vmatmul.mubr.msk.f32.vlgmr.msra.gmra.mxu0 %vm1422_vm9, %v5034_v54 }
0x11a1   :  { %6876 = vmatpush3.msra.mxu0 %v7040_v58 }
0x11a2   :  { %6877 = vmatprep.subr.mxu0 %v7041_v44 }
0x11a3   :  { %6878 = vmatpush3.msra.mxu0 %v7041_v44 }
0x11a4   :  { %6879 = vmatprep.subr.mxu0 %v7042_v52 }
0x11a5   :  { %6880 = vmatpush3.msra.mxu0 %v7042_v52 }
0x11a6   :  { %6881 = vmatprep.subr.mxu0 %v7043_v36 }
0x11a7   :  { %6882 = vmatpush3.msra.mxu0 %v7043_v36 }
0x11a8   :  { %6905 = vmatprep.subr.mxu0 %v7085_v13 }
0x1212   :  { %v5104_v10 = vpop.f32.mrf.mxu1 }
0x1214   :  { %v6828_v61 = vpop.f32.mrf.mxu1 }
0x1216   :  { %v5250_v1 = vpop.f32.mrf.mxu1 }
0x1218   :  { %v6838_v11 = vpop.f32.mrf.mxu1 }
0x121c   :  { %v5396_v7 = vpop.f32.mrf.mxu1 }
0x121d   :  { %v5619_v50 = vcombine.low %v5104_v10, %v5396_v7  ;;  %v5620_v51 = vcombine.high %v5104_v10, %v5396_v7 }
0x121e   :  { %v6848_v22 = vpop.f32.mrf.mxu1 }
0x121f   :  { %v5627_v49 = vrot.slane %v5619_v50, %v7223_v31  ;;  %v5634_v25 = vrot.slane %v5620_v51, %v7223_v31 }
0x1224   :  { %v5177_v47 = vpop.f32.mrf.mxu0 }
0x1226   :  { %v6833_v43 = vpop.f32.mrf.mxu0 }
0x1228   :  { %v5323_v35 = vpop.f32.mrf.mxu0 }
0x122a   :  { %v6843_v23 = vpop.f32.mrf.mxu0 }
0x1252   :  { %v5542_v55 = vpop.f32.mrf.mxu1 }
0x1253   :  { %v5635_v27 = vcombine.low %v5250_v1, %v5542_v55  ;;  %v5636_v59 = vcombine.high %v5250_v1, %v5542_v55 }
0x1254   :  { %v6858_v62 = vpop.f32.mrf.mxu1 }
0x1255   :  { %v5643_v46 = vrot.slane %v5635_v27, %v7223_v31  ;;  %v5650_v15 = vrot.slane %v5636_v59, %v7223_v31 }
0x1257   :  { %v5651_v41 = vcombine.low %v5627_v49, %v5643_v46  ;;  %v5652_v24 = vcombine.high %v5627_v49, %v5643_v46  ;;  %v5667_v2 = vcombine.low %v5634_v25, %v5650_v15  ;;  %v5668_v32 = vcombine.high %v5634_v25, %v5650_v15 }
0x1259   :  { %v5659_v6 = vrot.slane %v5651_v41, %v7234_v38  ;;  %v5666_v37 = vrot.slane %v5652_v24, %v7234_v38  ;;  %v5675_v16 = vrot.slane %v5667_v2, %v7234_v38  ;;  %v5682_v20 = vrot.slane %v5668_v32, %v7234_v38 }
0x125b   :  { %v5755_v3 = vcombine.low %v5659_v6, %v5666_v37  ;;  %v6450_v4 = vcombine.high %v5659_v6, %v5666_v37  ;;  %v5771_v63 = vcombine.low %v5675_v16, %v5682_v20  ;;  %v6451_v28 = vcombine.high %v5675_v16, %v5682_v20 }
0x125c   :  { %v5469_v29 = vpop.f32.mrf.mxu0 }
0x125d   :  { %v5762_v9 = vrot.slane %v5755_v3, %v7223_v31  ;;  %v5770_v48 = vrot.slane %v6450_v4, %v7223_v31  ;;  %v5778_v26 = vrot.slane %v5771_v63, %v7223_v31  ;;  %v5786_v40 = vrot.slane %v6451_v28, %v7223_v31 }
0x125e   :  { %v6853_v57 = vpop.f32.mrf.mxu0  ;;  %v5687_v8 = vcombine.low %v5177_v47, %v5469_v29  ;;  %v5688_v19 = vcombine.high %v5177_v47, %v5469_v29 }
0x125f   :  { %v5787_v34 = vcombine.low %v5762_v9, %v5770_v48  ;;  %v5803_v33 = vcombine.low %v5778_v26, %v5786_v40  ;;  %v5788_v53 = vcombine.high %v5762_v9, %v5770_v48  ;;  %v5804_v14 = vcombine.high %v5778_v26, %v5786_v40 }
0x1260   :  { %v5615_v5 = vpop.f32.mrf.mxu0  ;;  %v5695_v39 = vrot.slane %v5687_v8, %v7223_v31  ;;  %v5702_v56 = vrot.slane %v5688_v19, %v7223_v31 }
0x1261   :  { %v5703_v18 = vcombine.low %v5323_v35, %v5615_v5  ;;  %v5704_v60 = vcombine.high %v5323_v35, %v5615_v5  ;;  %v5795_v12 = vrot.slane %v5787_v34, %v7234_v38  ;;  %v5811_v21 = vrot.slane %v5803_v33, %v7234_v38  ;;  %v7044_v34 = vld [vmem:[#allocation2 + $0x108] sm:$0xff]  ;;  %v7045_v5 = vld [vmem:[#allocation2 + $0x100] sm:$0xff]  ;;  %v7046_v33 = vld [vmem:[#allocation2 + $0xf8] sm:$0xff] }
0x1262   :  { %v6863_v17 = vpop.f32.mrf.mxu0  ;;  %v5802_v52 = vrot.slane %v5788_v53, %v7234_v38  ;;  %v5818_v36 = vrot.slane %v5804_v14, %v7234_v38  ;;  %v7047_v53 = vld [vmem:[#allocation2 + $0xf0] sm:$0xff]  ;;  %v7048_v14 = vld [vmem:[#allocation2 + $0xe8] sm:$0xff] }
0x1263   :  { %v5711_v42 = vrot.slane %v5703_v18, %v7223_v31  ;;  %v5718_v54 = vrot.slane %v5704_v60, %v7223_v31  ;;  %v5820_v58 = vcombine.high %v5795_v12, %v5811_v21  ;;  %v5819_v44 = vcombine.low %v5795_v12, %v5811_v21  ;;  %v7049_v18 = vld [vmem:[#allocation2 + $0xe0] sm:$0xff]  ;;  %v7050_v60 = vld [vmem:[#allocation2 + $0xd8] sm:$0xff] }
0x1264   :  { %v5821_v35 = vcombine.low %v5802_v52, %v5818_v36  ;;  %v5822_v25 = vcombine.high %v5802_v52, %v5818_v36  ;;  %v7051_v12 = vld [vmem:[%s8152_s3 + $0x4] ss:$0 sm:$0xff] }
0x1265   :  { %v5719_v10 = vcombine.low %v5695_v39, %v5711_v42  ;;  %v5720_v61 = vcombine.high %v5695_v39, %v5711_v42  ;;  %v5735_v1 = vcombine.low %v5702_v56, %v5718_v54  ;;  %v5736_v11 = vcombine.high %v5702_v56, %v5718_v54  ;;  %5893 = vrot.lane.b32.xlu1 %v5820_v58, %s7082_s19 }
0x1267   :  { %v5727_v7 = vrot.slane %v5719_v10, %v7234_v38  ;;  %v5734_v22 = vrot.slane %v5720_v61, %v7234_v38  ;;  %v5743_v47 = vrot.slane %v5735_v1, %v7234_v38  ;;  %v5750_v43 = vrot.slane %v5736_v11, %v7234_v38 }
0x1269   :  { %v5823_v23 = vcombine.low %v5727_v7, %v5734_v22  ;;  %v6452_v50 = vcombine.high %v5727_v7, %v5734_v22  ;;  %v5839_v51 = vcombine.low %v5743_v47, %v5750_v43  ;;  %v6453_v55 = vcombine.high %v5743_v47, %v5750_v43  ;;  %5901 = vrot.lane.b32.xlu1 %v5821_v35, %s7095_s12 }
0x126b   :  { %v5830_v27 = vrot.slane %v5823_v23, %v7223_v31  ;;  %v5838_v59 = vrot.slane %v6452_v50, %v7223_v31  ;;  %v5846_v62 = vrot.slane %v5839_v51, %v7223_v31  ;;  %v5854_v49 = vrot.slane %v6453_v55, %v7223_v31 }
0x126d   :  { %v5856_v46 = vcombine.high %v5830_v27, %v5838_v59  ;;  %v5872_v15 = vcombine.high %v5846_v62, %v5854_v49  ;;  %v5855_v41 = vcombine.low %v5830_v27, %v5838_v59  ;;  %v5871_v24 = vcombine.low %v5846_v62, %v5854_v49  ;;  %5909 = vrot.lane.b32.xlu1 %v5822_v25, %s7096_s13  ;;  %v7052_v27 = vld [vmem:[%s8152_s3 + $0x5] ss:$0 sm:$0xff]  ;;  %v7053_v25 = vld [vmem:[%s8152_s3 + $0x6] ss:$0 sm:$0xff] }
0x126f   :  { %v5870_v2 = vrot.slane %v5856_v46, %v7234_v38  ;;  %v5886_v32 = vrot.slane %v5872_v15, %v7234_v38  ;;  %v5863_v6 = vrot.slane %v5855_v41, %v7234_v38  ;;  %v5879_v37 = vrot.slane %v5871_v24, %v7234_v38 }
0x1271   :  { %v5889_v16 = vcombine.low %v5870_v2, %v5886_v32  ;;  %v5888_v20 = vcombine.high %v5863_v6, %v5879_v37  ;;  %v5887_v3 = vcombine.low %v5863_v6, %v5879_v37  ;;  %v5890_v31 = vcombine.high %v5870_v2, %v5886_v32  ;;  %v7054_v2 = vld [vmem:[%s8152_s3 + $0x7] ss:$0 sm:$0xff] }
0x1273   :  { %5903 = vrot.lane.b32.xlu1 %v5889_v16, %s7095_s12  ;;  %5895 = vrot.lane.b32.xlu0 %v5888_v20, %s7082_s19 }
0x1277   :  { %5911 = vrot.lane.b32.xlu1 %v5890_v31, %s7096_s13 }
0x12d7   :  { %v5894_v4 = vpop.permute.xlu1 %5893 }
0x12d8   :  { %v5915_v28 = vsel %vm1422_vm9, %v5819_v44, %v5894_v4 }
0x12db   :  { %v5902_v63 = vpop.permute.xlu1 %5901 }
0x12dc   :  { %v5917_v29 = vsel %vm3027_vm10, %v5915_v28, %v5902_v63 }
0x12df   :  { %v5910_v9 = vpop.permute.xlu1 %5909 }
0x12e0   :  { %v5919_v48 = vsel %vm3030_vm11, %v5917_v29, %v5910_v9 }
0x12e1   :  { %6872 = vmatprep.mubr.msk.f32.mxu1 %vm241_vm7, %v5919_v48 }
0x12e5   :  { %v5904_v38 = vpop.permute.xlu1 %5903  ;;  %v5896_v57 = vpop.permute.xlu0 %5895 }
0x12e6   :  { %v5916_v26 = vsel %vm1422_vm9, %v5887_v3, %v5896_v57 }
0x12e7   :  { %v5918_v8 = vsel %vm3027_vm10, %v5916_v26, %v5904_v38 }
0x12e9   :  { %v5912_v40 = vpop.permute.xlu1 %5911 }
0x12ea   :  { %v5920_v19 = vsel %vm3030_vm11, %v5918_v8, %v5912_v40 }
0x12eb   :  { %6873 = vmatmul.mubr.msk.f32.vlgmr.msra.gmra.mxu1 %vm241_vm7, %v5920_v19 }
0x12ec   :  { %6887 = vmatpush3.msra.mxu1 %v8038_v30 }
0x12ed   :  { %6888 = vmatprep.subr.mxu1 %v7044_v34 }
0x12ee   :  { %6889 = vmatpush3.msra.mxu1 %v7044_v34 }
0x12ef   :  { %6890 = vmatprep.subr.mxu1 %v7045_v5 }
0x12f0   :  { %6891 = vmatpush3.msra.mxu1 %v7045_v5 }
0x12f1   :  { %6892 = vmatprep.subr.mxu1 %v7046_v33 }
0x12f2   :  { %6893 = vmatpush3.msra.mxu1 %v7046_v33 }
0x12f3   :  { %6894 = vmatprep.subr.mxu1 %v7047_v53 }
0x12f4   :  { %6895 = vmatpush3.msra.mxu1 %v7047_v53  ;;  %v7055_v53 = vld [vmem:[%s8152_s3 + $0x8] ss:$0 sm:$0xff] }
0x12f5   :  { %6896 = vmatprep.subr.mxu1 %v7048_v14 }
0x12f6   :  { %6897 = vmatpush3.msra.mxu1 %v7048_v14 }
0x12f7   :  { %6898 = vmatprep.subr.mxu1 %v7049_v18 }
0x12f8   :  { %6899 = vmatpush3.msra.mxu1 %v7049_v18 }
0x12f9   :  { %6900 = vmatprep.subr.mxu1 %v7050_v60 }
0x12fa   :  { %6901 = vmatpush3.msra.mxu1 %v7050_v60 }
0x13ab   :  { %v6874_v30 = vpop.f32.mrf.mxu1 }
0x13ac   :  { %v5999_v17 = vadd.f32 %v7051_v12, %v6874_v30 }
0x13ad   :  { %v5993_v21 = vpop.f32.mrf.mxu1 }
0x13ae   :  { %v6003_v39 = vadd.f32 %v5999_v17, %v7662_v0  ;;  %v5994_v56 = vadd.f32 %v7051_v12, %v5993_v21 }
0x13b0   :  { %v6002_v42 = vadd.f32 %v5994_v56, %v7660_v45  ;;  %v6007_v54 = vsel %vm241_vm7, %v6003_v39, 0.0 }
0x13b1   :  { %6008 = vadd.xlane.f32.xlu1 %v6007_v54 }
0x13b2   :  { %v6004_v58 = vsel %vm241_vm7, %v6002_v42, 0.0 }
0x13b3   :  { %6005 = vadd.xlane.f32.xlu0 %v6004_v58 }
0x143a   :  { %v6009_v44 = vpop.xlane.xlu1 %6008 }
0x143b   :  { %v6011_v52 = vmul.f32 0.03125, %v6009_v44 }
0x143c   :  { %v6006_v36 = vpop.xlane.xlu0 %6005 }
0x143d   :  { %v6010_v10 = vmul.f32 0.03125, %v6006_v36  ;;  %v6013_v61 = vsub.f32 %v6003_v39, %v6011_v52 }
0x143f   :  { %v6012_v1 = vsub.f32 %v6002_v42, %v6010_v10  ;;  %v6015_v22 = vmul.f32 %v6013_v61, %v6013_v61 }
0x1441   :  { %v6014_v11 = vmul.f32 %v6012_v1, %v6012_v1  ;;  %v6019_v0 = vsel %vm241_vm7, %v6015_v22, 0.0  ;;  %v6248_v22 = vld [vmem:[#allocation2 + $0x118] sm:$0xff] }
0x1443   :  { %v6016_v7 = vsel %vm241_vm7, %v6014_v11, 0.0  ;;  %v6250_v11 = vld [vmem:[#allocation2 + $0x128] sm:$0xff] }
0x1444   :  { %6017 = vadd.xlane.f32.xlu0 %v6016_v7  ;;  %v6249_v7 = vld [vmem:[#allocation2 + $0x120] sm:$0xff] }
0x1448   :  { %6020 = vadd.xlane.f32.xlu0 %v6019_v0 }
0x14cd   :  { %v6018_v45 = vpop.xlane.xlu0 %6017 }
0x14ce   :  { %v6022_v47 = vmul.f32 0.03125, %v6018_v45 }
0x14d0   :  { %v6024_v43 = vadd.f32 1e-12, %v6022_v47 }
0x14d1   :  { %v6021_v35 = vpop.xlane.xlu0 %6020 }
0x14d2   :  { %7016 = vrsqrt.f32 %v6024_v43  ;;  %v6023_v23 = vmul.f32 0.03125, %v6021_v35 }
0x14d4   :  { %v6025_v50 = vadd.f32 1e-12, %v6023_v23 }
0x14d6   :  { %7018 = vrsqrt.f32 %v6025_v50 }
0x14df   :  { %v7017_v51 = vpop.eup %7016 }
0x14e0   :  { %v6028_v55 = vmul.f32 %v7017_v51, %v6012_v1  ;;  %v6251_v1 = vld [vmem:[#allocation2 + $0x130] sm:$0xff] }
0x14e2   :  { %v6030_v59 = vmul.f32 %v7052_v27, %v6028_v55 }
0x14e3   :  { %v7019_v62 = vpop.eup %7018 }
0x14e4   :  { %v6029_v49 = vmul.f32 %v7019_v62, %v6013_v61  ;;  %v6032_v46 = vadd.f32 %v7053_v25, %v6030_v59  ;;  %v7056_v59 = vld [vmem:[%s8152_s3 + $0x9] ss:$0 sm:$0xff] }
0x14e6   :  { %6883 = vmatprep.mubr.msk.f32.mxu0 %vm241_vm7, %v6032_v46  ;;  %v6031_v15 = vmul.f32 %v7052_v27, %v6029_v49 }
0x14e8   :  { %v6033_v41 = vadd.f32 %v7053_v25, %v6031_v15 }
0x14ea   :  { %6884 = vmatmul.mubr.msk.f32.vlgmr.msra.gmra.mxu0 %vm241_vm7, %v6033_v41 }
0x14eb   :  { %6913 = vmatprep.mubr.msk.f32.mxu0 %vm7090_vm8, %v7085_v13  ;;  %6906 = vmatpush3.msra.mxu0 %v6251_v1 }
0x14ec   :  { %6907 = vmatprep.subr.mxu0 %v7085_v13 }
0x14ed   :  { %6908 = vmatpush3.msra.mxu0 %v6250_v11 }
0x14ee   :  { %6909 = vmatprep.subr.mxu0 %v7085_v13 }
0x14ef   :  { %6910 = vmatpush3.msra.mxu0 %v6249_v7 }
0x14f0   :  { %6911 = vmatprep.subr.mxu0 %v7085_v13  ;;  %v7057_v13 = vld [vmem:[%s8152_s3 + $0xa] ss:$0 sm:$0xff] }
0x14f1   :  { %6912 = vmatpush3.msra.mxu0 %v6248_v22 }
0x15aa   :  { %v6885_v24 = vpop.f32.mrf.mxu0 }
0x15ab   :  { %v6112_v32 = vadd.f32 %v7054_v2, %v6885_v24  ;;  %v6460_v24 = vld [vmem:[%s8152_s3 + $0xb] ss:$0 sm:$0xff] }
0x15ac   :  { %v6106_v6 = vpop.f32.mrf.mxu0 }
0x15ad   :  { %v6118_v37 = vmul.f32 0.044715, %v6112_v32  ;;  %v6107_v16 = vadd.f32 %v7054_v2, %v6106_v6  ;;  %v6116_v19 = vmul.f32 0.5, %v6112_v32 }
0x15af   :  { %v6120_v20 = vmul.f32 %v6118_v37, %v6112_v32  ;;  %v6117_v3 = vmul.f32 0.044715, %v6107_v16  ;;  %v6115_v40 = vmul.f32 0.5, %v6107_v16 }
0x15b1   :  { %v6122_v31 = vmul.f32 %v6120_v20, %v6112_v32  ;;  %v6119_v4 = vmul.f32 %v6117_v3, %v6107_v16 }
0x15b3   :  { %v6124_v63 = vadd.f32 %v6122_v31, %v6112_v32  ;;  %v6121_v28 = vmul.f32 %v6119_v4, %v6107_v16 }
0x15b5   :  { %v6126_v29 = vmul.f32 0.7978846, %v6124_v63  ;;  %v6123_v9 = vadd.f32 %v6121_v28, %v6107_v16 }
0x15b7   :  { %7020 = vtanh.f32 %v6126_v29  ;;  %v6125_v48 = vmul.f32 0.7978846, %v6123_v9 }
0x15b9   :  { %7022 = vtanh.f32 %v6125_v48 }
0x15c4   :  { %v7021_v38 = vpop.eup %7020 }
0x15c5   :  { %v6130_v26 = vadd.f32 1.0, %v7021_v38 }
0x15c6   :  { %v7023_v57 = vpop.eup %7022 }
0x15c7   :  { %v6129_v8 = vadd.f32 1.0, %v7023_v57  ;;  %v6132_v5 = vmul.f32 %v6130_v26, %v6116_v19 }
0x15c9   :  { %v6131_v34 = vmul.f32 %v6129_v8, %v6115_v40 }
0x15cb   :  { %6902 = vmatprep.mubr.msk.f32.mxu1 %vm155_vm1, %v6131_v34 }
0x15cc   :  { %6903 = vmatmul.mubr.msk.f32.vlgmr.msra.gmra.mxu1 %vm155_vm1, %v6132_v5 }
0x168c   :  { %v6904_v33 = vpop.f32.mrf.mxu1 }
0x168d   :  { %v6211_v14 = vadd.f32 %v7055_v53, %v6904_v33 }
0x168e   :  { %v6205_v18 = vpop.f32.mrf.mxu1 }
0x168f   :  { %v6215_v60 = vadd.f32 %v6211_v14, %v6033_v41  ;;  %v6206_v30 = vadd.f32 %v7055_v53, %v6205_v18 }
0x1691   :  { %v6214_v12 = vadd.f32 %v6206_v30, %v6032_v46  ;;  %v6219_v17 = vsel %vm241_vm7, %v6215_v60, 0.0 }
0x1692   :  { %6220 = vadd.xlane.f32.xlu1 %v6219_v17 }
0x1693   :  { %v6216_v21 = vsel %vm241_vm7, %v6214_v12, 0.0 }
0x1694   :  { %6217 = vadd.xlane.f32.xlu0 %v6216_v21 }
0x171b   :  { %v6221_v39 = vpop.xlane.xlu1 %6220 }
0x171c   :  { %v6223_v56 = vmul.f32 0.03125, %v6221_v39 }
0x171d   :  { %v6218_v42 = vpop.xlane.xlu0 %6217 }
0x171e   :  { %v6225_v54 = vsub.f32 %v6215_v60, %v6223_v56  ;;  %v6222_v58 = vmul.f32 0.03125, %v6218_v42 }
0x1720   :  { %v6224_v44 = vsub.f32 %v6214_v12, %v6222_v58  ;;  %v6227_v52 = vmul.f32 %v6225_v54, %v6225_v54 }
0x1722   :  { %v6231_v36 = vsel %vm241_vm7, %v6227_v52, 0.0  ;;  %v6226_v10 = vmul.f32 %v6224_v44, %v6224_v44 }
0x1723   :  { %6232 = vadd.xlane.f32.xlu1 %v6231_v36 }
0x1724   :  { %v6228_v61 = vsel %vm241_vm7, %v6226_v10, 0.0 }
0x1725   :  { %6229 = vadd.xlane.f32.xlu0 %v6228_v61 }
0x17ac   :  { %v6233_v0 = vpop.xlane.xlu1 %6232 }
0x17ad   :  { %v6235_v45 = vmul.f32 0.03125, %v6233_v0 }
0x17ae   :  { %v6230_v47 = vpop.xlane.xlu0 %6229 }
0x17af   :  { %v6237_v43 = vadd.f32 1e-12, %v6235_v45  ;;  %v6234_v35 = vmul.f32 0.03125, %v6230_v47 }
0x17b1   :  { %7024 = vrsqrt.f32 %v6237_v43  ;;  %v6236_v23 = vadd.f32 1e-12, %v6234_v35 }
0x17b3   :  { %7026 = vrsqrt.f32 %v6236_v23 }
0x17be   :  { %v7025_v50 = vpop.eup %7024 }
0x17bf   :  { %v6241_v51 = vmul.f32 %v7025_v50, %v6225_v54 }
0x17c0   :  { %v7027_v55 = vpop.eup %7026 }
0x17c1   :  { %v6240_v27 = vmul.f32 %v7027_v55, %v6224_v44  ;;  %v6243_v62 = vmul.f32 %v7056_v59, %v6241_v51 }
0x17c3   :  { %v6242_v49 = vmul.f32 %v7056_v59, %v6240_v27  ;;  %v6245_v25 = vadd.f32 %v7057_v13, %v6243_v62 }
0x17c5   :  { %v6244_v46 = vadd.f32 %v7057_v13, %v6242_v49  ;;  %6247 = vst.msk [vmem:[%s8153_s4 + $0x8] sm:$0xff] %vm241_vm7, %v6245_v25  ;;  %v6259_v15 = vrot.slane %v6245_v25, 7 }
0x17c7   :  { %6246 = vst.msk [vmem:[%s8153_s4] sm:$0xff] %vm241_vm7, %v6244_v46  ;;  %v6261_v41 = vsel %vm6260_vm12, %v6259_v15, %v6244_v46 }
0x17c8   :  { %6914 = vmatmul.mubr.msk.f32.vlgmr.msra.gmra.mxu0 %vm241_vm7, %v6261_v41 }
0x1888   :  { %v6330_v2 = vpop.f32.mrf.mxu0 }
0x1889   :  { %v6331_v32 = vadd.f32 %v6460_v24, %v6330_v2 }
0x188a   :  { %v6915_v6 = vpop.f32.mrf.mxu0 }
0x188b   :  { %7028 = vtanh.f32 %v6331_v32 }
0x1898   :  { %v7029_v37 = vpop.eup %7028 }
0x1899   :  { %6336 = vst.msk [vmem:[%s8153_s4 + $0x10] sm:$0x3] %vm6335_vm13, %v7029_v37 }
0x189a   :  { %6341 = vsyncpa [#allocation3], 1 }

</bundles_post_ra>
